<compile_context>
chip_gen: v5e
topology: v5e:2x2
jax: 0.10.0
libtpu: 0.0.40
codegen_flags: <defaults>
</compile_context>

<pallas_src>
import functools

import jax
import jax.numpy as jnp
import numpy as np
from jax import lax
from jax.experimental import pallas as pl
from jax.experimental.pallas import tpu as pltpu


_LEAD = 8  # aligned lead/tail pad rows of the o1 scratch (only 1 row each side is read)


def _round_up(v, m):
    return (v + m - 1) // m * m


def _pick_row_tile(H, target):
    t = min(target, H)
    while H % t:
        t -= 1
    return t


def _fold_bn(w, scale):
    # Fold the BN scale along the output-channel (last) axis of a conv weight.
    return w * scale.reshape((1,) * (w.ndim - 1) + (-1,))


def _vmem_limit_bytes():
    # ~75% of physical VMEM, capped at 100 MiB: ~96 MiB on v5e/v6e (128 MiB phys),
    # ~48 MiB on v7x (64 MiB phys).  Falls back to 64 MiB if the query is unavailable.
    try:
        cap = int(pltpu.get_tpu_info().vmem_capacity_bytes)
        return min(cap * 3 // 4, 100 * 1024 * 1024)
    except Exception:
        return 64 * 1024 * 1024


# ---------------------------------------------------------------------------
# Wrapper + fused kernel
# ---------------------------------------------------------------------------
def bottleneck_forward(x_nchw, params, *, compute_dtype=jnp.bfloat16, row_tile=16,
                       x_dtype=None, out_dtype=jnp.float32):
    """Fused conv1/bn1/relu -> conv2(3x3)/bn2/relu -> conv3/bn3 + residual -> relu."""
    N, C, H, W = x_nchw.shape
    Cin, P = params["w1"].shape
    C4 = params["w3"].shape[1]
    assert C == Cin and C == C4, "downsample=None requires inplanes == planes*4"
    # TODO(synk): stride>1 / downsample branch not implemented (module defaults).

    TH = _pick_row_tile(H, row_tile)          # rows of output per strip
    n_strips = H // TH
    Wp = _round_up(W + 1, 8)                  # >=1 zero col feeds the +/-1 column shifts
    MW = (TH + 2) * Wp                        # flattened conv1-window rows per strip
    MO = TH * Wp                              # flattened output rows per strip

    # Wrapper-side layout: NCHW -> NHWC, pad H by (1,1) and W to Wp with zeros,
    # flatten (H+2, Wp) into one spatial axis.  The pads make every kernel slice
    # aligned and provide conv2's zero padding; XLA fuses them with the transpose.
    x = jnp.transpose(x_nchw, (0, 2, 3, 1))
    if x_dtype is not None:
        x = x.astype(x_dtype)
    x = jnp.pad(x, ((0, 0), (1, 1), (0, Wp - W), (0, 0)))
    x = x.reshape(N, (H + 2) * Wp, Cin)

    # One-time constant fold of the eval-mode BN scales into the conv weights;
    # weights pre-cast to the MXU compute dtype, biases stay f32.
    w1 = _fold_bn(params["w1"], params["s1"][0]).astype(compute_dtype)             # (Cin, P)
    w2 = _fold_bn(params["w2"], params["s2"][0]).astype(compute_dtype).reshape(9 * P, P)
    w3 = _fold_bn(params["w3"], params["s3"][0]).astype(compute_dtype)             # (P, C4)
    b1 = params["b1"].astype(jnp.float32)
    b2 = params["b2"].astype(jnp.float32)
    b3 = params["b3"].astype(jnp.float32)

    def kernel(x_ref, w1_ref, b1_ref, w2_ref, b2_ref, w3_ref, b3_ref, o_ref, o1_ref):
        # x_ref : ((H+2)*Wp, Cin)     full padded image, resident per batch element
        # w2_ref: (9P, P)             taps flattened (ky, kx, cin) along K
        # o_ref : (TH*Wp, C4)         one flattened row strip of the output
        # o1_ref: (2*_LEAD + MW, P)   f32 scratch: conv1 output + 1-row shift halo
        cdtype = w1_ref.dtype
        s = pl.program_id(1)
        m0 = pl.multiple_of(s * (TH * Wp), 8)          # first flattened window row

        # ---- conv1 (1x1) + bn1 + relu: ONE matmul over the (TH+2)-row window ----
        xs = x_ref[pl.ds(m0, MW), :]
        y1 = jnp.dot(xs.astype(cdtype), w1_ref[...], preferred_element_type=jnp.float32)
        y1 = jnp.maximum(y1 + b1_ref[...], 0.0)

        # Zero exactly what conv2's padding needs: pad columns always, halo rows only
        # at the image top/bottom.  Folded into the conv1 epilogue as one select.
        r_idx = lax.broadcasted_iota(jnp.int32, (TH + 2, Wp, 1), 0)
        c_idx = lax.broadcasted_iota(jnp.int32, (TH + 2, Wp, 1), 1)
        row_lo = jnp.where(s == 0, 1, 0)
        row_hi = (TH + 2) - jnp.where(s == n_strips - 1, 1, 0)
        keep = (c_idx < W) & (r_idx >= row_lo) & (r_idx < row_hi)
        y1 = jnp.where(keep, y1.reshape(TH + 2, Wp, P), 0.0).reshape(MW, P)

        # o1 kept in f32 so the odd-offset shifted reads below are plain sublane
        # shifts (no bf16 repack).  Only the two tiny lead/tail bands are zeroed.
        o1_ref[0:_LEAD, :] = jnp.zeros((_LEAD, P), jnp.float32)
        o1_ref[_LEAD + MW:_LEAD + MW + _LEAD, :] = jnp.zeros((_LEAD, P), jnp.float32)
        o1_ref[_LEAD:_LEAD + MW, :] = y1

        # ---- conv2 (3x3, stride=1, pad=1) + bn2 + relu as ONE im2col matmul ----
        # K = 9P so the MXU accumulates along K; no per-tap accumulator in VMEM.
        # Each tap is a static +/-1-row shifted slice of the flattened scratch; the
        # zero pad columns (and the zeroed lead/tail rows) supply the halo values.
        pieces = []
        for ky in range(3):
            for kx in range(3):
                start = _LEAD + ky * Wp + (kx - 1)
                pieces.append(o1_ref[start:start + MO, :].astype(cdtype))
        patches = jnp.concatenate(pieces, axis=-1)                       # (MO, 9P)
        y2 = jnp.dot(patches, w2_ref[...], preferred_element_type=jnp.float32)
        o2 = jnp.maximum(y2 + b2_ref[...], 0.0).astype(cdtype)

        # ---- conv3 (1x1) + bn3 + residual add + relu ----
        y3 = jnp.dot(o2, w3_ref[...], preferred_element_type=jnp.float32)
        res = x_ref[pl.ds(m0 + Wp, MO), :]          # same flattened layout as o_ref
        out = jnp.maximum(y3 + b3_ref[...] + res.astype(jnp.float32), 0.0)
        o_ref[...] = out.astype(o_ref.dtype)

    out = pl.pallas_call(
        kernel,
        out_shape=jax.ShapeDtypeStruct((N, H * Wp, C4), out_dtype),
        grid=(N, n_strips),
        in_specs=[
            # Full padded image per batch element; the block index depends only on n,
            # so x is DMA'd from HBM once per image and stays resident across strips.
            pl.BlockSpec((None, (H + 2) * Wp, Cin), lambda n, s: (n, 0, 0)),
            # Constant-index weight / bias blocks.
            # TODO(synk): single-buffer these (pipeline_mode=pl.Buffered(1)) to save
            #             ~9 MiB on the P=512 stage for v7x's 64 MiB VMEM.
            pl.BlockSpec((Cin, P), lambda n, s: (0, 0)),
            pl.BlockSpec((1, P), lambda n, s: (0, 0)),
            pl.BlockSpec((9 * P, P), lambda n, s: (0, 0)),
            pl.BlockSpec((1, P), lambda n, s: (0, 0)),
            pl.BlockSpec((P, C4), lambda n, s: (0, 0)),
            pl.BlockSpec((1, C4), lambda n, s: (0, 0)),
        ],
        out_specs=pl.BlockSpec((None, TH * Wp, C4), lambda n, s: (n, s, 0)),
        scratch_shapes=[
            pltpu.VMEM((2 * _LEAD + MW, P), jnp.float32),   # o1 (conv1 output + halo)
        ],
        compiler_params=pltpu.CompilerParams(
            # Keep the megacore split on N (each image's x block fetched once);
            # the strip axis revisits the same x block, so mark it "arbitrary".
            dimension_semantics=("parallel", "arbitrary"),
            vmem_limit_bytes=_vmem_limit_bytes(),
        ),
    )(x, w1, b1, w2, b2, w3, b3)

    out = out.reshape(N, H, Wp, C4)[:, :, :W, :]     # drop pad columns
    return jnp.transpose(out, (0, 3, 1, 2))          # NHWC -> NCHW


# ---------------------------------------------------------------------------
# Reference (pure JAX / XLA) for correctness check
# ---------------------------------------------------------------------------
def ref_forward(x_nchw, params):
    dn = ("NCHW", "OIHW", "NCHW")

    def affine(y, s, b):
        return y * s[0][None, :, None, None] + b[0][None, :, None, None]

    w1 = jnp.transpose(params["w1"], (1, 0))[:, :, None, None]
    o = jax.lax.conv_general_dilated(x_nchw, w1, (1, 1), "VALID", dimension_numbers=dn)
    o = jnp.maximum(affine(o, params["s1"], params["b1"]), 0.0)

    w2 = jnp.transpose(params["w2"], (3, 2, 0, 1))
    o = jax.lax.conv_general_dilated(o, w2, (1, 1), ((1, 1), (1, 1)), dimension_numbers=dn)
    o = jnp.maximum(affine(o, params["s2"], params["b2"]), 0.0)

    w3 = jnp.transpose(params["w3"], (1, 0))[:, :, None, None]
    o = jax.lax.conv_general_dilated(o, w3, (1, 1), "VALID", dimension_numbers=dn)
    o = affine(o, params["s3"], params["b3"]) + x_nchw
    return jnp.maximum(o, 0.0)


# ---------------------------------------------------------------------------
# Deterministic parameter construction (eval-mode BatchNorm, eps=1e-5)
# ---------------------------------------------------------------------------
def make_params(key, inplanes, planes):
    eps = 1e-5
    ks = jax.random.split(key, 16)

    def bn(kg, kb, km, kv, c):
        gamma = 1.0 + 0.1 * jax.random.normal(kg, (c,), jnp.float32)
        beta = 0.1 * jax.random.normal(kb, (c,), jnp.float32)
        mean = 0.1 * jax.random.normal(km, (c,), jnp.float32)
        var = jax.random.uniform(kv, (c,), jnp.float32, 0.5, 1.5)
        scale = gamma / jnp.sqrt(var + eps)
        bias = beta - mean * scale
        return scale.reshape(1, c), bias.reshape(1, c)

    w1 = 0.1 * jax.random.normal(ks[0], (inplanes, planes), jnp.float32)
    w2 = 0.1 * jax.random.normal(ks[1], (3, 3, planes, planes), jnp.float32)
    w3 = 0.1 * jax.random.normal(ks[2], (planes, planes * 4), jnp.float32)
    s1, b1 = bn(ks[3], ks[4], ks[5], ks[6], planes)
    s2, b2 = bn(ks[7], ks[8], ks[9], ks[10], planes)
    s3, b3 = bn(ks[11], ks[12], ks[13], ks[14], planes * 4)
    return dict(w1=w1, w2=w2, w3=w3, s1=s1, b1=b1, s2=s2, b2=b2, s3=s3, b3=b3)


if __name__ == "__main__":
    key = jax.random.PRNGKey(0)
    k_x, k_p = jax.random.split(key)

    planes = 8
    inplanes = planes * 4          # 32: residual add valid with downsample=None
    N, H, W = 2, 16, 16

    x = jax.random.normal(k_x, (N, inplanes, H, W), jnp.float32)
    params = make_params(k_p, inplanes, planes)

    ref = jax.block_until_ready(ref_forward(x, params))

    # f32 MXU path: exact-path correctness check.
    fwd_f32 = jax.jit(functools.partial(bottleneck_forward, compute_dtype=jnp.float32))
    out_f32 = jax.block_until_ready(fwd_f32(x, params))
    np.testing.assert_allclose(np.asarray(out_f32), np.asarray(ref), rtol=1e-4, atol=1e-4)

    # bf16 path (recommended on v6e/v7x): bf16 matmul inputs, bf16 x and output,
    # f32 accumulation / bias / residual math.
    fwd_bf16 = jax.jit(functools.partial(bottleneck_forward, compute_dtype=jnp.bfloat16,
                                         x_dtype=jnp.bfloat16, out_dtype=jnp.bfloat16))
    out_bf16 = jax.block_until_ready(fwd_bf16(x, params))
    np.testing.assert_allclose(np.asarray(out_bf16.astype(jnp.float32)), np.asarray(ref),
                               rtol=5e-2, atol=5e-2)

    print("KERNEL_OK")
</pallas_src>

<mosaic_0001>
module attributes {stable_mosaic.version = 11 : i64} {
  func.func @kernel(%arg0: i32, %arg1: i32, %arg2: memref<1x432x32xf32, #tpu.memory_space<vmem>>, %arg3: memref<32x8xf32, #tpu.memory_space<vmem>>, %arg4: memref<1x8xf32, #tpu.memory_space<vmem>>, %arg5: memref<72x8xf32, #tpu.memory_space<vmem>>, %arg6: memref<1x8xf32, #tpu.memory_space<vmem>>, %arg7: memref<8x32xf32, #tpu.memory_space<vmem>>, %arg8: memref<1x32xf32, #tpu.memory_space<vmem>>, %arg9: memref<1x384x32xf32, #tpu.memory_space<vmem>>, %arg10: memref<448x8xf32, #tpu.memory_space<vmem>>) attributes {dimension_semantics = [#tpu.dimension_semantics<parallel>, #tpu.dimension_semantics<arbitrary>], iteration_bounds = array<i64: 2, 1>, scalar_prefetch = 0 : i64, scratch_operands = 1 : i64, tpu.core_type = #tpu.core_type<tc>, window_params = [{transform_indices = @transform_0, window_bounds = array<i64: 1, 432, 32>}, {pipeline_mode = #tpu.pipeline_mode<synchronous>, transform_indices = @transform_1, window_bounds = array<i64: 32, 8>}, {pipeline_mode = #tpu.pipeline_mode<synchronous>, transform_indices = @transform_2, window_bounds = array<i64: 1, 8>}, {pipeline_mode = #tpu.pipeline_mode<synchronous>, transform_indices = @transform_3, window_bounds = array<i64: 72, 8>}, {pipeline_mode = #tpu.pipeline_mode<synchronous>, transform_indices = @transform_4, window_bounds = array<i64: 1, 8>}, {pipeline_mode = #tpu.pipeline_mode<synchronous>, transform_indices = @transform_5, window_bounds = array<i64: 8, 32>}, {pipeline_mode = #tpu.pipeline_mode<synchronous>, transform_indices = @transform_6, window_bounds = array<i64: 1, 32>}, {transform_indices = @transform_7, window_bounds = array<i64: 1, 384, 32>}]} {
    %c384_i32 = arith.constant 384 : i32
    %0 = arith.muli %arg1, %c384_i32 : i32
    %1 = tpu.assume_multiple %0, 8 : i32
    %c0 = arith.constant 0 : index
    %2 = arith.index_cast %1 : i32 to index
    %c0_0 = arith.constant 0 : index
    %3 = vector.load %arg2[%c0, %2, %c0_0] : memref<1x432x32xf32, #tpu.memory_space<vmem>>, vector<1x432x32xf32>
    %4 = vector.shape_cast %3 : vector<1x432x32xf32> to vector<432x32xf32>
    %c0_1 = arith.constant 0 : index
    %c0_2 = arith.constant 0 : index
    %5 = vector.load %arg3[%c0_1, %c0_2] : memref<32x8xf32, #tpu.memory_space<vmem>>, vector<32x8xf32>
    %cst = arith.constant dense<0.000000e+00> : vector<432x8xf32>
    %6 = tpu.matmul %4, %5, %cst {dimension_numbers = #tpu.dot_dimension_numbers<[1], [0], [0], [1], [0, 0, 1, 1], [], []>} : vector<432x32xf32>, vector<32x8xf32>, vector<432x8xf32> -> vector<432x8xf32>
    %c0_3 = arith.constant 0 : index
    %c0_4 = arith.constant 0 : index
    %7 = vector.load %arg4[%c0_3, %c0_4] : memref<1x8xf32, #tpu.memory_space<vmem>>, vector<1x8xf32>
    %8 = vector.broadcast %7 : vector<1x8xf32> to vector<432x8xf32>
    %9 = arith.addf %6, %8 : vector<432x8xf32>
    %cst_5 = arith.constant 0.000000e+00 : f32
    %10 = vector.broadcast %cst_5 : f32 to vector<432x8xf32>
    %11 = arith.maximumf %9, %10 : vector<432x8xf32>
    %12 = tpu.iota {dimensions = array<i32: 0>} : vector<18x24x1xi32>
    %13 = tpu.iota {dimensions = array<i32: 1>} : vector<18x24x1xi32>
    %c0_i32 = arith.constant 0 : i32
    %14 = arith.cmpi eq, %arg1, %c0_i32 : i32
    %c1_i32 = arith.constant 1 : i32
    %c0_i32_6 = arith.constant 0 : i32
    %15 = arith.select %14, %c1_i32, %c0_i32_6 : i32
    %c0_i32_7 = arith.constant 0 : i32
    %16 = arith.cmpi eq, %arg1, %c0_i32_7 : i32
    %c1_i32_8 = arith.constant 1 : i32
    %c0_i32_9 = arith.constant 0 : i32
    %17 = arith.select %16, %c1_i32_8, %c0_i32_9 : i32
    %c18_i32 = arith.constant 18 : i32
    %18 = arith.subi %c18_i32, %17 : i32
    %c16_i32 = arith.constant 16 : i32
    %19 = vector.broadcast %c16_i32 : i32 to vector<18x24x1xi32>
    %20 = arith.cmpi slt, %13, %19 : vector<18x24x1xi32>
    %21 = vector.broadcast %15 : i32 to vector<18x24x1xi32>
    %22 = arith.cmpi sge, %12, %21 : vector<18x24x1xi32>
    %23 = arith.andi %20, %22 : vector<18x24x1xi1>
    %24 = vector.broadcast %18 : i32 to vector<18x24x1xi32>
    %25 = arith.cmpi slt, %12, %24 : vector<18x24x1xi32>
    %26 = arith.andi %23, %25 : vector<18x24x1xi1>
    %27 = vector.shape_cast %11 : vector<432x8xf32> to vector<18x24x8xf32>
    %cst_10 = arith.constant 0.000000e+00 : f32
    %28 = vector.shape_cast %26 : vector<18x24x1xi1> to vector<18x24x1xi1>
    %29 = vector.broadcast %28 : vector<18x24x1xi1> to vector<18x24x8xi1>
    %30 = vector.broadcast %cst_10 : f32 to vector<18x24x8xf32>
    %31 = arith.select %29, %27, %30 : vector<18x24x8xi1>, vector<18x24x8xf32>
    %32 = vector.shape_cast %31 : vector<18x24x8xf32> to vector<432x8xf32>
    %cst_11 = arith.constant 0.000000e+00 : f32
    %33 = vector.broadcast %cst_11 : f32 to vector<8x8xf32>
    %c0_12 = arith.constant 0 : index
    %c0_13 = arith.constant 0 : index
    %34 = vector.load %arg10[%c0_12, %c0_13] : memref<448x8xf32, #tpu.memory_space<vmem>>, vector<8x8xf32>
    tpu.vector_store %arg10[%c0_12, %c0_13], %33 {strides = array<i32>} : memref<448x8xf32, #tpu.memory_space<vmem>>, vector<8x8xf32>,
    %cst_14 = arith.constant 0.000000e+00 : f32
    %35 = vector.broadcast %cst_14 : f32 to vector<8x8xf32>
    %c440 = arith.constant 440 : index
    %c0_15 = arith.constant 0 : index
    %36 = vector.load %arg10[%c440, %c0_15] : memref<448x8xf32, #tpu.memory_space<vmem>>, vector<8x8xf32>
    tpu.vector_store %arg10[%c440, %c0_15], %35 {strides = array<i32>} : memref<448x8xf32, #tpu.memory_space<vmem>>, vector<8x8xf32>,
    %c8 = arith.constant 8 : index
    %c0_16 = arith.constant 0 : index
    %37 = vector.load %arg10[%c8, %c0_16] : memref<448x8xf32, #tpu.memory_space<vmem>>, vector<432x8xf32>
    tpu.vector_store %arg10[%c8, %c0_16], %32 {strides = array<i32>} : memref<448x8xf32, #tpu.memory_space<vmem>>, vector<432x8xf32>,
    %c7 = arith.constant 7 : index
    %c0_17 = arith.constant 0 : index
    %38 = vector.load %arg10[%c7, %c0_17] : memref<448x8xf32, #tpu.memory_space<vmem>>, vector<384x8xf32>
    %c8_18 = arith.constant 8 : index
    %c0_19 = arith.constant 0 : index
    %39 = vector.load %arg10[%c8_18, %c0_19] : memref<448x8xf32, #tpu.memory_space<vmem>>, vector<384x8xf32>
    %c9 = arith.constant 9 : index
    %c0_20 = arith.constant 0 : index
    %40 = vector.load %arg10[%c9, %c0_20] : memref<448x8xf32, #tpu.memory_space<vmem>>, vector<384x8xf32>
    %c31 = arith.constant 31 : index
    %c0_21 = arith.constant 0 : index
    %41 = vector.load %arg10[%c31, %c0_21] : memref<448x8xf32, #tpu.memory_space<vmem>>, vector<384x8xf32>
    %c32 = arith.constant 32 : index
    %c0_22 = arith.constant 0 : index
    %42 = vector.load %arg10[%c32, %c0_22] : memref<448x8xf32, #tpu.memory_space<vmem>>, vector<384x8xf32>
    %c33 = arith.constant 33 : index
    %c0_23 = arith.constant 0 : index
    %43 = vector.load %arg10[%c33, %c0_23] : memref<448x8xf32, #tpu.memory_space<vmem>>, vector<384x8xf32>
    %c55 = arith.constant 55 : index
    %c0_24 = arith.constant 0 : index
    %44 = vector.load %arg10[%c55, %c0_24] : memref<448x8xf32, #tpu.memory_space<vmem>>, vector<384x8xf32>
    %c56 = arith.constant 56 : index
    %c0_25 = arith.constant 0 : index
    %45 = vector.load %arg10[%c56, %c0_25] : memref<448x8xf32, #tpu.memory_space<vmem>>, vector<384x8xf32>
    %c57 = arith.constant 57 : index
    %c0_26 = arith.constant 0 : index
    %46 = vector.load %arg10[%c57, %c0_26] : memref<448x8xf32, #tpu.memory_space<vmem>>, vector<384x8xf32>
    %47 = tpu.concatenate %38, %39, %40, %41, %42, %43, %44, %45, %46 in 1 : vector<384x8xf32>, vector<384x8xf32>, vector<384x8xf32>, vector<384x8xf32>, vector<384x8xf32>, vector<384x8xf32>, vector<384x8xf32>, vector<384x8xf32>, vector<384x8xf32> -> vector<384x72xf32>
    %c0_27 = arith.constant 0 : index
    %c0_28 = arith.constant 0 : index
    %48 = vector.load %arg5[%c0_27, %c0_28] : memref<72x8xf32, #tpu.memory_space<vmem>>, vector<72x8xf32>
    %cst_29 = arith.constant dense<0.000000e+00> : vector<384x8xf32>
    %49 = tpu.matmul %47, %48, %cst_29 {dimension_numbers = #tpu.dot_dimension_numbers<[1], [0], [0], [1], [0, 0, 1, 1], [], []>} : vector<384x72xf32>, vector<72x8xf32>, vector<384x8xf32> -> vector<384x8xf32>
    %c0_30 = arith.constant 0 : index
    %c0_31 = arith.constant 0 : index
    %50 = vector.load %arg6[%c0_30, %c0_31] : memref<1x8xf32, #tpu.memory_space<vmem>>, vector<1x8xf32>
    %51 = vector.broadcast %50 : vector<1x8xf32> to vector<384x8xf32>
    %52 = arith.addf %49, %51 : vector<384x8xf32>
    %cst_32 = arith.constant 0.000000e+00 : f32
    %53 = vector.broadcast %cst_32 : f32 to vector<384x8xf32>
    %54 = arith.maximumf %52, %53 : vector<384x8xf32>
    %c0_33 = arith.constant 0 : index
    %c0_34 = arith.constant 0 : index
    %55 = vector.load %arg7[%c0_33, %c0_34] : memref<8x32xf32, #tpu.memory_space<vmem>>, vector<8x32xf32>
    %cst_35 = arith.constant dense<0.000000e+00> : vector<384x32xf32>
    %56 = tpu.matmul %54, %55, %cst_35 {dimension_numbers = #tpu.dot_dimension_numbers<[1], [0], [0], [1], [0, 0, 1, 1], [], []>} : vector<384x8xf32>, vector<8x32xf32>, vector<384x32xf32> -> vector<384x32xf32>
    %c24_i32 = arith.constant 24 : i32
    %57 = arith.addi %1, %c24_i32 : i32
    %c0_36 = arith.constant 0 : index
    %58 = arith.index_cast %57 : i32 to index
    %c0_37 = arith.constant 0 : index
    %59 = vector.load %arg2[%c0_36, %58, %c0_37] : memref<1x432x32xf32, #tpu.memory_space<vmem>>, vector<1x384x32xf32>
    %60 = vector.shape_cast %59 : vector<1x384x32xf32> to vector<384x32xf32>
    %c0_38 = arith.constant 0 : index
    %c0_39 = arith.constant 0 : index
    %61 = vector.load %arg8[%c0_38, %c0_39] : memref<1x32xf32, #tpu.memory_space<vmem>>, vector<1x32xf32>
    %62 = vector.broadcast %61 : vector<1x32xf32> to vector<384x32xf32>
    %63 = arith.addf %56, %62 : vector<384x32xf32>
    %64 = arith.addf %63, %60 : vector<384x32xf32>
    %cst_40 = arith.constant 0.000000e+00 : f32
    %65 = vector.broadcast %cst_40 : f32 to vector<384x32xf32>
    %66 = arith.maximumf %64, %65 : vector<384x32xf32>
    %c0_41 = arith.constant 0 : index
    %c0_42 = arith.constant 0 : index
    %c0_43 = arith.constant 0 : index
    %67 = vector.load %arg9[%c0_41, %c0_42, %c0_43] : memref<1x384x32xf32, #tpu.memory_space<vmem>>, vector<1x384x32xf32>
    %68 = vector.shape_cast %67 : vector<1x384x32xf32> to vector<384x32xf32>
    %69 = vector.shape_cast %66 : vector<384x32xf32> to vector<1x384x32xf32>
    tpu.vector_store %arg9[%c0_41, %c0_42, %c0_43], %69 {strides = array<i32>} : memref<1x384x32xf32, #tpu.memory_space<vmem>>, vector<1x384x32xf32>,
    return
  }
  func.func @transform_0(%arg0: i32, %arg1: i32) -> (i32, i32, i32) {
    %c0_i32 = arith.constant 0 : i32
    %c0_i32_0 = arith.constant 0 : i32
    %c0_i32_1 = arith.constant 0 : i32
    return %arg0, %c0_i32, %c0_i32_0 : i32, i32, i32
  }
  func.func @transform_1(%arg0: i32, %arg1: i32) -> (i32, i32) {
    %c0_i32 = arith.constant 0 : i32
    %c0_i32_0 = arith.constant 0 : i32
    %c0_i32_1 = arith.constant 0 : i32
    return %c0_i32, %c0_i32_0 : i32, i32
  }
  func.func @transform_2(%arg0: i32, %arg1: i32) -> (i32, i32) {
    %c0_i32 = arith.constant 0 : i32
    %c0_i32_0 = arith.constant 0 : i32
    %c0_i32_1 = arith.constant 0 : i32
    return %c0_i32, %c0_i32_0 : i32, i32
  }
  func.func @transform_3(%arg0: i32, %arg1: i32) -> (i32, i32) {
    %c0_i32 = arith.constant 0 : i32
    %c0_i32_0 = arith.constant 0 : i32
    %c0_i32_1 = arith.constant 0 : i32
    return %c0_i32, %c0_i32_0 : i32, i32
  }
  func.func @transform_4(%arg0: i32, %arg1: i32) -> (i32, i32) {
    %c0_i32 = arith.constant 0 : i32
    %c0_i32_0 = arith.constant 0 : i32
    %c0_i32_1 = arith.constant 0 : i32
    return %c0_i32, %c0_i32_0 : i32, i32
  }
  func.func @transform_5(%arg0: i32, %arg1: i32) -> (i32, i32) {
    %c0_i32 = arith.constant 0 : i32
    %c0_i32_0 = arith.constant 0 : i32
    %c0_i32_1 = arith.constant 0 : i32
    return %c0_i32, %c0_i32_0 : i32, i32
  }
  func.func @transform_6(%arg0: i32, %arg1: i32) -> (i32, i32) {
    %c0_i32 = arith.constant 0 : i32
    %c0_i32_0 = arith.constant 0 : i32
    %c0_i32_1 = arith.constant 0 : i32
    return %c0_i32, %c0_i32_0 : i32, i32
  }
  func.func @transform_7(%arg0: i32, %arg1: i32) -> (i32, i32, i32) {
    %c0_i32 = arith.constant 0 : i32
    %c0_i32_0 = arith.constant 0 : i32
    return %arg0, %arg1, %c0_i32 : i32, i32, i32
  }
}

</mosaic_0001>

<bundles_post_ra>
// kernel: bottleneck_forward.1
= control target key start
LH: loop header
LB: loop body
LE: loop exit
PB: predicated region body
PF: predicated region fallthrough
CT: control target
= control target key end

     0   :  { %s4394_s24 = smov 0   ;;  %s4396_s25 = smov 0   ;;  %s7017_s0 = inlined_call_operand.vmem [shape: f32[2,432,32], index: 0, kind: input, shape index: {}]   ;;  %s7018_s1 = inlined_call_operand.vmem [shape: f32[32,8], index: 1, kind: input, shape index: {}]   ;;  %s7019_s2 = inlined_call_operand.vmem [shape: f32[1,8], index: 2, kind: input, shape index: {}]   ;;  %s7020_s3 = inlined_call_operand.vmem [shape: f32[72,8], index: 3, kind: input, shape index: {}]   ;;  %s7021_s4 = inlined_call_operand.vmem [shape: f32[1,8], index: 4, kind: input, shape index: {}]   ;;  %s7022_s5 = inlined_call_operand.vmem [shape: f32[8,32], index: 5, kind: input, shape index: {}]   ;;  %s7023_s6 = inlined_call_operand.vmem [shape: f32[1,32], index: 6, kind: input, shape index: {}]   ;;  %s7024_s7 = inlined_call_operand.vmem [shape: f32[2,384,32], index: 7, kind: output, shape index: {}]  }
   0x1   :  { %s4398_s26 = smov 0  }
   0x2 LB: > { %s29_s27 = sadd.s32 1, %s4339_s25  ;;  %p3961_p0 = scmp.ge.s32.totalorder %s4343_s26, 1  ;;  %s4343_s26 = sphi %s4398_s26, %s17_s26   ;;  %s4339_s25 = sphi %s4396_s25, %s7422_s25   ;;  %s4335_s24 = sphi %s4394_s24, %s7421_s24  }
   0x3   : > { %p31_p1 = scmp.ge.s32.totalorder %s29_s27, 2  ;;  %p251_p2 = scmp.lt.s32.totalorder %s4343_s26, 3 }
   0x5   : > { %s7424_s27 = smov (%p31_p1, %s29_s27), 0  ;;  %p252_p3 = pnand %p3961_p0, %p251_p2 }
   0x7   : > { %255 = sbr.rel (%p252_p3) target bundleno = 1572 (0x624), region = 48 }
   0xc   : > { %v361_v0 = vld [vmem:[%s7018_s1 + $0x18] sm:$0xff]  ;;  %v360_v1 = vld [vmem:[%s7018_s1 + $0x10] sm:$0xff]  ;;  %p287_p4 = scmp.lt.s32.totalorder %s4335_s24, 1  ;;  %vm1080_vm0 = vcmask 64512   ;;  %v359_v2 = vld [vmem:[%s7018_s1 + $0x8] sm:$0xff]  ;;  %v4345_v3 = vmov 0.0  }
   0xd   : > { %541 = vmatpush.msra.mxu0 %v361_v0  ;;  %4164 = vmatpush.msra.mxu3 %v361_v0  ;;  %1088 = vst.msk [vmem:[#allocation2 + $0x30] sm:$0xff] %vm1080_vm0, %v4345_v3  ;;  %v358_v4 = vld [vmem:[%s7018_s1] sm:$0xff]  ;;  %vm366_vm1 = vcmask 261120   ;;  %s4346_s17 = smov 8   ;;  %s4347_s18 = smov 16   ;;  %vm2658_vm2 = vcmask 130048  }
   0xe   : > { %s7426_s24 = smov (!%p287_p4, %s4335_s24), 1  ;;  %1081 = vst.msk [vmem:[#allocation2] sm:$0xff] %vm1080_vm0, %v4345_v3  ;;  %v4567_v63 = vld [vmem:[%s7019_s2] ss:$0 sm:$0xff]  ;;  %s4348_s21 = smov 24   ;;  %vm2707_vm3 = vcmask 195584  }
   0xf   : > { %542 = vmatpush.msra.mxu0 %v360_v1  ;;  %4165 = vmatpush.msra.mxu3 %v360_v1  ;;  %s4178_s13 = smul.u32 432, %s7426_s24  ;;  %1082 = vst.msk [vmem:[#allocation2 + $0x1b8] sm:$0xff] %vm1080_vm0, %v4345_v3  ;;  %s4349_s22 = smov 32   ;;  %vm2804_vm4 = vcmask 326656   ;;  %vm2853_vm5 = vcmask 392192   ;;  %vm2902_vm6 = vcmask 457728  }
  0x10   : > { %1083 = vst.msk [vmem:[#allocation2 + $0x8] sm:$0xff] %vm1080_vm0, %v4345_v3  ;;  %s4350_s23 = smov 40   ;;  %s4351_s28 = smov 64   ;;  %vm2951_vm7 = vcmask 523264   ;;  %vm3013_vm8 = vcmask 588800  }
  0x11   : > { %543 = vmatpush.msra.mxu0 %v359_v2  ;;  %4166 = vmatpush.msra.mxu3 %v359_v2  ;;  %s4434_s16 = scalar_lea.vmem %s7017_s0, %s4178_s13  ;;  %1084 = vst.msk [vmem:[#allocation2 + $0x10] sm:$0xff] %vm1080_vm0, %v4345_v3  ;;  %s4352_s29 = smov 56  }
  0x12   : > { %v304_v5 = vld [vmem:[%s4434_s16] sm:$0xff]  ;;  %v342_v6 = vld [vmem:[%s4434_s16 + $0x130] sm:$0xff]  ;;  %1085 = vst.msk [vmem:[#allocation2 + $0x18] sm:$0xff] %vm1080_vm0, %v4345_v3  ;;  %v305_v8 = vld [vmem:[%s4434_s16 + $0x8] sm:$0xff]  ;;  %s4353_s30 = smov 48   ;;  %s4179_s20 = smul.u32 384, %s7426_s24 }
  0x13   : > { %544 = vmatpush.msra.mxu0 %v358_v4  ;;  %4167 = vmatpush.msra.mxu3 %v358_v4  ;;  %1091 = vst.msk [vmem:[#allocation2 + $0x48] sm:$0xff] %vm1080_vm0, %v4345_v3  ;;  %v343_v9 = vld [vmem:[%s4434_s16 + $0x138] sm:$0xff]  ;;  %v306_v11 = vld [vmem:[%s4434_s16 + $0x10] sm:$0xff]  ;;  %v344_v12 = vld [vmem:[%s4434_s16 + $0x140] sm:$0xff] }
  0x14   : > { %3964 = vmatmul.msk.f32.vlgmr.msra.gmra.mxu0 %vm366_vm1, %v304_v5  ;;  %4002 = vmatmul.msk.f32.vlgmr.msra.gmra.mxu3 %vm366_vm1, %v342_v6  ;;  %v4443_v7 = vld [vmem:[#allocation2 + $0x30] sm:$0xff]  ;;  %1094 = vst.msk [vmem:[#allocation2 + $0x60] sm:$0xff] %vm1080_vm0, %v4345_v3  ;;  %v307_v14 = vld [vmem:[%s4434_s16 + $0x18] sm:$0xff]  ;;  %v345_v15 = vld [vmem:[%s4434_s16 + $0x148] sm:$0xff]  ;;  %s6312_s8 = scalar_lea.vmem %s7024_s7, %s4179_s20 }
  0x15   : > { %1357 = vrot.lane.b32.xlu2 %v4443_v7, %s4346_s17  ;;  %1097 = vst.msk [vmem:[#allocation2 + $0x78] sm:$0xff] %vm1080_vm0, %v4345_v3  ;;  %v308_v17 = vld [vmem:[%s4434_s16 + $0x20] sm:$0xff]  ;;  %v346_v18 = vld [vmem:[%s4434_s16 + $0x150] sm:$0xff]  ;;  %v309_v20 = vld [vmem:[%s4434_s16 + $0x28] sm:$0xff] }
  0x16   : > { %1100 = vst.msk [vmem:[#allocation2 + $0x90] sm:$0xff] %vm1080_vm0, %v4345_v3  ;;  %v347_v21 = vld [vmem:[%s4434_s16 + $0x158] sm:$0xff]  ;;  %v310_v23 = vld [vmem:[%s4434_s16 + $0x30] sm:$0xff]  ;;  %v348_v24 = vld [vmem:[%s4434_s16 + $0x160] sm:$0xff] }
  0x17   : > { %1103 = vst.msk [vmem:[#allocation2 + $0xa8] sm:$0xff] %vm1080_vm0, %v4345_v3  ;;  %v311_v26 = vld [vmem:[%s4434_s16 + $0x38] sm:$0xff]  ;;  %v349_v27 = vld [vmem:[%s4434_s16 + $0x168] sm:$0xff]  ;;  %v312_v29 = vld [vmem:[%s4434_s16 + $0x40] sm:$0xff] }
  0x18   : > { %1106 = vst.msk [vmem:[#allocation2 + $0xc0] sm:$0xff] %vm1080_vm0, %v4345_v3  ;;  %v350_v30 = vld [vmem:[%s4434_s16 + $0x170] sm:$0xff]  ;;  %v313_v32 = vld [vmem:[%s4434_s16 + $0x48] sm:$0xff]  ;;  %v351_v34 = vld [vmem:[%s4434_s16 + $0x178] sm:$0xff] }
  0x19   : > { %1109 = vst.msk [vmem:[#allocation2 + $0xd8] sm:$0xff] %vm1080_vm0, %v4345_v3  ;;  %v314_v35 = vld [vmem:[%s4434_s16 + $0x50] sm:$0xff]  ;;  %v352_v37 = vld [vmem:[%s4434_s16 + $0x180] sm:$0xff]  ;;  %v315_v38 = vld [vmem:[%s4434_s16 + $0x58] sm:$0xff] }
  0x1a   : > { %1112 = vst.msk [vmem:[#allocation2 + $0xf0] sm:$0xff] %vm1080_vm0, %v4345_v3  ;;  %v4456_v10 = vld [vmem:[#allocation2 + $0x48] sm:$0xff]  ;;  %v316_v41 = vld [vmem:[%s4434_s16 + $0x60] sm:$0xff]  ;;  %v1186_v46 = vld [vmem:[#allocation2 + $0x10] sm:$0xff] }
  0x1b   : > { %1115 = vst.msk [vmem:[#allocation2 + $0x108] sm:$0xff] %vm1080_vm0, %v4345_v3  ;;  %v4472_v13 = vld [vmem:[#allocation2 + $0x60] sm:$0xff]  ;;  %v353_v40 = vld [vmem:[%s4434_s16 + $0x188] sm:$0xff]  ;;  %v318_v49 = vld [vmem:[%s4434_s16 + $0x70] sm:$0xff] }
  0x1c   : > { %3965 = vmatmul.msk.f32.gmra.mxu0 %vm366_vm1, %v305_v8  ;;  %4003 = vmatmul.msk.f32.gmra.mxu3 %vm366_vm1, %v343_v9  ;;  %1118 = vst.msk [vmem:[#allocation2 + $0x120] sm:$0xff] %vm1080_vm0, %v4345_v3  ;;  %v4482_v16 = vld [vmem:[#allocation2 + $0x78] sm:$0xff]  ;;  %v1185_v42 = vld [vmem:[#allocation2 + $0x8] sm:$0xff]  ;;  %v320_v57 = vld [vmem:[%s4434_s16 + $0x80] sm:$0xff] }
  0x1d   : > { %1121 = vst.msk [vmem:[#allocation2 + $0x138] sm:$0xff] %vm1080_vm0, %v4345_v3  ;;  %1363 = vrot.lane.b32.xlu2 %v4456_v10, %s4346_s17  ;;  %v4490_v19 = vld [vmem:[#allocation2 + $0x90] sm:$0xff]  ;;  %1347 = vrot.lane.b32.xlu0 %v1185_v42, %s4346_s17  ;;  %v317_v45 = vld [vmem:[%s4434_s16 + $0x68] sm:$0xff]  ;;  %v1187_v51 = vld [vmem:[#allocation2 + $0x18] sm:$0xff] }
  0x1e   : > { %1124 = vst.msk [vmem:[#allocation2 + $0x150] sm:$0xff] %vm1080_vm0, %v4345_v3  ;;  %v4498_v22 = vld [vmem:[#allocation2 + $0xa8] sm:$0xff]  ;;  %1351 = vrot.lane.b32.xlu1 %v1187_v51, %s4346_s17  ;;  %v319_v54 = vld [vmem:[%s4434_s16 + $0x78] sm:$0xff] }
  0x1f   : > { %1127 = vst.msk [vmem:[#allocation2 + $0x168] sm:$0xff] %vm1080_vm0, %v4345_v3  ;;  %v1208_v25 = vld [vmem:[#allocation2 + $0xc0] sm:$0xff]  ;;  %v1233_v52 = vld [vmem:[#allocation2 + $0x9] sm:$0xff]  ;;  %v1234_v55 = vld [vmem:[#allocation2 + $0x11] sm:$0xff] }
  0x20   : > { %1130 = vst.msk [vmem:[#allocation2 + $0x180] sm:$0xff] %vm1080_vm0, %v4345_v3  ;;  %v1211_v28 = vld [vmem:[#allocation2 + $0xd8] sm:$0xff]  ;;  %v321_v61 = vld [vmem:[%s4434_s16 + $0x88] sm:$0xff] }
  0x21   : > { %1133 = vst.msk [vmem:[#allocation2 + $0x198] sm:$0xff] %vm1080_vm0, %v4345_v3  ;;  %v1214_v31 = vld [vmem:[#allocation2 + $0xf0] sm:$0xff] }
  0x22   : > { %1134 = vst.msk [vmem:[#allocation2 + $0x1a0] sm:$0xff] %vm1080_vm0, %v4345_v3  ;;  %v1217_v33 = vld [vmem:[#allocation2 + $0x108] sm:$0xff] }
  0x23   : > { %1135 = vst.msk [vmem:[#allocation2 + $0x1a8] sm:$0xff] %vm1080_vm0, %v4345_v3  ;;  %v1220_v36 = vld [vmem:[#allocation2 + $0x120] sm:$0xff] }
  0x24   : > { %3966 = vmatmul.msk.f32.gmra.mxu0 %vm366_vm1, %v306_v11  ;;  %4004 = vmatmul.msk.f32.gmra.mxu3 %vm366_vm1, %v344_v12  ;;  %1136 = vst.msk [vmem:[#allocation2 + $0x1b0] sm:$0xff] %vm1080_vm0, %v4345_v3  ;;  %v1223_v39 = vld [vmem:[#allocation2 + $0x138] sm:$0xff]  ;;  %v322_v3 = vld [vmem:[%s4434_s16 + $0x90] sm:$0xff] }
  0x25   : > { %1369 = vrot.lane.b32.xlu2 %v4472_v13, %s4346_s17  ;;  %v1226_v43 = vld [vmem:[#allocation2 + $0x150] sm:$0xff]  ;;  %1349 = vrot.lane.b32.xlu0 %v1186_v46, %s4346_s17 }
  0x26   : > { %v1229_v47 = vld [vmem:[#allocation2 + $0x168] sm:$0xff]  ;;  %1541 = vrot.lane.b32.xlu1 %v1234_v55, %s4347_s18 }
  0x27   : > { %v1232_v50 = vld [vmem:[#allocation2 + $0x180] sm:$0xff] }
  0x2c   : > { %3967 = vmatmul.msk.f32.gmra.mxu0 %vm366_vm1, %v307_v14  ;;  %4005 = vmatmul.msk.f32.gmra.mxu3 %vm366_vm1, %v345_v15  ;;  %v323_v14 = vld [vmem:[%s4434_s16 + $0x98] sm:$0xff] }
  0x2d   : > { %1375 = vrot.lane.b32.xlu2 %v4482_v16, %s4346_s17  ;;  %1539 = vrot.lane.b32.xlu0 %v1233_v52, %s4347_s18 }
  0x34   : > { %3968 = vmatmul.msk.f32.gmra.mxu0 %vm366_vm1, %v308_v17  ;;  %4006 = vmatmul.msk.f32.gmra.mxu3 %vm366_vm1, %v346_v18 }
  0x35   : > { %1381 = vrot.lane.b32.xlu2 %v4490_v19, %s4346_s17 }
  0x3c   : > { %3969 = vmatmul.msk.f32.gmra.mxu0 %vm366_vm1, %v309_v20  ;;  %4007 = vmatmul.msk.f32.gmra.mxu3 %vm366_vm1, %v347_v21 }
  0x3d   : > { %1387 = vrot.lane.b32.xlu2 %v4498_v22, %s4346_s17 }
  0x44   : > { %3970 = vmatmul.msk.f32.gmra.mxu0 %vm366_vm1, %v310_v23  ;;  %4008 = vmatmul.msk.f32.gmra.mxu3 %vm366_vm1, %v348_v24 }
  0x45   : > { %1393 = vrot.lane.b32.xlu2 %v1208_v25, %s4346_s17  ;;  %v324_v25 = vld [vmem:[%s4434_s16 + $0xa0] sm:$0xff] }
  0x4c   : > { %3971 = vmatmul.msk.f32.gmra.mxu0 %vm366_vm1, %v311_v26  ;;  %4009 = vmatmul.msk.f32.gmra.mxu3 %vm366_vm1, %v349_v27 }
  0x4d   : > { %1399 = vrot.lane.b32.xlu2 %v1211_v28, %s4346_s17 }
  0x54   : > { %3972 = vmatmul.msk.f32.gmra.mxu0 %vm366_vm1, %v312_v29  ;;  %4010 = vmatmul.msk.f32.gmra.mxu3 %vm366_vm1, %v350_v30 }
  0x55   : > { %1405 = vrot.lane.b32.xlu2 %v1214_v31, %s4346_s17 }
  0x5c   : > { %3973 = vmatmul.msk.f32.gmra.mxu0 %vm366_vm1, %v313_v32  ;;  %4011 = vmatmul.msk.f32.gmra.mxu3 %vm366_vm1, %v351_v34 }
  0x5d   : > { %1411 = vrot.lane.b32.xlu2 %v1217_v33, %s4346_s17 }
  0x64   : > { %3974 = vmatmul.msk.f32.gmra.mxu0 %vm366_vm1, %v314_v35  ;;  %4012 = vmatmul.msk.f32.gmra.mxu3 %vm366_vm1, %v352_v37  ;;  %v325_v35 = vld [vmem:[%s4434_s16 + $0xa8] sm:$0xff] }
  0x65   : > { %1417 = vrot.lane.b32.xlu2 %v1220_v36, %s4346_s17 }
  0x6c   : > { %3975 = vmatmul.msk.f32.gmra.mxu0 %vm366_vm1, %v315_v38  ;;  %4013 = vmatmul.msk.f32.gmra.mxu3 %vm366_vm1, %v353_v40 }
  0x6d   : > { %1423 = vrot.lane.b32.xlu2 %v1223_v39, %s4346_s17 }
  0x6f   : > { %v4536_v44 = vpop.permute.xlu2 %1357 }
  0x70   : > { %7061 = vst [vmem:[#allocation3_spill] sm:$0xff] %v4536_v44 }
  0x74   : > { %3976 = vmatmul.msk.f32.gmra.mxu0 %vm366_vm1, %v316_v41 }
  0x75   : > { %1429 = vrot.lane.b32.xlu2 %v1226_v43, %s4346_s17 }
  0x77   : > { %v4543_v48 = vpop.permute.xlu2 %1363 }
  0x78   : > { %7062 = vst [vmem:[#allocation4_spill] sm:$0xff] %v4543_v48 }
  0x7c   : > { %3977 = vmatmul.msk.f32.gmra.mxu0 %vm366_vm1, %v317_v45  ;;  %v326_v45 = vld [vmem:[%s4434_s16 + $0xb0] sm:$0xff] }
  0x7d   : > { %1435 = vrot.lane.b32.xlu2 %v1229_v47, %s4346_s17 }
  0x7f   : > { %v4551_v53 = vpop.permute.xlu2 %1369 }
  0x80   : > { %7063 = vst [vmem:[#allocation5_spill] sm:$0xff] %v4551_v53 }
  0x84   : > { %3978 = vmatmul.msk.f32.gmra.mxu0 %vm366_vm1, %v318_v49 }
  0x85   : > { %1441 = vrot.lane.b32.xlu2 %v1232_v50, %s4346_s17 }
  0x87   : > { %v4557_v58 = vpop.permute.xlu2 %1375 }
  0x88   : > { %7064 = vst [vmem:[#allocation6_spill] sm:$0xff] %v4557_v58 }
  0x8c   : > { %3979 = vmatmul.msk.f32.gmra.mxu0 %vm366_vm1, %v319_v54 }
  0x8f   : > { %v4561_v62 = vpop.permute.xlu2 %1381 }
  0x90   : > { %7065 = vst [vmem:[#allocation7_spill] sm:$0xff] %v4561_v62 }
  0x91   : > { %v546_v56 = vpop.f32.mrf.mxu0 }
  0x94   : > { %3980 = vmatmul.msk.f32.gmra.mxu0 %vm366_vm1, %v320_v57 }
  0x97   : > { %v660_v59 = vpop.f32.mrf.mxu3  ;;  %v4573_v5 = vpop.permute.xlu2 %1387 }
  0x98   : > { %7066 = vst [vmem:[#allocation8_spill] sm:$0xff] %v4573_v5  ;;  %v327_v59 = vld [vmem:[%s4434_s16 + $0xb8] sm:$0xff] }
  0x99   : > { %v549_v60 = vpop.f32.mrf.mxu0 }
  0x9c   : > { %3981 = vmatmul.msk.f32.gmra.mxu0 %vm366_vm1, %v321_v61 }
  0x9f   : > { %v663_v0 = vpop.f32.mrf.mxu3  ;;  %v4583_v21 = vpop.permute.xlu2 %1393 }
  0xa0   : > { %v664_v1 = vadd.f32 %v4567_v63, %v663_v0  ;;  %7067 = vst [vmem:[#allocation9_spill] sm:$0xff] %v4583_v21 }
  0xa1   : > { %v552_v2 = vpop.f32.mrf.mxu0 }
  0xa2   : > { %v747_v4 = vmax.f32 %v664_v1, 0.0 }
  0xa4   : > { %1122 = vst.msk [vmem:[#allocation2 + $0x140] sm:$0xff] %vm1080_vm0, %v747_v4  ;;  %3982 = vmatmul.msk.f32.gmra.mxu0 %vm366_vm1, %v322_v3 }
  0xa7   : > { %v666_v6 = vpop.f32.mrf.mxu3  ;;  %v4593_v34 = vpop.permute.xlu2 %1399 }
  0xa8   : > { %v667_v8 = vadd.f32 %v4567_v63, %v666_v6  ;;  %7068 = vst [vmem:[#allocation10_spill] sm:$0xff] %v4593_v34  ;;  %v328_v6 = vld [vmem:[%s4434_s16 + $0xc0] sm:$0xff] }
  0xa9   : > { %v555_v9 = vpop.f32.mrf.mxu0 }
  0xaa   : > { %v748_v11 = vmax.f32 %v667_v8, 0.0  ;;  %v556_v12 = vadd.f32 %v4567_v63, %v555_v9 }
  0xab   : > { %v1271_v15 = vld [vmem:[#allocation2 + $0x139] sm:$0xff] }
  0xac   : > { %v1224_v17 = vld [vmem:[#allocation2 + $0x140] sm:$0xff]  ;;  %1123 = vst.msk [vmem:[#allocation2 + $0x148] sm:$0xff] %vm1080_vm0, %v748_v11  ;;  %v711_v18 = vmax.f32 %v556_v12, 0.0  ;;  %1615 = vrot.lane.b32.xlu2 %v1271_v15, %s4347_s18  ;;  %3983 = vmatmul.msk.f32.gmra.mxu0 %vm366_vm1, %v323_v14 }
  0xad   : > { %1425 = vrot.lane.b32.xlu0 %v1224_v17, %s4346_s17  ;;  %v1176_v29 = vld [vmem:[#allocation2 + $0x13f] sm:$0xff] }
  0xae   : > { %1086 = vst.msk [vmem:[#allocation2 + $0x20] sm:$0xff] %vm1080_vm0, %v711_v18 }
  0xaf   : > { %v669_v20 = vpop.f32.mrf.mxu3  ;;  %v4606_v50 = vpop.permute.xlu2 %1405 }
  0xb0   : > { %7069 = vst [vmem:[#allocation11_spill] sm:$0xff] %v4606_v50  ;;  %v329_v20 = vld [vmem:[%s4434_s16 + $0xc8] sm:$0xff] }
  0xb1   : > { %v558_v23 = vpop.f32.mrf.mxu0 }
  0xb2   : > { %v559_v24 = vadd.f32 %v4567_v63, %v558_v23 }
  0xb3   : > { %v1225_v26 = vld [vmem:[#allocation2 + $0x148] sm:$0xff] }
  0xb4   : > { %v1178_v27 = vld [vmem:[#allocation2 + $0x14f] sm:$0xff]  ;;  %v712_v28 = vmax.f32 %v559_v24, 0.0  ;;  %1427 = vrot.lane.b32.xlu1 %v1225_v26, %s4346_s17  ;;  %3984 = vmatmul.msk.f32.gmra.mxu0 %vm366_vm1, %v324_v25  ;;  %v1272_v38 = vld [vmem:[#allocation2 + $0x141] sm:$0xff] }
  0xb5   : > { %1807 = vrot.lane.b32.xlu2 %v1178_v27, %s4348_s21  ;;  %1803 = vrot.lane.b32.xlu0 %v1176_v29, %s4348_s21  ;;  %v1235_v33 = vld [vmem:[#allocation2 + $0x19] sm:$0xff]  ;;  %v1273_v37 = vld [vmem:[#allocation2 + $0x149] sm:$0xff] }
  0xb6   : > { %1087 = vst.msk [vmem:[#allocation2 + $0x28] sm:$0xff] %vm1080_vm0, %v712_v28  ;;  %v1140_v46 = vld [vmem:[#allocation2 + $0x1f] sm:$0xff]  ;;  %v1177_v49 = vld [vmem:[#allocation2 + $0x147] sm:$0xff] }
  0xb7   : > { %v672_v30 = vpop.f32.mrf.mxu3  ;;  %v1188_v56 = vld [vmem:[#allocation2 + $0x20] sm:$0xff]  ;;  %v4621_v61 = vpop.permute.xlu2 %1411 }
  0xb8   : > { %v673_v31 = vadd.f32 %v4567_v63, %v672_v30  ;;  %7070 = vst [vmem:[#allocation12_spill] sm:$0xff] %v4621_v61 }
  0xb9   : > { %v561_v32 = vpop.f32.mrf.mxu0 }
  0xba   : > { %v750_v36 = vmax.f32 %v673_v31, 0.0  ;;  %v330_v32 = vld [vmem:[%s4434_s16 + $0xd0] sm:$0xff] }
  0xbc   : > { %1619 = vrot.lane.b32.xlu1 %v1273_v37, %s4347_s18  ;;  %1125 = vst.msk [vmem:[#allocation2 + $0x158] sm:$0xff] %vm1080_vm0, %v750_v36  ;;  %3985 = vmatmul.msk.f32.gmra.mxu0 %vm366_vm1, %v325_v35 }
  0xbd   : > { %1543 = vrot.lane.b32.xlu2 %v1235_v33, %s4347_s18  ;;  %1617 = vrot.lane.b32.xlu0 %v1272_v38, %s4347_s18  ;;  %v4602_v42 = vld [vmem:[#allocation2 + $0x28] sm:$0xff] }
  0xbe   : > { %v1142_v55 = vld [vmem:[#allocation2 + $0x2f] sm:$0xff]  ;;  %v4628_v9 = vld [vmem:[#allocation2 + $0x21] sm:$0xff] }
  0xbf   : > { %v675_v39 = vpop.f32.mrf.mxu3  ;;  %v1237_v4 = vld [vmem:[#allocation2 + $0x29] sm:$0xff]  ;;  %v4634_v12 = vpop.permute.xlu2 %1417 }
  0xc0   : > { %v676_v40 = vadd.f32 %v4567_v63, %v675_v39  ;;  %7071 = vst [vmem:[#allocation13_spill] sm:$0xff] %v4634_v12  ;;  %v1141_v25 = vld [vmem:[#allocation2 + $0x27] sm:$0xff] }
  0xc1   : > { %v564_v41 = vpop.f32.mrf.mxu0 }
  0xc2   : > { %v565_v43 = vadd.f32 %v4567_v63, %v564_v41  ;;  %v751_v47 = vmax.f32 %v676_v40, 0.0  ;;  %v331_v41 = vld [vmem:[%s4434_s16 + $0xd8] sm:$0xff] }
  0xc3   : > { %v1274_v3 = vld [vmem:[#allocation2 + $0x151] sm:$0xff] }
  0xc4   : > { %v714_v51 = vmax.f32 %v565_v43, 0.0  ;;  %1805 = vrot.lane.b32.xlu1 %v1177_v49, %s4348_s21  ;;  %1126 = vst.msk [vmem:[#allocation2 + $0x160] sm:$0xff] %vm1080_vm0, %v751_v47  ;;  %3986 = vmatmul.msk.f32.gmra.mxu0 %vm366_vm1, %v326_v45  ;;  %v1227_v23 = vld [vmem:[#allocation2 + $0x158] sm:$0xff] }
  0xc5   : > { %1355 = vrot.lane.b32.xlu2 %v4602_v42, %s4346_s17  ;;  %1731 = vrot.lane.b32.xlu0 %v1140_v46, %s4348_s21  ;;  %v1179_v33 = vld [vmem:[#allocation2 + $0x157] sm:$0xff] }
  0xc6   : > { %1089 = vst.msk [vmem:[#allocation2 + $0x38] sm:$0xff] %vm1080_vm0, %v714_v51 }
  0xc7   : > { %v678_v52 = vpop.f32.mrf.mxu3  ;;  %v4645_v30 = vpop.permute.xlu2 %1423 }
  0xc8   : > { %7072 = vst [vmem:[#allocation14_spill] sm:$0xff] %v4645_v30 }
  0xc9   : > { %v567_v54 = vpop.f32.mrf.mxu0 }
  0xca   : > { %v568_v57 = vadd.f32 %v4567_v63, %v567_v54  ;;  %v332_v54 = vld [vmem:[%s4434_s16 + $0xe0] sm:$0xff] }
  0xcb   : > { %v1181_v17 = vld [vmem:[#allocation2 + $0x167] sm:$0xff] }
  0xcc   : > { %v715_v60 = vmax.f32 %v568_v57, 0.0  ;;  %1353 = vrot.lane.b32.xlu1 %v1188_v56, %s4346_s17  ;;  %3987 = vmatmul.msk.f32.gmra.mxu0 %vm366_vm1, %v327_v59  ;;  %v1228_v39 = vld [vmem:[#allocation2 + $0x160] sm:$0xff] }
  0xcd   : > { %1735 = vrot.lane.b32.xlu2 %v1142_v55, %s4348_s21  ;;  %1878 = vrot.lane.b32.xlu0 %v1188_v56, %s4349_s22  ;;  %v1238_v29 = vld [vmem:[#allocation2 + $0x31] sm:$0xff]  ;;  %v1276_v56 = vld [vmem:[#allocation2 + $0x161] sm:$0xff] }
  0xce   : > { %1090 = vst.msk [vmem:[#allocation2 + $0x40] sm:$0xff] %vm1080_vm0, %v715_v60  ;;  %v4670_v55 = vld [vmem:[#allocation2 + $0x38] sm:$0xff] }
  0xcf   : > { %v681_v0 = vpop.f32.mrf.mxu3  ;;  %v4659_v45 = vpop.permute.xlu2 %1429 }
  0xd0   : > { %v682_v1 = vadd.f32 %v4567_v63, %v681_v0  ;;  %7073 = vst [vmem:[#allocation15_spill] sm:$0xff] %v4659_v45 }
  0xd1   : > { %v570_v2 = vpop.f32.mrf.mxu0 }
  0xd2   : > { %v753_v8 = vmax.f32 %v682_v1, 0.0 }
  0xd4   : > { %1547 = vrot.lane.b32.xlu1 %v1237_v4, %s4347_s18  ;;  %1128 = vst.msk [vmem:[#allocation2 + $0x170] sm:$0xff] %vm1080_vm0, %v753_v8  ;;  %3988 = vmatmul.msk.f32.gmra.mxu0 %vm366_vm1, %v328_v6  ;;  %v4683_v4 = vld [vmem:[#allocation2 + $0x37] sm:$0xff]  ;;  %v1180_v6 = vld [vmem:[#allocation2 + $0x15f] sm:$0xff] }
  0xd5   : > { %1621 = vrot.lane.b32.xlu2 %v1274_v3, %s4347_s18  ;;  %1545 = vrot.lane.b32.xlu0 %v4628_v9, %s4347_s18  ;;  %v4655_v38 = vld [vmem:[#allocation2 + $0x47] sm:$0xff] }
  0xd6   : > { %v333_v3 = vld [vmem:[%s4434_s16 + $0xe8] sm:$0xff] }
  0xd7   : > { %v684_v11 = vpop.f32.mrf.mxu3  ;;  %v4672_v59 = vpop.permute.xlu2 %1435 }
  0xd8   : > { %v685_v14 = vadd.f32 %v4567_v63, %v684_v11  ;;  %7074 = vst [vmem:[#allocation16_spill] sm:$0xff] %v4672_v59 }
  0xd9   : > { %v573_v15 = vpop.f32.mrf.mxu0 }
  0xda   : > { %v574_v18 = vadd.f32 %v4567_v63, %v573_v15  ;;  %v754_v24 = vmax.f32 %v685_v14, 0.0  ;;  %v4693_v14 = vpop.permute.xlu0 %1347 }
  0xdb   : > { %v1277_v49 = vld [vmem:[#allocation2 + $0x169] sm:$0xff] }
  0xdc   : > { %v717_v26 = vmax.f32 %v574_v18, 0.0  ;;  %1733 = vrot.lane.b32.xlu1 %v1141_v25, %s4348_s21  ;;  %1129 = vst.msk [vmem:[#allocation2 + $0x178] sm:$0xff] %vm1080_vm0, %v754_v24  ;;  %3989 = vmatmul.msk.f32.gmra.mxu0 %vm366_vm1, %v329_v20  ;;  %v4697_v18 = vld [vmem:[#allocation2 + $0x40] sm:$0xff]  ;;  %v334_v20 = vld [vmem:[%s4434_s16 + $0xf0] sm:$0xff] }
  0xdd   : > { %1813 = vrot.lane.b32.xlu2 %v1181_v17, %s4348_s21  ;;  %1431 = vrot.lane.b32.xlu0 %v1227_v23, %s4346_s17  ;;  %v4704_v23 = vld [vmem:[#allocation2 + $0x39] sm:$0xff] }
  0xde   : > { %1092 = vst.msk [vmem:[#allocation2 + $0x50] sm:$0xff] %vm1080_vm0, %v717_v26 }
  0xdf   : > { %v687_v27 = vpop.f32.mrf.mxu3  ;;  %v4687_v11 = vpop.permute.xlu2 %1441 }
  0xe0   : > { %7075 = vst [vmem:[#allocation17_spill] sm:$0xff] %v4687_v11 }
  0xe1   : > { %v576_v28 = vpop.f32.mrf.mxu0 }
  0xe2   : > { %v577_v31 = vadd.f32 %v4567_v63, %v576_v28  ;;  %v335_v28 = vld [vmem:[%s4434_s16 + $0xf8] sm:$0xff] }
  0xe3   : > { %v1184_v1 = vld [vmem:[#allocation2 + $0x17f] sm:$0xff] }
  0xe4   : > { %v718_v35 = vmax.f32 %v577_v31, 0.0  ;;  %1880 = vrot.lane.b32.xlu1 %v4602_v42, %s4349_s22  ;;  %3990 = vmatmul.msk.f32.gmra.mxu0 %vm366_vm1, %v330_v32  ;;  %v1275_v42 = vld [vmem:[#allocation2 + $0x159] sm:$0xff]  ;;  %v4715_v31 = vpop.permute.xlu0 %1349  ;;  %v4717_v32 = vld [vmem:[#allocation2 + $0x41] sm:$0xff] }
  0xe5   : > { %1549 = vrot.lane.b32.xlu2 %v1238_v29, %s4347_s18  ;;  %1809 = vrot.lane.b32.xlu0 %v1179_v33, %s4348_s21  ;;  %v4695_v17 = vld [vmem:[#allocation2 + $0x49] sm:$0xff] }
  0xe6   : > { %1093 = vst.msk [vmem:[#allocation2 + $0x58] sm:$0xff] %vm1080_vm0, %v718_v35  ;;  %v1230_v29 = vld [vmem:[#allocation2 + $0x170] sm:$0xff] }
  0xe7   : > { %v690_v36 = vpop.f32.mrf.mxu3 }
  0xe8   : > { %v691_v40 = vadd.f32 %v4567_v63, %v690_v36 }
  0xe9   : > { %v579_v37 = vpop.f32.mrf.mxu0 }
  0xea   : > { %v756_v43 = vmax.f32 %v691_v40, 0.0  ;;  %v336_v40 = vld [vmem:[%s4434_s16 + $0x100] sm:$0xff] }
  0xec   : > { %1433 = vrot.lane.b32.xlu1 %v1228_v39, %s4346_s17  ;;  %3991 = vmatmul.msk.f32.gmra.mxu0 %vm366_vm1, %v331_v41  ;;  %1131 = vst.msk [vmem:[#allocation2 + $0x188] sm:$0xff] %vm1080_vm0, %v756_v43  ;;  %v1182_v41 = vld [vmem:[#allocation2 + $0x16f] sm:$0xff]  ;;  %v4730_v43 = vpop.permute.xlu1 %1351 }
  0xed   : > { %1741 = vrot.lane.b32.xlu2 %v4655_v38, %s4348_s21  ;;  %1623 = vrot.lane.b32.xlu0 %v1275_v42, %s4347_s18  ;;  %v4711_v26 = vld [vmem:[#allocation2 + $0x5f] sm:$0xff]  ;;  %7078 = vst [vmem:[#allocation20_spill] sm:$0xff] %v4730_v43 }
  0xee   : > { %v4732_v42 = vld [vmem:[#allocation2 + $0x3f] sm:$0xff] }
  0xef   : > { %v693_v46 = vpop.f32.mrf.mxu3  ;;  %v4220_v43 = vld [vmem:[#allocation2 + $0x120] sm:$0xff] }
  0xf0   : > { %v694_v51 = vadd.f32 %v4567_v63, %v693_v46 }
  0xf1   : > { %v582_v47 = vpop.f32.mrf.mxu0 }
  0xf2   : > { %v583_v52 = vadd.f32 %v4567_v63, %v582_v47  ;;  %v757_v57 = vmax.f32 %v694_v51, 0.0  ;;  %v4737_v47 = vpop.permute.xlu0 %1539 }
  0xf3   : > { %v1280_v37 = vld [vmem:[#allocation2 + $0x181] sm:$0xff] }
  0xf4   : > { %v720_v60 = vmax.f32 %v583_v52, 0.0  ;;  %1625 = vrot.lane.b32.xlu1 %v1276_v56, %s4347_s18  ;;  %3992 = vmatmul.msk.f32.gmra.mxu0 %vm366_vm1, %v332_v54  ;;  %1132 = vst.msk [vmem:[#allocation2 + $0x190] sm:$0xff] %vm1080_vm0, %v757_v57  ;;  %v1231_v54 = vld [vmem:[#allocation2 + $0x178] sm:$0xff]  ;;  %v337_v56 = vld [vmem:[%s4434_s16 + $0x108] sm:$0xff] }
  0xf5   : > { %1627 = vrot.lane.b32.xlu2 %v1277_v49, %s4347_s18  ;;  %1359 = vrot.lane.b32.xlu0 %v4670_v55, %s4346_s17  ;;  %v1278_v57 = vld [vmem:[#allocation2 + $0x171] sm:$0xff] }
  0xf6   : > { %1095 = vst.msk [vmem:[#allocation2 + $0x68] sm:$0xff] %vm1080_vm0, %v720_v60  ;;  %v4747_v60 = vpop.permute.xlu1 %1541 }
  0xf9   : > { %v585_v0 = vpop.f32.mrf.mxu0 }
  0xfa   : > { %v586_v2 = vadd.f32 %v4567_v63, %v585_v0 }
  0xfb   : > { %v1283_v52 = vld [vmem:[#allocation2 + $0x197] sm:$0xff]  ;;  %v1282_v45 = vld [vmem:[#allocation2 + $0x18f] sm:$0xff] }
  0xfc   : > { %v721_v8 = vmax.f32 %v586_v2, 0.0  ;;  %1811 = vrot.lane.b32.xlu1 %v1180_v6, %s4348_s21  ;;  %3993 = vmatmul.msk.f32.gmra.mxu0 %vm366_vm1, %v333_v3 }
  0xfd   : > { %1819 = vrot.lane.b32.xlu2 %v1184_v1, %s4348_s21  ;;  %1737 = vrot.lane.b32.xlu0 %v4683_v4, %s4348_s21  ;;  %v4755_v3 = vld [vmem:[#allocation2 + $0x61] sm:$0xff] }
  0xfe   : > { %1096 = vst.msk [vmem:[#allocation2 + $0x70] sm:$0xff] %vm1080_vm0, %v721_v8  ;;  %v338_v8 = vld [vmem:[%s4434_s16 + $0x110] sm:$0xff]  ;;  %v4830_v12 = vld [vmem:[#allocation2 + $0x68] sm:$0xff] }
 0x101   : > { %v588_v15 = vpop.f32.mrf.mxu0 }
 0x102   : > { %v4759_v15 = vld [vmem:[#allocation2 + $0x50] sm:$0xff] }
 0x104   : > { %1361 = vrot.lane.b32.xlu1 %v4697_v18, %s4346_s17  ;;  %3994 = vmatmul.msk.f32.gmra.mxu0 %vm366_vm1, %v334_v20  ;;  %v1279_v20 = vld [vmem:[#allocation2 + $0x179] sm:$0xff] }
 0x105   : > { %1555 = vrot.lane.b32.xlu2 %v4695_v17, %s4347_s18  ;;  %1551 = vrot.lane.b32.xlu0 %v4704_v23, %s4347_s18  ;;  %v4886_v30 = vld [vmem:[#allocation2 + $0x71] sm:$0xff] }
 0x106   : > { %v4709_v24 = vpop.permute.xlu2 %1615  ;;  %v4903_v34 = vld [vmem:[#allocation2 + $0x6f] sm:$0xff] }
 0x107   : > { %7076 = vst [vmem:[#allocation18_spill] sm:$0xff] %v4709_v24 }
 0x109   : > { %v591_v25 = vpop.f32.mrf.mxu0 }
 0x10a   : > { %v592_v27 = vadd.f32 %v4567_v63, %v591_v25 }
 0x10c   : > { %v723_v33 = vmax.f32 %v592_v27, 0.0  ;;  %1553 = vrot.lane.b32.xlu1 %v4717_v32, %s4347_s18  ;;  %3995 = vmatmul.msk.f32.gmra.mxu0 %vm366_vm1, %v335_v28 }
 0x10d   : > { %1747 = vrot.lane.b32.xlu2 %v4711_v26, %s4348_s21  ;;  %1437 = vrot.lane.b32.xlu0 %v1230_v29, %s4346_s17 }
 0x10e   : > { %1098 = vst.msk [vmem:[#allocation2 + $0x80] sm:$0xff] %vm1080_vm0, %v723_v33  ;;  %v4774_v33 = vld [vmem:[#allocation2 + $0x77] sm:$0xff] }
 0x10f   : > { %v4726_v35 = vpop.permute.xlu2 %1807 }
 0x110   : > { %7077 = vst [vmem:[#allocation19_spill] sm:$0xff] %v4726_v35 }
 0x111   : > { %v594_v36 = vpop.f32.mrf.mxu0 }
 0x112   : > { %v595_v39 = vadd.f32 %v4567_v63, %v594_v36 }
 0x114   : > { %v724_v46 = vmax.f32 %v595_v39, 0.0  ;;  %1739 = vrot.lane.b32.xlu1 %v4732_v42, %s4348_s21  ;;  %3996 = vmatmul.msk.f32.gmra.mxu0 %vm366_vm1, %v336_v40  ;;  %v4777_v39 = vld [vmem:[#allocation2 + $0x4f] sm:$0xff] }
 0x115   : > { %1633 = vrot.lane.b32.xlu2 %v1280_v37, %s4347_s18  ;;  %1815 = vrot.lane.b32.xlu0 %v1182_v41, %s4348_s21  ;;  %v339_v37 = vld [vmem:[%s4434_s16 + $0x118] sm:$0xff] }
 0x116   : > { %1099 = vst.msk [vmem:[#allocation2 + $0x88] sm:$0xff] %vm1080_vm0, %v724_v46  ;;  %v1183_v41 = vld [vmem:[#allocation2 + $0x177] sm:$0xff]  ;;  %v4919_v21 = vld [vmem:[#allocation2 + $0x7f] sm:$0xff] }
 0x117   : > { %v4742_v49 = vpop.permute.xlu2 %1543 }
 0x118   : > { %7079 = vst [vmem:[#allocation21_spill] sm:$0xff] %v4742_v49 }
 0x119   : > { %v597_v51 = vpop.f32.mrf.mxu0 }
 0x11c   : > { %1439 = vrot.lane.b32.xlu1 %v1231_v54, %s4346_s17  ;;  %3997 = vmatmul.msk.f32.gmra.mxu0 %vm366_vm1, %v337_v56  ;;  %v4793_v56 = vld [vmem:[#allocation2 + $0x58] sm:$0xff] }
 0x11d   : > { %1825 = vrot.lane.b32.xlu2 %v1283_v52, %s4348_s21  ;;  %1629 = vrot.lane.b32.xlu0 %v1278_v57, %s4347_s18  ;;  %v4833_v61 = vld [vmem:[#allocation2 + $0x8f] sm:$0xff] }
 0x11e   : > { %v4935_v53 = vld [vmem:[#allocation2 + $0x88] sm:$0xff] }
 0x11f   : > { %v4751_v0 = vpop.permute.xlu0 %1425  ;;  %v4753_v1 = vpop.permute.xlu2 %1355 }
 0x120   : > { %7080 = vst [vmem:[#allocation22_spill] sm:$0xff] %v4751_v0 }
 0x121   : > { %7081 = vst [vmem:[#allocation23_spill] sm:$0xff] %v4753_v1  ;;  %v600_v2 = vpop.f32.mrf.mxu0 }
 0x122   : > { %v601_v6 = vadd.f32 %v4567_v63, %v600_v2  ;;  %v340_v2 = vld [vmem:[%s4434_s16 + $0x120] sm:$0xff] }
 0x124   : > { %v726_v25 = vmax.f32 %v601_v6, 0.0  ;;  %1631 = vrot.lane.b32.xlu1 %v1279_v20, %s4347_s18  ;;  %3998 = vmatmul.msk.f32.gmra.mxu0 %vm366_vm1, %v338_v8  ;;  %v4800_v6 = vld [vmem:[#allocation2 + $0x51] sm:$0xff] }
 0x125   : > { %1561 = vrot.lane.b32.xlu2 %v4755_v3, %s4347_s18  ;;  %1365 = vrot.lane.b32.xlu0 %v4759_v15, %s4346_s17 }
 0x126   : > { %1101 = vst.msk [vmem:[#allocation2 + $0x98] sm:$0xff] %vm1080_vm0, %v726_v25  ;;  %v4768_v27 = vpop.permute.xlu1 %1427 }
 0x127   : > { %7082 = vst [vmem:[#allocation24_spill] sm:$0xff] %v4768_v27  ;;  %v4770_v28 = vpop.permute.xlu2 %1735  ;;  %v4772_v29 = vpop.permute.xlu0 %1803 }
 0x128   : > { %7083 = vst [vmem:[#allocation25_spill] sm:$0xff] %v4770_v28 }
 0x129   : > { %7084 = vst [vmem:[#allocation26_spill] sm:$0xff] %v4772_v29  ;;  %v603_v36 = vpop.f32.mrf.mxu0 }
 0x12a   : > { %v604_v40 = vadd.f32 %v4567_v63, %v603_v36  ;;  %v4811_v36 = vld [vmem:[#allocation2 + $0x79] sm:$0xff] }
 0x12c   : > { %1817 = vrot.lane.b32.xlu1 %v1183_v41, %s4348_s21  ;;  %v727_v46 = vmax.f32 %v604_v40, 0.0  ;;  %3999 = vmatmul.msk.f32.gmra.mxu0 %vm366_vm1, %v339_v37  ;;  %v1281_v40 = vld [vmem:[#allocation2 + $0x187] sm:$0xff] }
 0x12d   : > { %1753 = vrot.lane.b32.xlu2 %v4774_v33, %s4348_s21  ;;  %1743 = vrot.lane.b32.xlu0 %v4777_v39, %s4348_s21  ;;  %v4986_v44 = vld [vmem:[#allocation2 + $0x97] sm:$0xff] }
 0x12e   : > { %v4786_v51 = vpop.permute.xlu1 %1619  ;;  %1102 = vst.msk [vmem:[#allocation2 + $0xa0] sm:$0xff] %vm1080_vm0, %v727_v46  ;;  %v4815_v46 = vld [vmem:[#allocation2 + $0x59] sm:$0xff] }
 0x12f   : > { %7085 = vst [vmem:[#allocation27_spill] sm:$0xff] %v4786_v51  ;;  %v4788_v52 = vpop.permute.xlu2 %1621  ;;  %v4791_v54 = vpop.permute.xlu0 %1617 }
 0x130   : > { %7086 = vst [vmem:[#allocation28_spill] sm:$0xff] %v4788_v52  ;;  %v4850_v52 = vld [vmem:[#allocation2 + $0x67] sm:$0xff] }
 0x131   : > { %7087 = vst [vmem:[#allocation29_spill] sm:$0xff] %v4791_v54  ;;  %v606_v57 = vpop.f32.mrf.mxu0 }
 0x134   : > { %1367 = vrot.lane.b32.xlu1 %v4793_v56, %s4346_s17  ;;  %4000 = vmatmul.msk.f32.gmra.mxu0 %vm366_vm1, %v340_v2 }
 0x135   : > { %1882 = vrot.lane.b32.xlu2 %v4443_v7, %s4349_s22  ;;  %1557 = vrot.lane.b32.xlu0 %v4800_v6, %s4347_s18  ;;  %v341_v7 = vld [vmem:[%s4434_s16 + $0x128] sm:$0xff] }
 0x136   : > { %v4805_v8 = vpop.permute.xlu1 %1805  ;;  %v4884_v24 = vld [vmem:[#allocation2 + $0xa7] sm:$0xff] }
 0x137   : > { %7088 = vst [vmem:[#allocation30_spill] sm:$0xff] %v4805_v8  ;;  %v4807_v20 = vpop.permute.xlu2 %1813  ;;  %v4809_v25 = vpop.permute.xlu0 %1731  ;;  %v4901_v8 = vld [vmem:[#allocation2 + $0x80] sm:$0xff] }
 0x138   : > { %7089 = vst [vmem:[#allocation31_spill] sm:$0xff] %v4807_v20 }
 0x139   : > { %v609_v37 = vpop.f32.mrf.mxu0 }
 0x13a   : > { %v610_v41 = vadd.f32 %v4567_v63, %v609_v37 }
 0x13c   : > { %1559 = vrot.lane.b32.xlu1 %v4815_v46, %s4347_s18  ;;  %v729_v57 = vmax.f32 %v610_v41, 0.0  ;;  %4001 = vmatmul.msk.f32.gmra.mxu0 %vm366_vm1, %v341_v7  ;;  %v4835_v41 = vld [vmem:[#allocation2 + $0x57] sm:$0xff] }
 0x13d   : > { %1567 = vrot.lane.b32.xlu2 %v4811_v36, %s4347_s18  ;;  %1821 = vrot.lane.b32.xlu0 %v1281_v40, %s4348_s21 }
 0x13e   : > { %v4825_v11 = vpop.permute.xlu1 %1353  ;;  %1104 = vst.msk [vmem:[#allocation2 + $0xb0] sm:$0xff] %vm1080_vm0, %v729_v57 }
 0x13f   : > { %v4823_v2 = vpop.permute.xlu2 %1549  ;;  %7091 = vst [vmem:[#allocation33_spill] sm:$0xff] %v4825_v11  ;;  %v4828_v37 = vpop.permute.xlu0 %1878 }
 0x140   : > { %7090 = vst [vmem:[#allocation32_spill] sm:$0xff] %v4823_v2  ;;  %v4972_v2 = vld [vmem:[#allocation2 + $0x87] sm:$0xff] }
 0x141   : > { %v612_v29 = vpop.f32.mrf.mxu0 }
 0x142   : > { %v613_v59 = vadd.f32 %v4567_v63, %v612_v29 }
 0x144   : > { %1745 = vrot.lane.b32.xlu1 %v4835_v41, %s4348_s21  ;;  %v730_v7 = vmax.f32 %v613_v59, 0.0 }
 0x145   : > { %1759 = vrot.lane.b32.xlu2 %v4833_v61, %s4348_s21  ;;  %1371 = vrot.lane.b32.xlu0 %v4830_v12, %s4346_s17 }
 0x146   : > { %v4845_v57 = vpop.permute.xlu1 %1547  ;;  %1105 = vst.msk [vmem:[#allocation2 + $0xb8] sm:$0xff] %vm1080_vm0, %v730_v7  ;;  %v4863_v7 = vld [vmem:[#allocation2 + $0x91] sm:$0xff] }
 0x147   : > { %v4843_v40 = vpop.permute.xlu2 %1741  ;;  %7093 = vst [vmem:[#allocation35_spill] sm:$0xff] %v4845_v57  ;;  %v4848_v29 = vpop.permute.xlu0 %1545 }
 0x148   : > { %7092 = vst [vmem:[#allocation34_spill] sm:$0xff] %v4843_v40 }
 0x149   : > { %7094 = vst [vmem:[#allocation36_spill] sm:$0xff] %v4848_v29  ;;  %v615_v20 = vpop.f32.mrf.mxu0  ;;  %v5035_v29 = vld [vmem:[#allocation2 + $0xb0] sm:$0xff] }
 0x14a   : > { %v4865_v20 = vld [vmem:[#allocation2 + $0x70] sm:$0xff] }
 0x14c   : > { %1823 = vrot.lane.b32.xlu1 %v1282_v45, %s4348_s21 }
 0x14d   : > { %1888 = vrot.lane.b32.xlu2 %v4456_v10, %s4349_s22  ;;  %1749 = vrot.lane.b32.xlu0 %v4850_v52, %s4348_s21  ;;  %v4872_v10 = vld [vmem:[#allocation2 + $0x69] sm:$0xff] }
 0x14e   : > { %v4859_v51 = vpop.permute.xlu1 %1733 }
 0x14f   : > { %v4857_v59 = vpop.permute.xlu2 %1627  ;;  %v4861_v27 = vpop.permute.xlu0 %1431 }
 0x150   : > { %7095 = vst [vmem:[#allocation37_spill] sm:$0xff] %v4857_v59 }
 0x151   : > { %7096 = vst [vmem:[#allocation38_spill] sm:$0xff] %v4861_v27  ;;  %v618_v54 = vpop.f32.mrf.mxu0 }
 0x152   : > { %v619_v0 = vadd.f32 %v4567_v63, %v618_v54 }
 0x154   : > { %1373 = vrot.lane.b32.xlu1 %v4865_v20, %s4346_s17  ;;  %v732_v45 = vmax.f32 %v619_v0, 0.0 }
 0x155   : > { %1573 = vrot.lane.b32.xlu2 %v4863_v7, %s4347_s18  ;;  %1563 = vrot.lane.b32.xlu0 %v4872_v10, %s4347_s18 }
 0x156   : > { %v4878_v27 = vpop.permute.xlu1 %1880  ;;  %1107 = vst.msk [vmem:[#allocation2 + $0xc8] sm:$0xff] %vm1080_vm0, %v732_v45 }
 0x157   : > { %v4876_v59 = vpop.permute.xlu2 %1819  ;;  %v4881_v50 = vpop.permute.xlu0 %1809 }
 0x158   : > { %7097 = vst [vmem:[#allocation39_spill] sm:$0xff] %v4876_v59 }
 0x159   : > { %7098 = vst [vmem:[#allocation40_spill] sm:$0xff] %v4881_v50  ;;  %v621_v54 = vpop.f32.mrf.mxu0 }
 0x15a   : > { %v622_v35 = vadd.f32 %v4567_v63, %v621_v54 }
 0x15c   : > { %1565 = vrot.lane.b32.xlu1 %v4886_v30, %s4347_s18  ;;  %v733_v0 = vmax.f32 %v622_v35, 0.0 }
 0x15d   : > { %1765 = vrot.lane.b32.xlu2 %v4884_v24, %s4348_s21  ;;  %1884 = vrot.lane.b32.xlu0 %v4670_v55, %s4349_s22 }
 0x15e   : > { %v4896_v59 = vpop.permute.xlu1 %1433  ;;  %1108 = vst.msk [vmem:[#allocation2 + $0xd0] sm:$0xff] %vm1080_vm0, %v733_v0 }
 0x15f   : > { %v4894_v45 = vpop.permute.xlu2 %1555  ;;  %7100 = vst [vmem:[#allocation42_spill] sm:$0xff] %v4896_v59  ;;  %v4899_v54 = vpop.permute.xlu0 %1623 }
 0x160   : > { %7099 = vst [vmem:[#allocation41_spill] sm:$0xff] %v4894_v45  ;;  %v4938_v45 = vld [vmem:[#allocation2 + $0xbf] sm:$0xff] }
 0x161   : > { %7101 = vst [vmem:[#allocation43_spill] sm:$0xff] %v4899_v54  ;;  %v624_v50 = vpop.f32.mrf.mxu0 }
 0x162   : > { %v4917_v50 = vld [vmem:[#allocation2 + $0xa9] sm:$0xff] }
 0x163   : > { %7105 = vst [vmem:[#allocation47_spill] sm:$0xff] %v4917_v50 }
 0x164   : > { %1751 = vrot.lane.b32.xlu1 %v4903_v34, %s4348_s21 }
 0x165   : > { %1894 = vrot.lane.b32.xlu2 %v4472_v13, %s4349_s22  ;;  %1377 = vrot.lane.b32.xlu0 %v4901_v8, %s4346_s17  ;;  %v5173_v49 = vld [vmem:[#allocation2 + $0xcf] sm:$0xff] }
 0x166   : > { %v4913_v59 = vpop.permute.xlu1 %1625  ;;  %7166 = vst [vmem:[#allocation108_spill] sm:$0xff] %v5173_v49 }
 0x167   : > { %v4911_v35 = vpop.permute.xlu2 %1747  ;;  %7103 = vst [vmem:[#allocation45_spill] sm:$0xff] %v4913_v59  ;;  %v4915_v0 = vpop.permute.xlu0 %1359 }
 0x168   : > { %7102 = vst [vmem:[#allocation44_spill] sm:$0xff] %v4911_v35 }
 0x169   : > { %7104 = vst [vmem:[#allocation46_spill] sm:$0xff] %v4915_v0  ;;  %v627_v54 = vpop.f32.mrf.mxu0  ;;  %v4955_v0 = vld [vmem:[#allocation2 + $0x89] sm:$0xff] }
 0x16a   : > { %v628_v5 = vadd.f32 %v4567_v63, %v627_v54 }
 0x16c   : > { %1886 = vrot.lane.b32.xlu1 %v4697_v18, %s4349_s22  ;;  %v735_v13 = vmax.f32 %v628_v5, 0.0  ;;  %v4944_v5 = vld [vmem:[#allocation2 + $0x81] sm:$0xff] }
 0x16d   : > { %1579 = vrot.lane.b32.xlu2 %v4917_v50, %s4347_s18  ;;  %1755 = vrot.lane.b32.xlu0 %v4919_v21, %s4348_s21  ;;  %v4989_v50 = vld [vmem:[#allocation2 + $0xd7] sm:$0xff] }
 0x16e   : > { %v4930_v62 = vpop.permute.xlu1 %1811  ;;  %1110 = vst.msk [vmem:[#allocation2 + $0xe0] sm:$0xff] %vm1080_vm0, %v735_v13 }
 0x16f   : > { %v4928_v59 = vpop.permute.xlu2 %1633  ;;  %7107 = vst [vmem:[#allocation49_spill] sm:$0xff] %v4930_v62  ;;  %v4933_v58 = vpop.permute.xlu0 %1737 }
 0x170   : > { %7106 = vst [vmem:[#allocation48_spill] sm:$0xff] %v4928_v59 }
 0x171   : > { %7108 = vst [vmem:[#allocation50_spill] sm:$0xff] %v4933_v58  ;;  %v630_v54 = vpop.f32.mrf.mxu0  ;;  %v5021_v58 = vld [vmem:[#allocation2 + $0xa1] sm:$0xff] }
 0x172   : > { %v631_v35 = vadd.f32 %v4567_v63, %v630_v54  ;;  %7125 = vst [vmem:[#allocation67_spill] sm:$0xff] %v5021_v58 }
 0x174   : > { %1379 = vrot.lane.b32.xlu1 %v4935_v53, %s4346_s17  ;;  %v736_v59 = vmax.f32 %v631_v35, 0.0 }
 0x175   : > { %1771 = vrot.lane.b32.xlu2 %v4938_v45, %s4348_s21  ;;  %1569 = vrot.lane.b32.xlu0 %v4944_v5, %s4347_s18 }
 0x176   : > { %v4950_v62 = vpop.permute.xlu1 %1361  ;;  %1111 = vst.msk [vmem:[#allocation2 + $0xe8] sm:$0xff] %vm1080_vm0, %v736_v59  ;;  %v1256_v59 = vld [vmem:[#allocation2 + $0xc1] sm:$0xff] }
 0x177   : > { %v4948_v13 = vpop.permute.xlu2 %1825  ;;  %7110 = vst [vmem:[#allocation52_spill] sm:$0xff] %v4950_v62  ;;  %v4953_v54 = vpop.permute.xlu0 %1551 }
 0x178   : > { %7109 = vst [vmem:[#allocation51_spill] sm:$0xff] %v4948_v13 }
 0x179   : > { %7111 = vst [vmem:[#allocation53_spill] sm:$0xff] %v4953_v54  ;;  %v633_v48 = vpop.f32.mrf.mxu0 }
 0x17a   : > { %v4969_v48 = vld [vmem:[#allocation2 + $0x98] sm:$0xff] }
 0x17b   : > { %7115 = vst [vmem:[#allocation57_spill] sm:$0xff] %v4969_v48 }
 0x17c   : > { %1571 = vrot.lane.b32.xlu1 %v4955_v0, %s4347_s18 }
 0x17d   : > { %1900 = vrot.lane.b32.xlu2 %v4482_v16, %s4349_s22  ;;  %1890 = vrot.lane.b32.xlu0 %v4759_v15, %s4349_s22  ;;  %v5038_v11 = vld [vmem:[#allocation2 + $0xef] sm:$0xff] }
 0x17e   : > { %v4965_v13 = vpop.permute.xlu1 %1553  ;;  %7129 = vst [vmem:[#allocation71_spill] sm:$0xff] %v5038_v11 }
 0x17f   : > { %v4963_v35 = vpop.permute.xlu2 %1561  ;;  %7113 = vst [vmem:[#allocation55_spill] sm:$0xff] %v4965_v13  ;;  %v4967_v62 = vpop.permute.xlu0 %1437 }
 0x180   : > { %7112 = vst [vmem:[#allocation54_spill] sm:$0xff] %v4963_v35 }
 0x181   : > { %7114 = vst [vmem:[#allocation56_spill] sm:$0xff] %v4967_v62  ;;  %v636_v54 = vpop.f32.mrf.mxu0 }
 0x182   : > { %v637_v40 = vadd.f32 %v4567_v63, %v636_v54 }
 0x184   : > { %1757 = vrot.lane.b32.xlu1 %v4972_v2, %s4348_s21  ;;  %v738_v16 = vmax.f32 %v637_v40, 0.0 }
 0x185   : > { %1585 = vrot.lane.b32.xlu2 %v1256_v59, %s4347_s18  ;;  %1383 = vrot.lane.b32.xlu0 %v4969_v48, %s4346_s17 }
 0x186   : > { %v4981_v62 = vpop.permute.xlu1 %1739  ;;  %1113 = vst.msk [vmem:[#allocation2 + $0xf8] sm:$0xff] %vm1080_vm0, %v738_v16 }
 0x187   : > { %v4979_v35 = vpop.permute.xlu2 %1753  ;;  %7117 = vst [vmem:[#allocation59_spill] sm:$0xff] %v4981_v62  ;;  %v4984_v13 = vpop.permute.xlu0 %1815 }
 0x188   : > { %7116 = vst [vmem:[#allocation58_spill] sm:$0xff] %v4979_v35 }
 0x189   : > { %7118 = vst [vmem:[#allocation60_spill] sm:$0xff] %v4984_v13  ;;  %v639_v54 = vpop.f32.mrf.mxu0 }
 0x18a   : > { %v640_v59 = vadd.f32 %v4567_v63, %v639_v54  ;;  %v5004_v54 = vld [vmem:[#allocation2 + $0xa0] sm:$0xff] }
 0x18c   : > { %1892 = vrot.lane.b32.xlu1 %v4793_v56, %s4349_s22  ;;  %v739_v40 = vmax.f32 %v640_v59, 0.0  ;;  %v5010_v59 = vld [vmem:[#allocation2 + $0x99] sm:$0xff] }
 0x18d   : > { %1777 = vrot.lane.b32.xlu2 %v4989_v50, %s4348_s21  ;;  %1761 = vrot.lane.b32.xlu0 %v4986_v44, %s4348_s21 }
 0x18e   : > { %v4999_v13 = vpop.permute.xlu1 %1439  ;;  %1114 = vst.msk [vmem:[#allocation2 + $0x100] sm:$0xff] %vm1080_vm0, %v739_v40 }
 0x18f   : > { %v4997_v16 = vpop.permute.xlu2 %1882  ;;  %7120 = vst [vmem:[#allocation62_spill] sm:$0xff] %v4999_v13  ;;  %v5002_v35 = vpop.permute.xlu0 %1629 }
 0x190   : > { %7119 = vst [vmem:[#allocation61_spill] sm:$0xff] %v4997_v16  ;;  %v5040_v16 = vld [vmem:[#allocation2 + $0x9f] sm:$0xff] }
 0x191   : > { %7121 = vst [vmem:[#allocation63_spill] sm:$0xff] %v5002_v35  ;;  %v642_v62 = vpop.f32.mrf.mxu0  ;;  %v1259_v35 = vld [vmem:[#allocation2 + $0xd9] sm:$0xff] }
 0x192   : > { %7130 = vst [vmem:[#allocation72_spill] sm:$0xff] %v5040_v16 }
 0x194   : > { %1385 = vrot.lane.b32.xlu1 %v5004_v54, %s4346_s17 }
 0x195   : > { %1906 = vrot.lane.b32.xlu2 %v4490_v19, %s4349_s22  ;;  %1575 = vrot.lane.b32.xlu0 %v5010_v59, %s4347_s18  ;;  %v5087_v28 = vld [vmem:[#allocation2 + $0x107] sm:$0xff] }
 0x196   : > { %v5016_v13 = vpop.permute.xlu1 %1631  ;;  %7141 = vst [vmem:[#allocation83_spill] sm:$0xff] %v5087_v28 }
 0x197   : > { %v5014_v57 = vpop.permute.xlu2 %1567  ;;  %7123 = vst [vmem:[#allocation65_spill] sm:$0xff] %v5016_v13  ;;  %v5018_v40 = vpop.permute.xlu0 %1365 }
 0x198   : > { %7122 = vst [vmem:[#allocation64_spill] sm:$0xff] %v5014_v57 }
 0x199   : > { %7124 = vst [vmem:[#allocation66_spill] sm:$0xff] %v5018_v40  ;;  %v645_v1 = vpop.f32.mrf.mxu0 }
 0x19a   : > { %v646_v62 = vadd.f32 %v4567_v63, %v645_v1 }
 0x19c   : > { %1577 = vrot.lane.b32.xlu1 %v5021_v58, %s4347_s18  ;;  %v741_v19 = vmax.f32 %v646_v62, 0.0  ;;  %v5089_v58 = vld [vmem:[#allocation2 + $0xb9] sm:$0xff] }
 0x19d   : > { %1591 = vrot.lane.b32.xlu2 %v1259_v35, %s4347_s18  ;;  %1896 = vrot.lane.b32.xlu0 %v4830_v12, %s4349_s22  ;;  %7142 = vst [vmem:[#allocation84_spill] sm:$0xff] %v5089_v58 }
 0x19e   : > { %v5030_v13 = vpop.permute.xlu1 %1817  ;;  %1116 = vst.msk [vmem:[#allocation2 + $0x110] sm:$0xff] %vm1080_vm0, %v741_v19 }
 0x19f   : > { %v5028_v57 = vpop.permute.xlu2 %1759  ;;  %7127 = vst [vmem:[#allocation69_spill] sm:$0xff] %v5030_v13  ;;  %v5033_v40 = vpop.permute.xlu0 %1743 }
 0x1a0   : > { %7126 = vst [vmem:[#allocation68_spill] sm:$0xff] %v5028_v57 }
 0x1a1   : > { %7128 = vst [vmem:[#allocation70_spill] sm:$0xff] %v5033_v40  ;;  %v648_v1 = vpop.f32.mrf.mxu0  ;;  %v5055_v40 = vld [vmem:[#allocation2 + $0xaf] sm:$0xff] }
 0x1a2   : > { %v649_v35 = vadd.f32 %v4567_v63, %v648_v1  ;;  %7134 = vst [vmem:[#allocation76_spill] sm:$0xff] %v5055_v40 }
 0x1a4   : > { %1763 = vrot.lane.b32.xlu1 %v5040_v16, %s4348_s21  ;;  %v742_v62 = vmax.f32 %v649_v35, 0.0 }
 0x1a5   : > { %1783 = vrot.lane.b32.xlu2 %v5038_v11, %s4348_s21  ;;  %1389 = vrot.lane.b32.xlu0 %v5035_v29, %s4346_s17  ;;  %v5236_v11 = vld [vmem:[#allocation2 + $0xe7] sm:$0xff] }
 0x1a6   : > { %v5050_v13 = vpop.permute.xlu1 %1367  ;;  %1117 = vst.msk [vmem:[#allocation2 + $0x118] sm:$0xff] %vm1080_vm0, %v742_v62  ;;  %v1262_v62 = vld [vmem:[#allocation2 + $0xf1] sm:$0xff] }
 0x1a7   : > { %v5048_v19 = vpop.permute.xlu2 %1888  ;;  %7132 = vst [vmem:[#allocation74_spill] sm:$0xff] %v5050_v13  ;;  %v5053_v1 = vpop.permute.xlu0 %1557 }
 0x1a8   : > { %7131 = vst [vmem:[#allocation73_spill] sm:$0xff] %v5048_v19 }
 0x1a9   : > { %7133 = vst [vmem:[#allocation75_spill] sm:$0xff] %v5053_v1  ;;  %v651_v57 = vpop.f32.mrf.mxu0  ;;  %v5069_v1 = vld [vmem:[#allocation2 + $0xb8] sm:$0xff] }
 0x1aa   : > { %7183 = vst [vmem:[#allocation125_spill] sm:$0xff] %v5236_v11 }
 0x1ac   : > { %1898 = vrot.lane.b32.xlu1 %v4865_v20, %s4349_s22 }
 0x1ad   : > { %1912 = vrot.lane.b32.xlu2 %v4498_v22, %s4349_s22  ;;  %1767 = vrot.lane.b32.xlu0 %v5055_v40, %s4348_s21  ;;  %v5075_v22 = vld [vmem:[#allocation2 + $0xb1] sm:$0xff] }
 0x1ae   : > { %v5065_v19 = vpop.permute.xlu1 %1559 }
 0x1af   : > { %v5063_v35 = vpop.permute.xlu2 %1573  ;;  %7136 = vst [vmem:[#allocation78_spill] sm:$0xff] %v5065_v19  ;;  %v5067_v13 = vpop.permute.xlu0 %1821 }
 0x1b0   : > { %7135 = vst [vmem:[#allocation77_spill] sm:$0xff] %v5063_v35 }
 0x1b1   : > { %7137 = vst [vmem:[#allocation79_spill] sm:$0xff] %v5067_v13  ;;  %v654_v57 = vpop.f32.mrf.mxu0 }
 0x1b2   : > { %v655_v16 = vadd.f32 %v4567_v63, %v654_v57 }
 0x1b4   : > { %1391 = vrot.lane.b32.xlu1 %v5069_v1, %s4346_s17  ;;  %v744_v40 = vmax.f32 %v655_v16, 0.0 }
 0x1b5   : > { %1597 = vrot.lane.b32.xlu2 %v1262_v62, %s4347_s18  ;;  %1581 = vrot.lane.b32.xlu0 %v5075_v22, %s4347_s18 }
 0x1b6   : > { %v5081_v13 = vpop.permute.xlu1 %1745  ;;  %1119 = vst.msk [vmem:[#allocation2 + $0x128] sm:$0xff] %vm1080_vm0, %v744_v40 }
 0x1b7   : > { %v5079_v35 = vpop.permute.xlu2 %1765  ;;  %7139 = vst [vmem:[#allocation81_spill] sm:$0xff] %v5081_v13  ;;  %v5084_v19 = vpop.permute.xlu0 %1371  ;;  %v5108_v13 = vld [vmem:[#allocation2 + $0xc0] sm:$0xff] }
 0x1b8   : > { %7138 = vst [vmem:[#allocation80_spill] sm:$0xff] %v5079_v35 }
 0x1b9   : > { %7140 = vst [vmem:[#allocation82_spill] sm:$0xff] %v5084_v19  ;;  %v657_v57 = vpop.f32.mrf.mxu0  ;;  %v5106_v19 = vld [vmem:[#allocation2 + $0xb7] sm:$0xff] }
 0x1ba   : > { %v658_v62 = vadd.f32 %v4567_v63, %v657_v57  ;;  %v5104_v57 = vld [vmem:[#allocation2 + $0xc8] sm:$0xff]  ;;  %7147 = vst [vmem:[#allocation89_spill] sm:$0xff] %v5106_v19 }
 0x1bb   : > { %7146 = vst [vmem:[#allocation88_spill] sm:$0xff] %v5104_v57 }
 0x1bc   : > { %1583 = vrot.lane.b32.xlu1 %v5089_v58, %s4347_s18  ;;  %v745_v16 = vmax.f32 %v658_v62, 0.0  ;;  %7148 = vst [vmem:[#allocation90_spill] sm:$0xff] %v5108_v13  ;;  %v5153_v58 = vld [vmem:[#allocation2 + $0xd1] sm:$0xff] }
 0x1bd   : > { %1789 = vrot.lane.b32.xlu2 %v5087_v28, %s4348_s21  ;;  %1902 = vrot.lane.b32.xlu0 %v4901_v8, %s4349_s22  ;;  %7160 = vst [vmem:[#allocation102_spill] sm:$0xff] %v5153_v58  ;;  %v5155_v28 = vld [vmem:[#allocation2 + $0xd8] sm:$0xff] }
 0x1be   : > { %v5099_v35 = vpop.permute.xlu1 %1823  ;;  %1120 = vst.msk [vmem:[#allocation2 + $0x130] sm:$0xff] %vm1080_vm0, %v745_v16 }
 0x1bf   : > { %v5097_v40 = vpop.permute.xlu2 %1894  ;;  %7144 = vst [vmem:[#allocation86_spill] sm:$0xff] %v5099_v35  ;;  %v5102_v63 = vpop.permute.xlu0 %1749 }
 0x1c0   : > { %7143 = vst [vmem:[#allocation85_spill] sm:$0xff] %v5097_v40  ;;  %v5124_v40 = vld [vmem:[#allocation2 + $0xc7] sm:$0xff] }
 0x1c1   : > { %7145 = vst [vmem:[#allocation87_spill] sm:$0xff] %v5102_v63  ;;  %v5122_v63 = vld [vmem:[#allocation2 + $0x109] sm:$0xff] }
 0x1c2   : > { %7152 = vst [vmem:[#allocation94_spill] sm:$0xff] %v5122_v63 }
 0x1c3   : > { %7153 = vst [vmem:[#allocation95_spill] sm:$0xff] %v5124_v40 }
 0x1c4   : > { %1769 = vrot.lane.b32.xlu1 %v5106_v19, %s4348_s21  ;;  %v1172_v19 = vld [vmem:[#allocation2 + $0x11f] sm:$0xff]  ;;  %7161 = vst [vmem:[#allocation103_spill] sm:$0xff] %v5155_v28 }
 0x1c5   : > { %1918 = vrot.lane.b32.xlu2 %v5108_v13, %s4349_s22  ;;  %1395 = vrot.lane.b32.xlu0 %v5104_v57, %s4346_s17 }
 0x1c6   : > { %v5118_v16 = vpop.permute.xlu1 %1373 }
 0x1c7   : > { %v5116_v62 = vpop.permute.xlu2 %1579  ;;  %7150 = vst [vmem:[#allocation92_spill] sm:$0xff] %v5118_v16  ;;  %v5120_v35 = vpop.permute.xlu0 %1563 }
 0x1c8   : > { %7149 = vst [vmem:[#allocation91_spill] sm:$0xff] %v5116_v62 }
 0x1c9   : > { %7151 = vst [vmem:[#allocation93_spill] sm:$0xff] %v5120_v35  ;;  %v5138_v35 = vld [vmem:[#allocation2 + $0xd0] sm:$0xff] }
 0x1cc   : > { %1904 = vrot.lane.b32.xlu1 %v4935_v53, %s4349_s22 }
 0x1cd   : > { %1603 = vrot.lane.b32.xlu2 %v5122_v63, %s4347_s18  ;;  %1773 = vrot.lane.b32.xlu0 %v5124_v40, %s4348_s21  ;;  %v5143_v63 = vld [vmem:[#allocation2 + $0xc9] sm:$0xff] }
 0x1ce   : > { %v5134_v62 = vpop.permute.xlu1 %1565 }
 0x1cf   : > { %v5132_v13 = vpop.permute.xlu2 %1771  ;;  %7155 = vst [vmem:[#allocation97_spill] sm:$0xff] %v5134_v62  ;;  %v5136_v16 = vpop.permute.xlu0 %1884 }
 0x1d0   : > { %7154 = vst [vmem:[#allocation96_spill] sm:$0xff] %v5132_v13 }
 0x1d1   : > { %7156 = vst [vmem:[#allocation98_spill] sm:$0xff] %v5136_v16  ;;  %v5171_v16 = vld [vmem:[#allocation2 + $0xe0] sm:$0xff] }
 0x1d4   : > { %1397 = vrot.lane.b32.xlu1 %v5138_v35, %s4346_s17 }
 0x1d5   : > { %1795 = vrot.lane.b32.xlu2 %v1172_v19, %s4348_s21  ;;  %1587 = vrot.lane.b32.xlu0 %v5143_v63, %s4347_s18 }
 0x1d6   : > { %v5149_v13 = vpop.permute.xlu1 %1751 }
 0x1d7   : > { %v5147_v40 = vpop.permute.xlu2 %1900  ;;  %7158 = vst [vmem:[#allocation100_spill] sm:$0xff] %v5149_v13  ;;  %v5151_v62 = vpop.permute.xlu0 %1377 }
 0x1d8   : > { %7157 = vst [vmem:[#allocation99_spill] sm:$0xff] %v5147_v40 }
 0x1d9   : > { %7159 = vst [vmem:[#allocation101_spill] sm:$0xff] %v5151_v62  ;;  %v5169_v62 = vld [vmem:[#allocation2 + $0x121] sm:$0xff] }
 0x1da   : > { %7165 = vst [vmem:[#allocation107_spill] sm:$0xff] %v5169_v62 }
 0x1dc   : > { %1589 = vrot.lane.b32.xlu1 %v5153_v58, %s4347_s18  ;;  %v5187_v58 = vld [vmem:[#allocation2 + $0xdf] sm:$0xff] }
 0x1dd   : > { %1924 = vrot.lane.b32.xlu2 %v5155_v28, %s4349_s22  ;;  %1908 = vrot.lane.b32.xlu0 %v4969_v48, %s4349_s22  ;;  %7170 = vst [vmem:[#allocation112_spill] sm:$0xff] %v5187_v58  ;;  %v5220_v48 = vld [vmem:[#allocation2 + $0x108] sm:$0xff] }
 0x1de   : > { %v5165_v40 = vpop.permute.xlu1 %1886  ;;  %7179 = vst [vmem:[#allocation121_spill] sm:$0xff] %v5220_v48 }
 0x1df   : > { %v5163_v19 = vpop.permute.xlu2 %1585  ;;  %7163 = vst [vmem:[#allocation105_spill] sm:$0xff] %v5165_v40  ;;  %v5167_v13 = vpop.permute.xlu0 %1755  ;;  %v1175_v40 = vld [vmem:[#allocation2 + $0x137] sm:$0xff] }
 0x1e0   : > { %7162 = vst [vmem:[#allocation104_spill] sm:$0xff] %v5163_v19 }
 0x1e1   : > { %7164 = vst [vmem:[#allocation106_spill] sm:$0xff] %v5167_v13 }
 0x1e4   : > { %1775 = vrot.lane.b32.xlu1 %v5173_v49, %s4348_s21 }
 0x1e5   : > { %1609 = vrot.lane.b32.xlu2 %v5169_v62, %s4347_s18  ;;  %1401 = vrot.lane.b32.xlu0 %v5171_v16, %s4346_s17 }
 0x1e6   : > { %v5183_v28 = vpop.permute.xlu1 %1379 }
 0x1e7   : > { %v5181_v19 = vpop.permute.xlu2 %1777  ;;  %7168 = vst [vmem:[#allocation110_spill] sm:$0xff] %v5183_v28  ;;  %v5185_v13 = vpop.permute.xlu0 %1569  ;;  %v5200_v28 = vld [vmem:[#allocation2 + $0xe8] sm:$0xff] }
 0x1e8   : > { %7167 = vst [vmem:[#allocation109_spill] sm:$0xff] %v5181_v19 }
 0x1e9   : > { %7169 = vst [vmem:[#allocation111_spill] sm:$0xff] %v5185_v13  ;;  %v5202_v13 = vld [vmem:[#allocation2 + $0xf0] sm:$0xff] }
 0x1ea   : > { %7174 = vst [vmem:[#allocation116_spill] sm:$0xff] %v5202_v13 }
 0x1ec   : > { %1910 = vrot.lane.b32.xlu1 %v5004_v54, %s4349_s22 }
 0x1ed   : > { %1801 = vrot.lane.b32.xlu2 %v1175_v40, %s4348_s21  ;;  %1779 = vrot.lane.b32.xlu0 %v5187_v58, %s4348_s21  ;;  %v5208_v40 = vld [vmem:[#allocation2 + $0xe1] sm:$0xff] }
 0x1ee   : > { %v5196_v49 = vpop.permute.xlu1 %1571 }
 0x1ef   : > { %v5194_v62 = vpop.permute.xlu2 %1906  ;;  %7172 = vst [vmem:[#allocation114_spill] sm:$0xff] %v5196_v49  ;;  %v5198_v19 = vpop.permute.xlu0 %1890 }
 0x1f0   : > { %7171 = vst [vmem:[#allocation113_spill] sm:$0xff] %v5194_v62 }
 0x1f1   : > { %7173 = vst [vmem:[#allocation115_spill] sm:$0xff] %v5198_v19  ;;  %v5218_v19 = vld [vmem:[#allocation2 + $0xe9] sm:$0xff] }
 0x1f2   : > { %7178 = vst [vmem:[#allocation120_spill] sm:$0xff] %v5218_v19 }
 0x1f4   : > { %1403 = vrot.lane.b32.xlu1 %v5200_v28, %s4346_s17 }
 0x1f5   : > { %1930 = vrot.lane.b32.xlu2 %v5202_v13, %s4349_s22  ;;  %1593 = vrot.lane.b32.xlu0 %v5208_v40, %s4347_s18 }
 0x1f6   : > { %v5214_v49 = vpop.permute.xlu1 %1757 }
 0x1f7   : > { %v5212_v62 = vpop.permute.xlu2 %1591  ;;  %7176 = vst [vmem:[#allocation118_spill] sm:$0xff] %v5214_v49  ;;  %v5216_v58 = vpop.permute.xlu0 %1383 }
 0x1f8   : > { %7175 = vst [vmem:[#allocation117_spill] sm:$0xff] %v5212_v62 }
 0x1f9   : > { %7177 = vst [vmem:[#allocation119_spill] sm:$0xff] %v5216_v58  ;;  %v5234_v58 = vld [vmem:[#allocation2 + $0xf8] sm:$0xff] }
 0x1fc   : > { %1595 = vrot.lane.b32.xlu1 %v5218_v19, %s4347_s18 }
 0x1fd   : > { %1936 = vrot.lane.b32.xlu2 %v5220_v48, %s4349_s22  ;;  %1914 = vrot.lane.b32.xlu0 %v5035_v29, %s4349_s22 }
 0x1fe   : > { %v5230_v62 = vpop.permute.xlu1 %1892 }
 0x1ff   : > { %v5228_v13 = vpop.permute.xlu2 %1783  ;;  %7181 = vst [vmem:[#allocation123_spill] sm:$0xff] %v5230_v62  ;;  %v5232_v49 = vpop.permute.xlu0 %1761 }
 0x200   : > { %7180 = vst [vmem:[#allocation122_spill] sm:$0xff] %v5228_v13 }
 0x201   : > { %7182 = vst [vmem:[#allocation124_spill] sm:$0xff] %v5232_v49  ;;  %v5249_v49 = vld [vmem:[#allocation2 + $0xf7] sm:$0xff] }
 0x202   : > { %7187 = vst [vmem:[#allocation129_spill] sm:$0xff] %v5249_v49 }
 0x204   : > { %1781 = vrot.lane.b32.xlu1 %v5236_v11, %s4348_s21 }
 0x205   : > { %1942 = vrot.lane.b32.xlu2 %v4220_v43, %s4349_s22  ;;  %1407 = vrot.lane.b32.xlu0 %v5234_v58, %s4346_s17 }
 0x206   : > { %v5245_v13 = vpop.permute.xlu1 %1385 }
 0x207   : > { %v5243_v48 = vpop.permute.xlu2 %1912  ;;  %7185 = vst [vmem:[#allocation127_spill] sm:$0xff] %v5245_v13  ;;  %v5247_v19 = vpop.permute.xlu0 %1575  ;;  %v5263_v13 = vld [vmem:[#allocation2 + $0x100] sm:$0xff] }
 0x208   : > { %7184 = vst [vmem:[#allocation126_spill] sm:$0xff] %v5243_v48 }
 0x209   : > { %7186 = vst [vmem:[#allocation128_spill] sm:$0xff] %v5247_v19 }
 0x20c   : > { %1916 = vrot.lane.b32.xlu1 %v5069_v1, %s4349_s22 }
 0x20d   : > { %2025 = vrot.lane.b32.xlu2 %v4628_v9, %s4350_s23  ;;  %1785 = vrot.lane.b32.xlu0 %v5249_v49, %s4348_s21  ;;  %v5269_v9 = vld [vmem:[#allocation2 + $0xf9] sm:$0xff]  ;;  %v5279_v49 = vld [vmem:[#allocation2 + $0x101] sm:$0xff] }
 0x20e   : > { %v5259_v11 = vpop.permute.xlu1 %1577  ;;  %7194 = vst [vmem:[#allocation136_spill] sm:$0xff] %v5279_v49 }
 0x20f   : > { %v5257_v43 = vpop.permute.xlu2 %1597  ;;  %7189 = vst [vmem:[#allocation131_spill] sm:$0xff] %v5259_v11  ;;  %v5261_v48 = vpop.permute.xlu0 %1896 }
 0x210   : > { %7188 = vst [vmem:[#allocation130_spill] sm:$0xff] %v5257_v43 }
 0x211   : > { %7190 = vst [vmem:[#allocation132_spill] sm:$0xff] %v5261_v48 }
 0x214   : > { %1409 = vrot.lane.b32.xlu1 %v5263_v13, %s4346_s17 }
 0x215   : > { %2466 = vrot.lane.b32.xlu2 %v4704_v23, %s4351_s28  ;;  %1599 = vrot.lane.b32.xlu0 %v5269_v9, %s4347_s18 }
 0x216   : > { %v5275_v43 = vpop.permute.xlu1 %1763 }
 0x217   : > { %v5273_v19 = vpop.permute.xlu2 %1789  ;;  %7192 = vst [vmem:[#allocation134_spill] sm:$0xff] %v5275_v43  ;;  %v5277_v11 = vpop.permute.xlu0 %1389  ;;  %v5293_v43 = vld [vmem:[#allocation2 + $0x110] sm:$0xff] }
 0x218   : > { %7191 = vst [vmem:[#allocation133_spill] sm:$0xff] %v5273_v19 }
 0x219   : > { %7193 = vst [vmem:[#allocation135_spill] sm:$0xff] %v5277_v11  ;;  %v5295_v11 = vld [vmem:[#allocation2 + $0xff] sm:$0xff] }
 0x21a   : > { %7198 = vst [vmem:[#allocation140_spill] sm:$0xff] %v5295_v11 }
 0x21c   : > { %1601 = vrot.lane.b32.xlu1 %v5279_v49, %s4347_s18 }
 0x21d   : > { %2321 = vrot.lane.b32.xlu2 %v4697_v18, %s4352_s29  ;;  %1920 = vrot.lane.b32.xlu0 %v5104_v57, %s4349_s22  ;;  %v5336_v57 = vld [vmem:[#allocation2 + $0x119] sm:$0xff] }
 0x21e   : > { %v5289_v62 = vpop.permute.xlu1 %1898  ;;  %7210 = vst [vmem:[#allocation152_spill] sm:$0xff] %v5336_v57 }
 0x21f   : > { %v5287_v48 = vpop.permute.xlu2 %1918  ;;  %7196 = vst [vmem:[#allocation138_spill] sm:$0xff] %v5289_v62  ;;  %v5291_v19 = vpop.permute.xlu0 %1767 }
 0x220   : > { %7195 = vst [vmem:[#allocation137_spill] sm:$0xff] %v5287_v48 }
 0x221   : > { %7197 = vst [vmem:[#allocation139_spill] sm:$0xff] %v5291_v19  ;;  %v5309_v19 = vld [vmem:[#allocation2 + $0x10f] sm:$0xff] }
 0x222   : > { %7202 = vst [vmem:[#allocation144_spill] sm:$0xff] %v5309_v19 }
 0x224   : > { %1787 = vrot.lane.b32.xlu1 %v5295_v11, %s4348_s21 }
 0x225   : > { %2176 = vrot.lane.b32.xlu2 %v4655_v38, %s4353_s30  ;;  %1413 = vrot.lane.b32.xlu0 %v5293_v43, %s4346_s17 }
 0x226   : > { %v5305_v48 = vpop.permute.xlu1 %1391 }
 0x227   : > { %v5303_v18 = vpop.permute.xlu2 %1603  ;;  %7200 = vst [vmem:[#allocation142_spill] sm:$0xff] %v5305_v48  ;;  %v5307_v62 = vpop.permute.xlu0 %1581  ;;  %v1219_v48 = vld [vmem:[#allocation2 + $0x118] sm:$0xff] }
 0x228   : > { %7199 = vst [vmem:[#allocation141_spill] sm:$0xff] %v5303_v18 }
 0x229   : > { %7201 = vst [vmem:[#allocation143_spill] sm:$0xff] %v5307_v62  ;;  %v5326_v62 = vld [vmem:[#allocation2 + $0x111] sm:$0xff] }
 0x22a   : > { %7206 = vst [vmem:[#allocation148_spill] sm:$0xff] %v5326_v62 }
 0x22c   : > { %1922 = vrot.lane.b32.xlu1 %v5138_v35, %s4349_s22 }
 0x22d   : > { %2031 = vrot.lane.b32.xlu2 %v4704_v23, %s4350_s23  ;;  %1791 = vrot.lane.b32.xlu0 %v5309_v19, %s4348_s21 }
 0x22e   : > { %v5319_v11 = vpop.permute.xlu1 %1583 }
 0x22f   : > { %v5317_v38 = vpop.permute.xlu2 %1795  ;;  %7204 = vst [vmem:[#allocation146_spill] sm:$0xff] %v5319_v11  ;;  %v5321_v18 = vpop.permute.xlu0 %1902  ;;  %v1221_v11 = vld [vmem:[#allocation2 + $0x128] sm:$0xff] }
 0x230   : > { %7203 = vst [vmem:[#allocation145_spill] sm:$0xff] %v5317_v38 }
 0x231   : > { %7205 = vst [vmem:[#allocation147_spill] sm:$0xff] %v5321_v18 }
 0x234   : > { %1415 = vrot.lane.b32.xlu1 %v1219_v48, %s4346_s17 }
 0x235   : > { %2472 = vrot.lane.b32.xlu2 %v4800_v6, %s4351_s28  ;;  %1605 = vrot.lane.b32.xlu0 %v5326_v62, %s4347_s18  ;;  %v1171_v62 = vld [vmem:[#allocation2 + $0x117] sm:$0xff] }
 0x236   : > { %v5332_v19 = vpop.permute.xlu1 %1769 }
 0x237   : > { %v5330_v23 = vpop.permute.xlu2 %1924  ;;  %7208 = vst [vmem:[#allocation150_spill] sm:$0xff] %v5332_v19  ;;  %v5334_v38 = vpop.permute.xlu0 %1395  ;;  %v1173_v19 = vld [vmem:[#allocation2 + $0x127] sm:$0xff] }
 0x238   : > { %7207 = vst [vmem:[#allocation149_spill] sm:$0xff] %v5330_v23 }
 0x239   : > { %7209 = vst [vmem:[#allocation151_spill] sm:$0xff] %v5334_v38 }
 0x23c   : > { %1607 = vrot.lane.b32.xlu1 %v5336_v57, %s4347_s18 }
 0x23d   : > { %2327 = vrot.lane.b32.xlu2 %v4793_v56, %s4352_s29  ;;  %1419 = vrot.lane.b32.xlu0 %v1221_v11, %s4346_s17 }
 0x23e   : > { %v5345_v49 = vpop.permute.xlu1 %1904 }
 0x23f   : > { %v5343_v18 = vpop.permute.xlu2 %1609  ;;  %v5347_v23 = vpop.permute.xlu0 %1773 }
 0x240   : > { %7211 = vst [vmem:[#allocation153_spill] sm:$0xff] %v5343_v18  ;;  %v1222_v18 = vld [vmem:[#allocation2 + $0x130] sm:$0xff] }
 0x241   : > { %7212 = vst [vmem:[#allocation154_spill] sm:$0xff] %v5347_v23  ;;  %v5362_v23 = vld [vmem:[#allocation2 + $0x129] sm:$0xff] }
 0x244   : > { %1793 = vrot.lane.b32.xlu1 %v1171_v62, %s4348_s21 }
 0x245   : > { %2182 = vrot.lane.b32.xlu2 %v4711_v26, %s4353_s30  ;;  %1797 = vrot.lane.b32.xlu0 %v1173_v19, %s4348_s21 }
 0x246   : > { %v5355_v38 = vpop.permute.xlu1 %1397 }
 0x247   : > { %v5353_v56 = vpop.permute.xlu2 %1801  ;;  %7214 = vst [vmem:[#allocation156_spill] sm:$0xff] %v5355_v38  ;;  %v5357_v57 = vpop.permute.xlu0 %1587 }
 0x248   : > { %7213 = vst [vmem:[#allocation155_spill] sm:$0xff] %v5353_v56  ;;  %v5372_v56 = vld [vmem:[#allocation2 + $0x131] sm:$0xff] }
 0x249   : > { %7215 = vst [vmem:[#allocation157_spill] sm:$0xff] %v5357_v57 }
 0x24a   : > { %7219 = vst [vmem:[#allocation161_spill] sm:$0xff] %v5372_v56 }
 0x24c   : > { %1421 = vrot.lane.b32.xlu1 %v1222_v18, %s4346_s17 }
 0x24d   : > { %2037 = vrot.lane.b32.xlu2 %v4800_v6, %s4350_s23  ;;  %1611 = vrot.lane.b32.xlu0 %v5362_v23, %s4347_s18 }
 0x24e   : > { %v5368_v62 = vpop.permute.xlu1 %1589 }
 0x24f   : > { %v5366_v26 = vpop.permute.xlu2 %1930  ;;  %7217 = vst [vmem:[#allocation159_spill] sm:$0xff] %v5368_v62  ;;  %v5370_v19 = vpop.permute.xlu0 %1908  ;;  %v1174_v62 = vld [vmem:[#allocation2 + $0x12f] sm:$0xff] }
 0x250   : > { %7216 = vst [vmem:[#allocation158_spill] sm:$0xff] %v5366_v26 }
 0x251   : > { %7218 = vst [vmem:[#allocation160_spill] sm:$0xff] %v5370_v19 }
 0x254   : > { %1613 = vrot.lane.b32.xlu1 %v5372_v56, %s4347_s18 }
 0x255   : > { %2478 = vrot.lane.b32.xlu2 %v4872_v10, %s4351_s28  ;;  %1926 = vrot.lane.b32.xlu0 %v5171_v16, %s4349_s22 }
 0x256   : > { %v5382_v38 = vpop.permute.xlu1 %1775 }
 0x257   : > { %v5380_v6 = vpop.permute.xlu2 %1936  ;;  %v5384_v26 = vpop.permute.xlu0 %1401 }
 0x258   : > { %7220 = vst [vmem:[#allocation162_spill] sm:$0xff] %v5380_v6 }
 0x259   : > { %7221 = vst [vmem:[#allocation163_spill] sm:$0xff] %v5384_v26 }
 0x25c   : > { %1799 = vrot.lane.b32.xlu1 %v1174_v62, %s4348_s21 }
 0x25d   : > { %2333 = vrot.lane.b32.xlu2 %v4865_v20, %s4352_s29  ;;  %1932 = vrot.lane.b32.xlu0 %v5234_v58, %s4349_s22 }
 0x25e   : > { %v5393_v56 = vpop.permute.xlu1 %1910 }
 0x25f   : > { %v5391_v57 = vpop.permute.xlu2 %1942  ;;  %v5395_v19 = vpop.permute.xlu0 %1779 }
 0x260   : > { %7222 = vst [vmem:[#allocation164_spill] sm:$0xff] %v5391_v57 }
 0x261   : > { %7223 = vst [vmem:[#allocation165_spill] sm:$0xff] %v5395_v19 }
 0x264   : > { %1928 = vrot.lane.b32.xlu1 %v5200_v28, %s4349_s22 }
 0x265   : > { %2188 = vrot.lane.b32.xlu2 %v4774_v33, %s4353_s30  ;;  %1938 = vrot.lane.b32.xlu0 %v5293_v43, %s4349_s22 }
 0x266   : > { %v5405_v62 = vpop.permute.xlu1 %1403 }
 0x267   : > { %v5403_v20 = vpop.permute.xlu2 %2025  ;;  %7224 = vst [vmem:[#allocation166_spill] sm:$0xff] %v5405_v62  ;;  %v5407_v6 = vpop.permute.xlu0 %1593 }
 0x268   : > { %7225 = vst [vmem:[#allocation167_spill] sm:$0xff] %v5407_v6 }
 0x26c   : > { %1934 = vrot.lane.b32.xlu1 %v5263_v13, %s4349_s22 }
 0x26d   : > { %2043 = vrot.lane.b32.xlu2 %v4872_v10, %s4350_s23  ;;  %1944 = vrot.lane.b32.xlu0 %v1221_v11, %s4349_s22  ;;  %v4221_v11 = vld [vmem:[#allocation2 + $0x29] sm:$0xff] }
 0x26e   : > { %v5416_v57 = vpop.permute.xlu1 %1595 }
 0x26f   : > { %v5414_v33 = vpop.permute.xlu2 %2466  ;;  %7226 = vst [vmem:[#allocation168_spill] sm:$0xff] %v5416_v57  ;;  %v5418_v26 = vpop.permute.xlu0 %1914 }
 0x274   : > { %1940 = vrot.lane.b32.xlu1 %v1219_v48, %s4349_s22 }
 0x275   : > { %2484 = vrot.lane.b32.xlu2 %v4944_v5, %s4351_s28  ;;  %2172 = vrot.lane.b32.xlu0 %v4683_v4, %s4353_s30 }
 0x276   : > { %v5425_v10 = vpop.permute.xlu1 %1781 }
 0x277   : > { %v5427_v62 = vpop.permute.xlu0 %1407  ;;  %v5429_v6 = vpop.permute.xlu2 %2321 }
 0x27c   : > { %1946 = vrot.lane.b32.xlu1 %v1222_v18, %s4349_s22 }
 0x27d   : > { %2339 = vrot.lane.b32.xlu2 %v4935_v53, %s4352_s29  ;;  %2027 = vrot.lane.b32.xlu0 %v4221_v11, %s4350_s23  ;;  %v4222_v11 = vld [vmem:[#allocation2 + $0x48] sm:$0xff] }
 0x27e   : > { %v5435_v57 = vpop.permute.xlu1 %1916 }
 0x27f   : > { %v5437_v48 = vpop.permute.xlu0 %1785  ;;  %v5439_v19 = vpop.permute.xlu2 %2176 }
 0x284   : > { %2319 = vrot.lane.b32.xlu1 %v4670_v55, %s4352_s29 }
 0x285   : > { %2194 = vrot.lane.b32.xlu2 %v4833_v61, %s4353_s30  ;;  %2468 = vrot.lane.b32.xlu0 %v4717_v32, %s4351_s28 }
 0x286   : > { %v5447_v53 = vpop.permute.xlu1 %1409 }
 0x287   : > { %7227 = vst [vmem:[#allocation169_spill] sm:$0xff] %v5447_v53  ;;  %v5449_v4 = vpop.permute.xlu0 %1599  ;;  %v5451_v18 = vpop.permute.xlu2 %2031  ;;  %v4223_v53 = vld [vmem:[#allocation2 + $0x31] sm:$0xff] }
 0x288   : > { %7228 = vst [vmem:[#allocation170_spill] sm:$0xff] %v5449_v4 }
 0x28c   : > { %2174 = vrot.lane.b32.xlu1 %v4732_v42, %s4353_s30 }
 0x28d   : > { %2049 = vrot.lane.b32.xlu2 %v4944_v5, %s4350_s23  ;;  %2323 = vrot.lane.b32.xlu0 %v4222_v11, %s4352_s29 }
 0x28e   : > { %v5458_v61 = vpop.permute.xlu1 %1601 }
 0x28f   : > { %7229 = vst [vmem:[#allocation171_spill] sm:$0xff] %v5458_v61  ;;  %v5460_v55 = vpop.permute.xlu0 %1920  ;;  %v5467_v5 = vpop.permute.xlu2 %2472  ;;  %v4224_v61 = vld [vmem:[#allocation2 + $0x60] sm:$0xff] }
 0x294   : > { %2029 = vrot.lane.b32.xlu1 %v4223_v53, %s4350_s23 }
 0x295   : > { %2490 = vrot.lane.b32.xlu2 %v5010_v59, %s4351_s28  ;;  %2178 = vrot.lane.b32.xlu0 %v4777_v39, %s4353_s30 }
 0x296   : > { %v5469_v4 = vpop.permute.xlu1 %1787 }
 0x297   : > { %v5471_v42 = vpop.permute.xlu0 %1413  ;;  %v5483_v39 = vpop.permute.xlu2 %2327 }
 0x298   : > { %7230 = vst [vmem:[#allocation172_spill] sm:$0xff] %v5471_v42 }
 0x29c   : > { %2470 = vrot.lane.b32.xlu1 %v4695_v17, %s4351_s28 }
 0x29d   : > { %2345 = vrot.lane.b32.xlu2 %v5004_v54, %s4352_s29  ;;  %2033 = vrot.lane.b32.xlu0 %v4717_v32, %s4350_s23 }
 0x29e   : > { %v5479_v11 = vpop.permute.xlu1 %1922 }
 0x29f   : > { %v5481_v53 = vpop.permute.xlu0 %1791  ;;  %v5495_v32 = vpop.permute.xlu2 %2182 }
 0x2a0   : > { %7231 = vst [vmem:[#allocation173_spill] sm:$0xff] %v5481_v53 }
 0x2a4   : > { %2325 = vrot.lane.b32.xlu1 %v4759_v15, %s4352_s29 }
 0x2a5   : > { %2200 = vrot.lane.b32.xlu2 %v4884_v24, %s4353_s30  ;;  %2474 = vrot.lane.b32.xlu0 %v4815_v46, %s4351_s28 }
 0x2a6   : > { %v5491_v54 = vpop.permute.xlu1 %1415 }
 0x2a7   : > { %7232 = vst [vmem:[#allocation174_spill] sm:$0xff] %v5491_v54  ;;  %v5493_v42 = vpop.permute.xlu0 %1605  ;;  %v5506_v53 = vpop.permute.xlu2 %2037 }
 0x2a8   : > { %7233 = vst [vmem:[#allocation175_spill] sm:$0xff] %v5493_v42 }
 0x2ac   : > { %2180 = vrot.lane.b32.xlu1 %v4835_v41, %s4353_s30 }
 0x2ad   : > { %2055 = vrot.lane.b32.xlu2 %v5010_v59, %s4350_s23  ;;  %2329 = vrot.lane.b32.xlu0 %v4224_v61, %s4352_s29 }
 0x2ae   : > { %v5502_v24 = vpop.permute.xlu1 %1607 }
 0x2af   : > { %7234 = vst [vmem:[#allocation176_spill] sm:$0xff] %v5502_v24  ;;  %v5504_v15 = vpop.permute.xlu0 %1419  ;;  %v5524_v61 = vpop.permute.xlu2 %2478  ;;  %v3008_v24 = vld [vmem:[%s7020_s3 + $0x40] sm:$0xff] }
 0x2b0   : > { %7235 = vst [vmem:[#allocation177_spill] sm:$0xff] %v5504_v15  ;;  %3165 = vmatpush.msra.mxu1 %v3008_v24  ;;  %4168 = vmatpush.msrb.mxu3 %v3008_v24  ;;  %v3005_v24 = vld [vmem:[%s7020_s3 + $0x28] sm:$0xff] }
 0x2b4   : > { %2035 = vrot.lane.b32.xlu1 %v4695_v17, %s4350_s23 }
 0x2b5   : > { %2496 = vrot.lane.b32.xlu2 %v5075_v22, %s4351_s28  ;;  %2184 = vrot.lane.b32.xlu0 %v4850_v52, %s4353_s30 }
 0x2b6   : > { %v5514_v59 = vpop.permute.xlu1 %1793 }
 0x2b7   : > { %v5516_v41 = vpop.permute.xlu0 %1797 }
 0x2b8   : > { %7236 = vst [vmem:[#allocation178_spill] sm:$0xff] %v5516_v41 }
 0x2bc   : > { %2476 = vrot.lane.b32.xlu1 %v4755_v3, %s4351_s28 }
 0x2bd   : > { %2351 = vrot.lane.b32.xlu2 %v5069_v1, %s4352_s29  ;;  %2039 = vrot.lane.b32.xlu0 %v4815_v46, %s4350_s23  ;;  %v5540_v46 = vpop.permute.xlu2 %2333 }
 0x2be   : > { %v5526_v15 = vpop.permute.xlu1 %1421 }
 0x2bf   : > { %v5528_v17 = vpop.permute.xlu0 %1611 }
 0x2c0   : > { %7237 = vst [vmem:[#allocation179_spill] sm:$0xff] %v5528_v17  ;;  %v4225_v17 = vld [vmem:[#allocation2 + $0x78] sm:$0xff] }
 0x2c4   : > { %2331 = vrot.lane.b32.xlu1 %v4830_v12, %s4352_s29  ;;  %v3006_v12 = vld [vmem:[%s7020_s3 + $0x30] sm:$0xff] }
 0x2c5   : > { %2206 = vrot.lane.b32.xlu2 %v4938_v45, %s4353_s30  ;;  %2480 = vrot.lane.b32.xlu0 %v4886_v30, %s4351_s28  ;;  %v3007_v45 = vld [vmem:[%s7020_s3 + $0x38] sm:$0xff] }
 0x2c6   : > { %v5536_v52 = vpop.permute.xlu1 %1613  ;;  %3166 = vmatpush.msra.mxu1 %v3007_v45  ;;  %4169 = vmatpush.msrb.mxu3 %v3007_v45  ;;  %v3002_v45 = vld [vmem:[%s7020_s3 + $0x10] sm:$0xff] }
 0x2c7   : > { %v5538_v1 = vpop.permute.xlu0 %1926 }
 0x2c8   : > { %3167 = vmatpush.msra.mxu1 %v3006_v12  ;;  %4170 = vmatpush.msrb.mxu3 %v3006_v12  ;;  %v3001_v12 = vld [vmem:[%s7020_s3 + $0x8] sm:$0xff] }
 0x2ca   : > { %3168 = vmatpush.msra.mxu1 %v3005_v24  ;;  %4171 = vmatpush.msrb.mxu3 %v3005_v24 }
 0x2cc   : > { %2186 = vrot.lane.b32.xlu1 %v4903_v34, %s4353_s30  ;;  %v3003_v34 = vld [vmem:[%s7020_s3 + $0x18] sm:$0xff] }
 0x2cd   : > { %2061 = vrot.lane.b32.xlu2 %v5075_v22, %s4350_s23  ;;  %2335 = vrot.lane.b32.xlu0 %v4225_v17, %s4352_s29  ;;  %v3004_v22 = vld [vmem:[%s7020_s3 + $0x20] sm:$0xff]  ;;  %v5569_v17 = vpop.permute.xlu2 %2188 }
 0x2ce   : > { %v5559_v54 = vpop.permute.xlu1 %1799  ;;  %3169 = vmatpush.msra.mxu1 %v3004_v22  ;;  %4172 = vmatpush.msrb.mxu3 %v3004_v22  ;;  %v3000_v22 = vld [vmem:[%s7020_s3] sm:$0xff] }
 0x2cf   : > { %7238 = vst [vmem:[#allocation180_spill] sm:$0xff] %v5559_v54  ;;  %v5561_v41 = vpop.permute.xlu0 %1932 }
 0x2d0   : > { %3170 = vmatpush.msra.mxu1 %v3003_v34  ;;  %4173 = vmatpush.msrb.mxu3 %v3003_v34 }
 0x2d2   : > { %3171 = vmatpush.msra.mxu1 %v3002_v45  ;;  %4174 = vmatpush.msrb.mxu3 %v3002_v45 }
 0x2d4   : > { %2041 = vrot.lane.b32.xlu1 %v4755_v3, %s4350_s23  ;;  %3172 = vmatpush.msra.mxu1 %v3001_v12 }
 0x2d5   : > { %2502 = vrot.lane.b32.xlu2 %v5143_v63, %s4351_s28  ;;  %2190 = vrot.lane.b32.xlu0 %v4919_v21, %s4353_s30  ;;  %v5590_v3 = vpop.permute.xlu2 %2043 }
 0x2d6   : > { %v5583_v24 = vpop.permute.xlu1 %1928  ;;  %3173 = vmatpush.msra.mxu1 %v3000_v22  ;;  %4175 = vmatpush.msrb.mxu3 %v3001_v12 }
 0x2d7   : > { %v5585_v54 = vpop.permute.xlu0 %1938 }
 0x2d8   : > { %4176 = vmatpush.msrb.mxu3 %v3000_v22  ;;  %v4226_v22 = vld [vmem:[#allocation2 + $0x90] sm:$0xff] }
 0x2dc   : > { %2482 = vrot.lane.b32.xlu1 %v4811_v36, %s4351_s28 }
 0x2dd   : > { %2357 = vrot.lane.b32.xlu2 %v5138_v35, %s4352_s29  ;;  %2045 = vrot.lane.b32.xlu0 %v4886_v30, %s4350_s23  ;;  %v5608_v35 = vpop.permute.xlu2 %2484  ;;  %v1137_v30 = vld [vmem:[#allocation2 + $0x7] sm:$0xff] }
 0x2de   : > { %v5598_v21 = vpop.permute.xlu1 %1934 }
 0x2df   : > { %v5600_v34 = vpop.permute.xlu0 %1944 }
 0x2e0   : > { %7239 = vst [vmem:[#allocation181_spill] sm:$0xff] %v5600_v34 }
 0x2e4   : > { %2337 = vrot.lane.b32.xlu1 %v4901_v8, %s4352_s29  ;;  %v2610_v8 = vsel %vm1080_vm0, %v1137_v30, %v4693_v14  ;;  %v1138_v14 = vld [vmem:[#allocation2 + $0xf] sm:$0xff] }
 0x2e5   : > { %2212 = vrot.lane.b32.xlu2 %v4989_v50, %s4353_s30  ;;  %2486 = vrot.lane.b32.xlu0 %v4955_v0, %s4351_s28  ;;  %v5621_v42 = vpop.permute.xlu2 %2339 }
 0x2e6   : > { %v5610_v45 = vpop.permute.xlu1 %1940 }
 0x2e7   : > { %7240 = vst [vmem:[#allocation182_spill] sm:$0xff] %v5610_v45  ;;  %v2173_v12 = vpop.permute.xlu0 %2172  ;;  %v2659_v45 = vsel %vm2658_vm2, %v2610_v8, %v4737_v47 }
 0x2ec   : > { %2192 = vrot.lane.b32.xlu1 %v4972_v2, %s4353_s30  ;;  %v2708_v2 = vsel %vm2707_vm3, %v2659_v45, %v4809_v25 }
 0x2ed   : > { %2067 = vrot.lane.b32.xlu2 %v5143_v63, %s4350_s23  ;;  %2341 = vrot.lane.b32.xlu0 %v4226_v22, %s4352_s29  ;;  %v2756_v63 = vsel %vm366_vm1, %v2708_v2, %v4828_v37  ;;  %v2611_v22 = vsel %vm1080_vm0, %v1138_v14, %v4715_v31  ;;  %v1139_v2 = vld [vmem:[#allocation2 + $0x17] sm:$0xff]  ;;  %v7241_v14 = vld [vmem:[#allocation20_spill] sm:$0xff] }
 0x2ee   : > { %v5617_v50 = vpop.permute.xlu1 %1946  ;;  %v2805_v47 = vsel %vm2804_vm4, %v2756_v63, %v5403_v20  ;;  %v5644_v20 = vpop.permute.xlu2 %2194 }
 0x2ef   : > { %v2028_v34 = vpop.permute.xlu0 %2027  ;;  %v2854_v25 = vsel %vm2853_vm5, %v2805_v47, %v2173_v12  ;;  %v7244_v47 = vld [vmem:[#allocation21_spill] sm:$0xff] }
 0x2f4   : > { %2047 = vrot.lane.b32.xlu1 %v4811_v36, %s4350_s23 }
 0x2f5   : > { %2508 = vrot.lane.b32.xlu2 %v5208_v40, %s4351_s28  ;;  %2196 = vrot.lane.b32.xlu0 %v4986_v44, %s4353_s30  ;;  %v2660_v44 = vsel %vm2658_vm2, %v2611_v22, %v4747_v60  ;;  %v7247_v22 = vld [vmem:[#allocation61_spill] sm:$0xff] }
 0x2f6   : > { %v2320_v45 = vpop.permute.xlu1 %2319  ;;  %v2709_v12 = vsel %vm2707_vm3, %v2660_v44, %v4859_v51 }
 0x2f7   : > { %v2903_v37 = vsel %vm2902_vm6, %v2854_v25, %v2320_v45  ;;  %v2469_v30 = vpop.permute.xlu0 %2468  ;;  %v2757_v31 = vsel %vm366_vm1, %v2709_v12, %v4878_v27  ;;  %v5666_v27 = vpop.permute.xlu2 %2049  ;;  %v7246_v45 = vld [vmem:[#allocation25_spill] sm:$0xff] }
 0x2f8   : > { %v2952_v36 = vsel %vm2951_vm7, %v2903_v37, %v5414_v33  ;;  %v2806_v33 = vsel %vm2804_vm4, %v2757_v31, %v2028_v34  ;;  %v7243_v34 = vld [vmem:[#allocation57_spill] sm:$0xff] }
 0x2f9   : > { %4018 = vmatmul.msk.f32.vlgmr.msra.gmra.mxu1 %vm3013_vm8, %v2952_v36 }
 0x2fc   : > { %2488 = vrot.lane.b32.xlu1 %v4863_v7, %s4351_s28  ;;  %v2612_v7 = vsel %vm1080_vm0, %v1139_v2, %v7241_v14 }
 0x2fd   : > { %2363 = vrot.lane.b32.xlu2 %v5200_v28, %s4352_s29  ;;  %2051 = vrot.lane.b32.xlu0 %v4955_v0, %s4350_s23  ;;  %v7242_v0 = vld [vmem:[#allocation71_spill] sm:$0xff]  ;;  %v2661_v25 = vsel %vm2658_vm2, %v2612_v7, %v7244_v47  ;;  %v7249_v7 = vld [vmem:[#allocation33_spill] sm:$0xff]  ;;  %v7251_v47 = vld [vmem:[#allocation50_spill] sm:$0xff] }
 0x2fe   : > { %v2175_v8 = vpop.permute.xlu1 %2174  ;;  %v2710_v37 = vsel %vm2707_vm3, %v2661_v25, %v7246_v45  ;;  %v7252_v45 = vld [vmem:[#allocation98_spill] sm:$0xff] }
 0x2ff   : > { %v2855_v60 = vsel %vm2853_vm5, %v2806_v33, %v2175_v8  ;;  %v2324_v63 = vpop.permute.xlu0 %2323  ;;  %v2758_v36 = vsel %vm366_vm1, %v2710_v37, %v7247_v22  ;;  %v7248_v33 = vld [vmem:[#allocation72_spill] sm:$0xff]  ;;  %v5688_v2 = vpop.permute.xlu2 %2490 }
 0x300   : > { %v2904_v51 = vsel %vm2902_vm6, %v2855_v60, %v5429_v6  ;;  %v7245_v6 = vld [vmem:[#allocation67_spill] sm:$0xff]  ;;  %v4227_v8 = vld [vmem:[#allocation2 + $0xa8] sm:$0xff] }
 0x301   : > { %v2953_v28 = vsel %vm2951_vm7, %v2904_v51, %v2469_v30  ;;  %v7253_v22 = vld [vmem:[#allocation76_spill] sm:$0xff] }
 0x302   : > { %4019 = vmatmul.msk.f32.gmra.mxu1 %vm3013_vm8, %v2953_v28 }
 0x304   : > { %2343 = vrot.lane.b32.xlu1 %v7243_v34, %s4352_s29 }
 0x305   : > { %2218 = vrot.lane.b32.xlu2 %v7242_v0, %s4353_s30  ;;  %2492 = vrot.lane.b32.xlu0 %v7245_v6, %s4351_s28  ;;  %v7250_v0 = vld [vmem:[#allocation36_spill] sm:$0xff] }
 0x306   : > { %v2030_v30 = vpop.permute.xlu1 %2029 }
 0x307   : > { %v2179_v44 = vpop.permute.xlu0 %2178  ;;  %v2807_v12 = vsel %vm2804_vm4, %v2758_v36, %v2030_v30 }
 0x308   : > { %v2856_v31 = vsel %vm2853_vm5, %v2807_v12, %v5439_v19  ;;  %v4228_v19 = vld [vmem:[#allocation2 + $0x1f] sm:$0xff] }
 0x309   : > { %v2905_v51 = vsel %vm2902_vm6, %v2856_v31, %v2324_v63  ;;  %v4229_v63 = vld [vmem:[#allocation2 + $0x91] sm:$0xff] }
 0x30c   : > { %2198 = vrot.lane.b32.xlu1 %v7248_v33, %s4353_s30 }
 0x30d   : > { %2073 = vrot.lane.b32.xlu2 %v5208_v40, %s4350_s23  ;;  %2347 = vrot.lane.b32.xlu0 %v4227_v8, %s4352_s29  ;;  %v2613_v40 = vsel %vm1080_vm0, %v4228_v19, %v7249_v7  ;;  %v5710_v8 = vpop.permute.xlu2 %2345  ;;  %v7255_v19 = vld [vmem:[#allocation35_spill] sm:$0xff] }
 0x30e   : > { %v2471_v60 = vpop.permute.xlu1 %2470  ;;  %v2662_v34 = vsel %vm2658_vm2, %v2613_v40, %v7250_v0  ;;  %v7256_v40 = vld [vmem:[#allocation59_spill] sm:$0xff] }
 0x30f   : > { %v2034_v28 = vpop.permute.xlu0 %2033  ;;  %v2954_v14 = vsel %vm2951_vm7, %v2905_v51, %v2471_v60  ;;  %v2711_v25 = vsel %vm2707_vm3, %v2662_v34, %v7251_v47  ;;  %v4230_v51 = vld [vmem:[#allocation2 + $0x27] sm:$0xff]  ;;  %v7258_v34 = vld [vmem:[#allocation105_spill] sm:$0xff] }
 0x310   : > { %4020 = vmatmul.msk.f32.gmra.mxu1 %vm3013_vm8, %v2954_v14  ;;  %v2759_v37 = vsel %vm366_vm1, %v2711_v25, %v7252_v45  ;;  %v7254_v14 = vld [vmem:[#allocation23_spill] sm:$0xff] }
 0x311   : > { %v2808_v30 = vsel %vm2804_vm4, %v2759_v37, %v5451_v18  ;;  %v2614_v18 = vsel %vm1080_vm0, %v4230_v51, %v7254_v14  ;;  %v7257_v0 = vld [vmem:[#allocation47_spill] sm:$0xff]  ;;  %v7264_v14 = vld [vmem:[#allocation73_spill] sm:$0xff] }
 0x312   : > { %v2857_v36 = vsel %vm2853_vm5, %v2808_v30, %v2179_v44  ;;  %v2663_v7 = vsel %vm2658_vm2, %v2614_v18, %v7255_v19 }
 0x313   : > { %v2712_v44 = vsel %vm2707_vm3, %v2663_v7, %v7256_v40 }
 0x314   : > { %2053 = vrot.lane.b32.xlu1 %v4229_v63, %s4350_s23 }
 0x315   : > { %2514 = vrot.lane.b32.xlu2 %v5269_v9, %s4351_s28  ;;  %2202 = vrot.lane.b32.xlu0 %v7253_v22, %s4353_s30  ;;  %v5734_v30 = vpop.permute.xlu2 %2200  ;;  %v4231_v22 = vld [vmem:[#allocation2 + $0x2f] sm:$0xff] }
 0x316   : > { %v2326_v12 = vpop.permute.xlu1 %2325 }
 0x317   : > { %v2906_v31 = vsel %vm2902_vm6, %v2857_v36, %v2326_v12  ;;  %v2475_v33 = vpop.permute.xlu0 %2474  ;;  %v7259_v36 = vld [vmem:[#allocation3_spill] sm:$0xff] }
 0x318   : > { %v2955_v60 = vsel %vm2951_vm7, %v2906_v31, %v5467_v5  ;;  %v2760_v5 = vsel %vm366_vm1, %v2712_v44, %v7258_v34  ;;  %v2615_v12 = vsel %vm1080_vm0, %v4231_v22, %v7259_v36  ;;  %v7265_v44 = vld [vmem:[#allocation89_spill] sm:$0xff]  ;;  %v7269_v22 = vld [vmem:[#allocation70_spill] sm:$0xff] }
 0x319   : > { %4021 = vmatmul.msk.f32.gmra.mxu1 %vm3013_vm8, %v2955_v60  ;;  %v2809_v47 = vsel %vm2804_vm4, %v2760_v5, %v2034_v28  ;;  %v7261_v28 = vld [vmem:[#allocation32_spill] sm:$0xff] }
 0x31a   : > { %v2664_v31 = vsel %vm2658_vm2, %v2615_v12, %v7261_v28  ;;  %v7270_v12 = vld [vmem:[#allocation115_spill] sm:$0xff]  ;;  %v5773_v28 = vld [vmem:[#allocation2 + $0x149] sm:$0xff] }
 0x31c   : > { %2494 = vrot.lane.b32.xlu1 %v7257_v0, %s4351_s28  ;;  %v7266_v0 = vld [vmem:[#allocation90_spill] sm:$0xff] }
 0x31d   : > { %2369 = vrot.lane.b32.xlu2 %v5263_v13, %s4352_s29  ;;  %2057 = vrot.lane.b32.xlu0 %v7245_v6, %s4350_s23  ;;  %v7260_v6 = vld [vmem:[#allocation83_spill] sm:$0xff] }
 0x31e   : > { %v2181_v25 = vpop.permute.xlu1 %2180 }
 0x31f   : > { %v2858_v45 = vsel %vm2853_vm5, %v2809_v47, %v2181_v25  ;;  %v2330_v37 = vpop.permute.xlu0 %2329 }
 0x320   : > { %v2907_v63 = vsel %vm2902_vm6, %v2858_v45, %v5483_v39  ;;  %v7262_v39 = vld [vmem:[#allocation84_spill] sm:$0xff]  ;;  %v7267_v45 = vld [vmem:[#allocation46_spill] sm:$0xff] }
 0x321   : > { %v2956_v13 = vsel %vm2951_vm7, %v2907_v63, %v2475_v33  ;;  %v7263_v33 = vld [vmem:[#allocation34_spill] sm:$0xff] }
 0x322   : > { %4022 = vmatmul.msk.f32.gmra.mxu1 %vm3013_vm8, %v2956_v13  ;;  %v2713_v60 = vsel %vm2707_vm3, %v2664_v31, %v7263_v33  ;;  %v7268_v13 = vld [vmem:[#allocation53_spill] sm:$0xff]  ;;  %v7271_v33 = vld [vmem:[#allocation95_spill] sm:$0xff] }
 0x323   : > { %v2761_v18 = vsel %vm366_vm1, %v2713_v60, %v7264_v14 }
 0x324   : > { %2349 = vrot.lane.b32.xlu1 %v5035_v29, %s4352_s29  ;;  %v5754_v29 = vpop.permute.xlu2 %2055 }
 0x325   : > { %2224 = vrot.lane.b32.xlu2 %v7260_v6, %s4353_s30  ;;  %2498 = vrot.lane.b32.xlu0 %v7262_v39, %s4351_s28 }
 0x326   : > { %v2036_v51 = vpop.permute.xlu1 %2035 }
 0x327   : > { %v2185_v19 = vpop.permute.xlu0 %2184  ;;  %v2810_v7 = vsel %vm2804_vm4, %v2761_v18, %v2036_v51 }
 0x328   : > { %v2859_v40 = vsel %vm2853_vm5, %v2810_v7, %v5495_v32  ;;  %v4232_v32 = vld [vmem:[#allocation2 + $0x37] sm:$0xff] }
 0x329   : > { %v2908_v5 = vsel %vm2902_vm6, %v2859_v40, %v2330_v37  ;;  %v2616_v63 = vsel %vm1080_vm0, %v4232_v32, %v7267_v45  ;;  %v4234_v37 = vld [vmem:[#allocation2 + $0xa9] sm:$0xff]  ;;  %v4236_v45 = vld [vmem:[#allocation2 + $0xc1] sm:$0xff] }
 0x32c   : > { %2204 = vrot.lane.b32.xlu1 %v7265_v44, %s4353_s30  ;;  %v5782_v60 = vpop.permute.xlu2 %2496  ;;  %v4235_v44 = vld [vmem:[#allocation2 + $0x3f] sm:$0xff] }
 0x32d   : > { %2079 = vrot.lane.b32.xlu2 %v5269_v9, %s4350_s23  ;;  %2353 = vrot.lane.b32.xlu0 %v7266_v0, %s4352_s29  ;;  %v2665_v9 = vsel %vm2658_vm2, %v2616_v63, %v7268_v13  ;;  %v7272_v0 = vld [vmem:[#allocation52_spill] sm:$0xff]  ;;  %v7276_v63 = vld [vmem:[#allocation123_spill] sm:$0xff] }
 0x32e   : > { %v2477_v34 = vpop.permute.xlu1 %2476  ;;  %v2714_v36 = vsel %vm2707_vm3, %v2665_v9, %v7269_v22 }
 0x32f   : > { %v2040_v47 = vpop.permute.xlu0 %2039  ;;  %v2957_v25 = vsel %vm2951_vm7, %v2908_v5, %v2477_v34  ;;  %v2762_v6 = vsel %vm366_vm1, %v2714_v36, %v7270_v12  ;;  %v7273_v34 = vld [vmem:[#allocation55_spill] sm:$0xff] }
 0x330   : > { %4023 = vmatmul.msk.f32.gmra.mxu1 %vm3013_vm8, %v2957_v25  ;;  %v2811_v31 = vsel %vm2804_vm4, %v2762_v6, %v5506_v53  ;;  %v2617_v53 = vsel %vm1080_vm0, %v4235_v44, %v7272_v0  ;;  %v7274_v25 = vld [vmem:[#allocation81_spill] sm:$0xff] }
 0x331   : > { %v2860_v51 = vsel %vm2853_vm5, %v2811_v31, %v2185_v19  ;;  %v2666_v5 = vsel %vm2658_vm2, %v2617_v53, %v7273_v34  ;;  %v7275_v19 = vld [vmem:[#allocation148_spill] sm:$0xff]  ;;  %v7283_v0 = vld [vmem:[#allocation85_spill] sm:$0xff] }
 0x332   : > { %v2715_v32 = vsel %vm2707_vm3, %v2666_v5, %v7274_v25  ;;  %v4237_v31 = vld [vmem:[#allocation2 + $0x47] sm:$0xff] }
 0x334   : > { %2059 = vrot.lane.b32.xlu1 %v4234_v37, %s4350_s23  ;;  %v5804_v12 = vpop.permute.xlu2 %2351 }
 0x335   : > { %2099 = vrot.lane.b32.xlu2 %v5773_v28, %s4350_s23  ;;  %2208 = vrot.lane.b32.xlu0 %v7271_v33, %s4353_s30  ;;  %v7277_v33 = vld [vmem:[#allocation4_spill] sm:$0xff] }
 0x336   : > { %v2332_v14 = vpop.permute.xlu1 %2331 }
 0x337   : > { %v2909_v18 = vsel %vm2902_vm6, %v2860_v51, %v2332_v14  ;;  %v2481_v7 = vpop.permute.xlu0 %2480  ;;  %v2618_v51 = vsel %vm1080_vm0, %v4237_v31, %v7277_v33  ;;  %v7280_v14 = vld [vmem:[#allocation41_spill] sm:$0xff]  ;;  %v7286_v33 = vld [vmem:[#allocation66_spill] sm:$0xff] }
 0x338   : > { %v2958_v40 = vsel %vm2951_vm7, %v2909_v18, %v5524_v61  ;;  %v2763_v61 = vsel %vm366_vm1, %v2715_v32, %v7276_v63  ;;  %v2667_v18 = vsel %vm2658_vm2, %v2618_v51, %v7280_v14  ;;  %v4238_v63 = vld [vmem:[#allocation2 + $0x151] sm:$0xff]  ;;  %v7287_v51 = vld [vmem:[#allocation75_spill] sm:$0xff] }
 0x339   : > { %4024 = vmatmul.msk.f32.gmra.mxu1 %vm3013_vm8, %v2958_v40  ;;  %v2812_v13 = vsel %vm2804_vm4, %v2763_v61, %v2040_v47  ;;  %v7279_v47 = vld [vmem:[#allocation88_spill] sm:$0xff]  ;;  %v7281_v40 = vld [vmem:[#allocation102_spill] sm:$0xff]  ;;  %v7288_v14 = vld [vmem:[#allocation87_spill] sm:$0xff] }
 0x33a   : > { %v7284_v61 = vld [vmem:[#allocation108_spill] sm:$0xff] }
 0x33b   : > { %v4239_v31 = vld [vmem:[#allocation2 + $0x4f] sm:$0xff] }
 0x33c   : > { %2500 = vrot.lane.b32.xlu1 %v4236_v45, %s4351_s28  ;;  %v5825_v25 = vpop.permute.xlu2 %2206 }
 0x33d   : > { %2520 = vrot.lane.b32.xlu2 %v7275_v19, %s4351_s28  ;;  %2063 = vrot.lane.b32.xlu0 %v7262_v39, %s4350_s23  ;;  %v7278_v39 = vld [vmem:[#allocation136_spill] sm:$0xff] }
 0x33e   : > { %v2187_v9 = vpop.permute.xlu1 %2186 }
 0x33f   : > { %v2861_v22 = vsel %vm2853_vm5, %v2812_v13, %v2187_v9  ;;  %v2336_v36 = vpop.permute.xlu0 %2335  ;;  %v7285_v13 = vld [vmem:[#allocation103_spill] sm:$0xff] }
 0x340   : > { %v2910_v6 = vsel %vm2902_vm6, %v2861_v22, %v5540_v46  ;;  %v7282_v46 = vld [vmem:[#allocation44_spill] sm:$0xff] }
 0x341   : > { %v2959_v37 = vsel %vm2951_vm7, %v2910_v6, %v2481_v7  ;;  %v2716_v7 = vsel %vm2707_vm3, %v2667_v18, %v7282_v46  ;;  %v7289_v46 = vld [vmem:[#allocation132_spill] sm:$0xff] }
 0x342   : > { %4025 = vmatmul.msk.f32.gmra.mxu1 %vm3013_vm8, %v2959_v37  ;;  %v2764_v53 = vsel %vm366_vm1, %v2716_v7, %v7283_v0 }
 0x344   : > { %2355 = vrot.lane.b32.xlu1 %v7279_v47, %s4352_s29 }
 0x345   : > { %2081 = vrot.lane.b32.xlu2 %v7278_v39, %s4350_s23  ;;  %2504 = vrot.lane.b32.xlu0 %v7281_v40, %s4351_s28 }
 0x346   : > { %v2042_v44 = vpop.permute.xlu1 %2041 }
 0x347   : > { %v2191_v34 = vpop.permute.xlu0 %2190  ;;  %v2813_v5 = vsel %vm2804_vm4, %v2764_v53, %v2042_v44  ;;  %v5845_v44 = vpop.permute.xlu2 %2061  ;;  %v7291_v53 = vld [vmem:[#allocation112_spill] sm:$0xff] }
 0x348   : > { %v2862_v32 = vsel %vm2853_vm5, %v2813_v5, %v5569_v17  ;;  %v2619_v17 = vsel %vm1080_vm0, %v4239_v31, %v7286_v33  ;;  %v7294_v31 = vld [vmem:[#allocation100_spill] sm:$0xff] }
 0x349   : > { %v2911_v22 = vsel %vm2902_vm6, %v2862_v32, %v2336_v36  ;;  %v2668_v47 = vsel %vm2658_vm2, %v2619_v17, %v7287_v51  ;;  %v7290_v36 = vld [vmem:[#allocation152_spill] sm:$0xff]  ;;  %v4241_v17 = vld [vmem:[#allocation2 + $0xd9] sm:$0xff] }
 0x34a   : > { %v2717_v18 = vsel %vm2707_vm3, %v2668_v47, %v7288_v14  ;;  %v7296_v51 = vld [vmem:[#allocation138_spill] sm:$0xff] }
 0x34b   : > { %v2765_v7 = vsel %vm366_vm1, %v2717_v18, %v7289_v46 }
 0x34c   : > { %2210 = vrot.lane.b32.xlu1 %v7284_v61, %s4353_s30  ;;  %v2814_v0 = vsel %vm2804_vm4, %v2765_v7, %v5590_v3  ;;  %v3367_v3 = vld [vmem:[%s7022_s5] sm:$0xff] }
 0x34d   : > { %2101 = vrot.lane.b32.xlu2 %v4238_v63, %s4350_s23  ;;  %2359 = vrot.lane.b32.xlu0 %v7285_v13, %s4352_s29  ;;  %v2863_v5 = vsel %vm2853_vm5, %v2814_v0, %v2191_v34 }
 0x34e   : > { %v2483_v9 = vpop.permute.xlu1 %2482  ;;  %3581 = vmatpush.msra.mxu2 %v3367_v3  ;;  %4177 = vmatpush.msra.mxu3 %v3367_v3  ;;  %v7301_v3 = vld [vmem:[#allocation99_spill] sm:$0xff] }
 0x34f   : > { %v2046_v6 = vpop.permute.xlu0 %2045  ;;  %v2960_v37 = vsel %vm2951_vm7, %v2911_v22, %v2483_v9  ;;  %v4240_v9 = vld [vmem:[#allocation2 + $0x57] sm:$0xff]  ;;  %v5875_v14 = vpop.permute.xlu2 %2502 }
 0x350   : > { %4026 = vmatmul.msk.f32.gmra.mxu1 %vm3013_vm8, %v2960_v37  ;;  %v7292_v22 = vld [vmem:[#allocation74_spill] sm:$0xff] }
 0x351   : > { %v7293_v37 = vld [vmem:[#allocation78_spill] sm:$0xff] }
 0x354   : > { %2065 = vrot.lane.b32.xlu1 %v4236_v45, %s4350_s23  ;;  %v2620_v45 = vsel %vm1080_vm0, %v4240_v9, %v7292_v22  ;;  %v7299_v22 = vld [vmem:[#allocation120_spill] sm:$0xff] }
 0x355   : > { %2522 = vrot.lane.b32.xlu2 %v7290_v36, %s4351_s28  ;;  %2214 = vrot.lane.b32.xlu0 %v7291_v53, %s4353_s30  ;;  %v2669_v34 = vsel %vm2658_vm2, %v2620_v45, %v7293_v37 }
 0x356   : > { %v2338_v32 = vpop.permute.xlu1 %2337  ;;  %v2718_v33 = vsel %vm2707_vm3, %v2669_v34, %v7294_v31 }
 0x357   : > { %v2912_v63 = vsel %vm2902_vm6, %v2863_v5, %v2338_v32  ;;  %v2487_v61 = vpop.permute.xlu0 %2486  ;;  %v2766_v47 = vsel %vm366_vm1, %v2718_v33, %v7296_v51  ;;  %v4242_v32 = vld [vmem:[#allocation2 + $0x5f] sm:$0xff]  ;;  %v5896_v31 = vpop.permute.xlu2 %2357  ;;  %v7303_v51 = vld [vmem:[#allocation125_spill] sm:$0xff] }
 0x358   : > { %v2961_v13 = vsel %vm2951_vm7, %v2912_v63, %v5608_v35  ;;  %v7295_v35 = vld [vmem:[#allocation94_spill] sm:$0xff]  ;;  %v2815_v18 = vsel %vm2804_vm4, %v2766_v47, %v2046_v6  ;;  %v7297_v63 = vld [vmem:[#allocation5_spill] sm:$0xff]  ;;  %v7304_v47 = vld [vmem:[#allocation116_spill] sm:$0xff] }
 0x359   : > { %4027 = vmatmul.msk.f32.gmra.mxu1 %vm3013_vm8, %v2961_v13  ;;  %v2621_v13 = vsel %vm1080_vm0, %v4242_v32, %v7297_v63  ;;  %v7298_v6 = vld [vmem:[#allocation54_spill] sm:$0xff]  ;;  %v7306_v63 = vld [vmem:[#allocation93_spill] sm:$0xff] }
 0x35a   : > { %v2670_v9 = vsel %vm2658_vm2, %v2621_v13, %v7298_v6  ;;  %v7305_v32 = vld [vmem:[#allocation82_spill] sm:$0xff] }
 0x35b   : > { %v7307_v6 = vld [vmem:[#allocation106_spill] sm:$0xff] }
 0x35c   : > { %2506 = vrot.lane.b32.xlu1 %v4241_v17, %s4351_s28 }
 0x35d   : > { %2083 = vrot.lane.b32.xlu2 %v7295_v35, %s4350_s23  ;;  %2069 = vrot.lane.b32.xlu0 %v7281_v40, %s4350_s23  ;;  %v4243_v40 = vld [vmem:[#allocation2 + $0x159] sm:$0xff] }
 0x35e   : > { %v2193_v46 = vpop.permute.xlu1 %2192  ;;  %v7302_v35 = vld [vmem:[#allocation107_spill] sm:$0xff] }
 0x35f   : > { %v2864_v7 = vsel %vm2853_vm5, %v2815_v18, %v2193_v46  ;;  %v2342_v0 = vpop.permute.xlu0 %2341 }
 0x360   : > { %v2913_v53 = vsel %vm2902_vm6, %v2864_v7, %v5621_v42  ;;  %v7300_v42 = vld [vmem:[#allocation58_spill] sm:$0xff] }
 0x361   : > { %v2962_v5 = vsel %vm2951_vm7, %v2913_v53, %v2487_v61  ;;  %v2719_v61 = vsel %vm2707_vm3, %v2670_v9, %v7300_v42  ;;  %v7308_v42 = vld [vmem:[#allocation147_spill] sm:$0xff] }
 0x362   : > { %4028 = vmatmul.msk.f32.gmra.mxu1 %vm3013_vm8, %v2962_v5  ;;  %v2767_v37 = vsel %vm366_vm1, %v2719_v61, %v7301_v3  ;;  %v4244_v5 = vld [vmem:[#allocation2 + $0x67] sm:$0xff]  ;;  %v5926_v61 = vld [vmem:[%s7021_s4] ss:$0 sm:$0xff]  ;;  %v7309_v3 = vld [vmem:[#allocation129_spill] sm:$0xff] }
 0x364   : > { %2361 = vrot.lane.b32.xlu1 %v5171_v16, %s4352_s29 }
 0x365   : > { %2103 = vrot.lane.b32.xlu2 %v4243_v40, %s4350_s23  ;;  %2510 = vrot.lane.b32.xlu0 %v7299_v22, %s4351_s28  ;;  %v5914_v40 = vpop.permute.xlu2 %2212 }
 0x366   : > { %v2048_v45 = vpop.permute.xlu1 %2047 }
 0x367   : > { %v2197_v34 = vpop.permute.xlu0 %2196  ;;  %v2816_v33 = vsel %vm2804_vm4, %v2767_v37, %v2048_v45 }
 0x368   : > { %v2865_v16 = vsel %vm2853_vm5, %v2816_v33, %v5644_v20  ;;  %v2622_v20 = vsel %vm1080_vm0, %v4244_v5, %v7305_v32  ;;  %v7312_v5 = vld [vmem:[#allocation118_spill] sm:$0xff] }
 0x369   : > { %v2914_v46 = vsel %vm2902_vm6, %v2865_v16, %v2342_v0  ;;  %v2671_v13 = vsel %vm2658_vm2, %v2622_v20, %v7306_v63  ;;  %v5947_v63 = vld [vmem:[#allocation2 + $0x161] sm:$0xff] }
 0x36a   : > { %v2720_v9 = vsel %vm2707_vm3, %v2671_v13, %v7307_v6  ;;  %v4247_v13 = vld [vmem:[#allocation2 + $0xf1] sm:$0xff] }
 0x36b   : > { %v2768_v0 = vsel %vm366_vm1, %v2720_v9, %v7308_v42 }
 0x36c   : > { %2216 = vrot.lane.b32.xlu1 %v7303_v51, %s4353_s30  ;;  %v2817_v45 = vsel %vm2804_vm4, %v2768_v0, %v5666_v27 }
 0x36d   : > { %2524 = vrot.lane.b32.xlu2 %v7302_v35, %s4351_s28  ;;  %2365 = vrot.lane.b32.xlu0 %v7304_v47, %s4352_s29  ;;  %v2866_v37 = vsel %vm2853_vm5, %v2817_v45, %v2197_v34  ;;  %v4245_v47 = vld [vmem:[#allocation2 + $0x6f] sm:$0xff]  ;;  %v5944_v20 = vpop.permute.xlu2 %2067 }
 0x36e   : > { %v2489_v18 = vpop.permute.xlu1 %2488 }
 0x36f   : > { %v2052_v7 = vpop.permute.xlu0 %2051  ;;  %v2963_v53 = vsel %vm2951_vm7, %v2914_v46, %v2489_v18  ;;  %v7310_v18 = vld [vmem:[#allocation92_spill] sm:$0xff] }
 0x370   : > { %4029 = vmatmul.msk.f32.gmra.mxu1 %vm3013_vm8, %v2963_v53  ;;  %v2623_v27 = vsel %vm1080_vm0, %v4245_v47, %v7310_v18  ;;  %v7311_v53 = vld [vmem:[#allocation97_spill] sm:$0xff] }
 0x371   : > { %v2672_v34 = vsel %vm2658_vm2, %v2623_v27, %v7311_v53  ;;  %v7316_v18 = vld [vmem:[#allocation113_spill] sm:$0xff] }
 0x372   : > { %v2721_v32 = vsel %vm2707_vm3, %v2672_v34, %v7312_v5 }
 0x374   : > { %2071 = vrot.lane.b32.xlu1 %v4241_v17, %s4350_s23 }
 0x375   : > { %2085 = vrot.lane.b32.xlu2 %v7275_v19, %s4350_s23  ;;  %2220 = vrot.lane.b32.xlu0 %v7309_v3, %s4353_s30 }
 0x376   : > { %v2344_v33 = vpop.permute.xlu1 %2343  ;;  %v3175_v35 = vpop.f32.mrf.mxu1 }
 0x377   : > { %v2915_v16 = vsel %vm2902_vm6, %v2866_v37, %v2344_v33  ;;  %v2493_v19 = vpop.permute.xlu0 %2492  ;;  %v3176_v17 = vadd.f32 %v5926_v61, %v3175_v35  ;;  %v7313_v35 = vld [vmem:[#allocation6_spill] sm:$0xff] }
 0x378   : > { %v2964_v51 = vsel %vm2951_vm7, %v2915_v16, %v5688_v2  ;;  %v2769_v2 = vsel %vm366_vm1, %v2721_v32, %v5345_v49  ;;  %v4248_v16 = vld [vmem:[#allocation2 + $0x77] sm:$0xff] }
 0x379   : > { %4030 = vmatmul.msk.f32.gmra.mxu1 %vm3013_vm8, %v2964_v51  ;;  %v3319_v46 = vmax.f32 %v3176_v17, 0.0  ;;  %v2818_v6 = vsel %vm2804_vm4, %v2769_v2, %v2052_v7  ;;  %v7314_v7 = vld [vmem:[#allocation64_spill] sm:$0xff]  ;;  %v5976_v51 = vpop.permute.xlu2 %2508 }
 0x37b   : > { %4114 = vmatmul.msk.f32.vlgmr.msra.gmra.mxu2 %vm1080_vm0, %v3319_v46 }
 0x37c   : > { %2512 = vrot.lane.b32.xlu1 %v4247_v13, %s4351_s28 }
 0x37d   : > { %2105 = vrot.lane.b32.xlu2 %v5947_v63, %s4350_s23  ;;  %2075 = vrot.lane.b32.xlu0 %v7299_v22, %s4350_s23  ;;  %v2624_v22 = vsel %vm1080_vm0, %v4248_v16, %v7313_v35  ;;  %v7322_v16 = vld [vmem:[#allocation160_spill] sm:$0xff] }
 0x37e   : > { %v2199_v9 = vpop.permute.xlu1 %2198  ;;  %v2673_v17 = vsel %vm2658_vm2, %v2624_v22, %v7314_v7  ;;  %v6004_v22 = vld [vmem:[#allocation2 + $0x169] sm:$0xff] }
 0x37f   : > { %v2867_v42 = vsel %vm2853_vm5, %v2818_v6, %v2199_v9  ;;  %v2348_v0 = vpop.permute.xlu0 %2347  ;;  %v3178_v45 = vpop.f32.mrf.mxu1 }
 0x380   : > { %v3179_v3 = vadd.f32 %v5926_v61, %v3178_v45  ;;  %v2916_v37 = vsel %vm2902_vm6, %v2867_v42, %v5710_v8  ;;  %v7315_v8 = vld [vmem:[#allocation68_spill] sm:$0xff]  ;;  %v7319_v45 = vld [vmem:[#allocation101_spill] sm:$0xff] }
 0x381   : > { %v2965_v49 = vsel %vm2951_vm7, %v2916_v37, %v2493_v19  ;;  %v2722_v19 = vsel %vm2707_vm3, %v2673_v17, %v7315_v8  ;;  %v5992_v42 = vpop.permute.xlu2 %2363  ;;  %v7320_v37 = vld [vmem:[#allocation111_spill] sm:$0xff]  ;;  %v6011_v17 = vld [vmem:[#allocation2 + $0x148] sm:$0xff] }
 0x382   : > { %v3320_v33 = vmax.f32 %v3179_v3, 0.0  ;;  %4031 = vmatmul.msk.f32.gmra.mxu1 %vm3013_vm8, %v2965_v49 }
 0x384   : > { %4115 = vmatmul.msk.f32.gmra.mxu2 %vm1080_vm0, %v3320_v33  ;;  %2367 = vrot.lane.b32.xlu1 %v5234_v58, %s4352_s29  ;;  %v7317_v58 = vld [vmem:[#allocation140_spill] sm:$0xff] }
 0x385   : > { %2526 = vrot.lane.b32.xlu2 %v5362_v23, %s4351_s28  ;;  %2516 = vrot.lane.b32.xlu0 %v7278_v39, %s4351_s28  ;;  %v2770_v23 = vsel %vm366_vm1, %v2722_v19, %v7316_v18  ;;  %v7318_v39 = vld [vmem:[#allocation121_spill] sm:$0xff]  ;;  %v7321_v33 = vld [vmem:[#allocation124_spill] sm:$0xff] }
 0x386   : > { %v2054_v47 = vpop.permute.xlu1 %2053 }
 0x387   : > { %v2203_v27 = vpop.permute.xlu0 %2202  ;;  %v2819_v46 = vsel %vm2804_vm4, %v2770_v23, %v2054_v47 }
 0x388   : > { %v2868_v53 = vsel %vm2853_vm5, %v2819_v46, %v5734_v30 }
 0x389   : > { %v2917_v2 = vsel %vm2902_vm6, %v2868_v53, %v2348_v0 }
 0x38c   : > { %2222 = vrot.lane.b32.xlu1 %v7317_v58, %s4353_s30 }
 0x38d   : > { %2087 = vrot.lane.b32.xlu2 %v7290_v36, %s4350_s23  ;;  %2371 = vrot.lane.b32.xlu0 %v7318_v39, %s4352_s29  ;;  %v3181_v34 = vpop.f32.mrf.mxu1  ;;  %v4249_v36 = vld [vmem:[#allocation2 + $0x7f] sm:$0xff]  ;;  %v6023_v39 = vpop.permute.xlu2 %2218 }
 0x38e   : > { %v3182_v5 = vadd.f32 %v5926_v61, %v3181_v34  ;;  %v2495_v32 = vpop.permute.xlu1 %2494  ;;  %v2625_v3 = vsel %vm1080_vm0, %v4249_v36, %v7319_v45 }
 0x38f   : > { %v2058_v6 = vpop.permute.xlu0 %2057  ;;  %v2966_v9 = vsel %vm2951_vm7, %v2917_v2, %v2495_v32  ;;  %v2674_v49 = vsel %vm2658_vm2, %v2625_v3, %v7320_v37  ;;  %v7325_v32 = vld [vmem:[#allocation134_spill] sm:$0xff] }
 0x390   : > { %v3321_v30 = vmax.f32 %v3182_v5, 0.0  ;;  %4032 = vmatmul.msk.f32.gmra.mxu1 %vm3013_vm8, %v2966_v9  ;;  %v2723_v0 = vsel %vm2707_vm3, %v2674_v49, %v7321_v33  ;;  %v7326_v9 = vld [vmem:[#allocation161_spill] sm:$0xff] }
 0x391   : > { %v2771_v35 = vsel %vm366_vm1, %v2723_v0, %v7322_v16 }
 0x392   : > { %4116 = vmatmul.msk.f32.gmra.mxu2 %vm1080_vm0, %v3321_v30  ;;  %v2820_v7 = vsel %vm2804_vm4, %v2771_v35, %v5754_v29  ;;  %v4252_v29 = vld [vmem:[#allocation2 + $0x87] sm:$0xff]  ;;  %v4254_v35 = vld [vmem:[#allocation2 + $0x8f] sm:$0xff] }
 0x393   : > { %v2869_v8 = vsel %vm2853_vm5, %v2820_v7, %v2203_v27  ;;  %v7324_v27 = vld [vmem:[#allocation114_spill] sm:$0xff]  ;;  %v4253_v30 = vld [vmem:[#allocation2 + $0x109] sm:$0xff]  ;;  %v7327_v7 = vld [vmem:[#allocation7_spill] sm:$0xff] }
 0x394   : > { %2077 = vrot.lane.b32.xlu1 %v4247_v13, %s4350_s23  ;;  %v7323_v13 = vld [vmem:[#allocation110_spill] sm:$0xff] }
 0x395   : > { %2107 = vrot.lane.b32.xlu2 %v6004_v22, %s4350_s23  ;;  %1952 = vrot.lane.b32.xlu0 %v6011_v17, %s4349_s22  ;;  %v2626_v58 = vsel %vm1080_vm0, %v4252_v29, %v7323_v13  ;;  %v7331_v29 = vld [vmem:[#allocation126_spill] sm:$0xff] }
 0x396   : > { %v2350_v19 = vpop.permute.xlu1 %2349  ;;  %v3184_v23 = vpop.f32.mrf.mxu1  ;;  %v2675_v5 = vsel %vm2658_vm2, %v2626_v58, %v7324_v27 }
 0x397   : > { %v2918_v47 = vsel %vm2902_vm6, %v2869_v8, %v2350_v19  ;;  %v2499_v18 = vpop.permute.xlu0 %2498  ;;  %v3185_v46 = vadd.f32 %v5926_v61, %v3184_v23  ;;  %v2724_v2 = vsel %vm2707_vm3, %v2675_v5, %v7325_v32  ;;  %v4255_v8 = vld [vmem:[#allocation2 + $0x121] sm:$0xff]  ;;  %v7328_v19 = vld [vmem:[#allocation77_spill] sm:$0xff] }
 0x398   : > { %v2967_v53 = vsel %vm2951_vm7, %v2918_v47, %v5782_v60  ;;  %v2772_v60 = vsel %vm366_vm1, %v2724_v2, %v5393_v56  ;;  %v7330_v23 = vld [vmem:[#allocation80_spill] sm:$0xff]  ;;  %v6065_v5 = vld [vmem:[#allocation2 + $0x171] sm:$0xff]  ;;  %v4258_v32 = vld [vmem:[#allocation2 + $0x15f] sm:$0xff] }
 0x399   : > { %4033 = vmatmul.msk.f32.gmra.mxu1 %vm3013_vm8, %v2967_v53  ;;  %v3322_v34 = vmax.f32 %v3185_v46, 0.0  ;;  %v2821_v36 = vsel %vm2804_vm4, %v2772_v60, %v2058_v6  ;;  %v6046_v6 = vpop.permute.xlu2 %2073  ;;  %v6070_v2 = vld [vmem:[#allocation2 + $0x150] sm:$0xff] }
 0x39b   : > { %4117 = vmatmul.msk.f32.gmra.mxu2 %vm1080_vm0, %v3322_v34 }
 0x39c   : > { %2518 = vrot.lane.b32.xlu1 %v4253_v30, %s4351_s28 }
 0x39d   : > { %2528 = vrot.lane.b32.xlu2 %v7326_v9, %s4351_s28  ;;  %2373 = vrot.lane.b32.xlu0 %v5293_v43, %s4352_s29  ;;  %v2627_v43 = vsel %vm1080_vm0, %v4254_v35, %v7327_v7  ;;  %v7334_v7 = vld [vmem:[#allocation139_spill] sm:$0xff] }
 0x39e   : > { %v2205_v45 = vpop.permute.xlu1 %2204  ;;  %v2676_v47 = vsel %vm2658_vm2, %v2627_v43, %v7328_v19 }
 0x39f   : > { %v2870_v3 = vsel %vm2853_vm5, %v2821_v36, %v2205_v45  ;;  %v2354_v37 = vpop.permute.xlu0 %2353  ;;  %v3187_v49 = vpop.f32.mrf.mxu1  ;;  %v2725_v46 = vsel %vm2707_vm3, %v2676_v47, %v7330_v23  ;;  %v4262_v47 = vld [vmem:[#allocation2 + $0x118] sm:$0xff] }
 0x3a0   : > { %v3188_v33 = vadd.f32 %v5926_v61, %v3187_v49  ;;  %v2919_v0 = vsel %vm2902_vm6, %v2870_v3, %v5804_v12  ;;  %v7329_v12 = vld [vmem:[#allocation144_spill] sm:$0xff]  ;;  %v2773_v13 = vsel %vm366_vm1, %v2725_v46, %v7331_v29 }
 0x3a1   : > { %v2968_v56 = vsel %vm2951_vm7, %v2919_v0, %v2499_v18  ;;  %v6054_v18 = vld [vmem:[#allocation2 + $0x160] sm:$0xff]  ;;  %v6074_v60 = vpop.permute.xlu2 %2514 }
 0x3a2   : > { %v3323_v16 = vmax.f32 %v3188_v33, 0.0  ;;  %4034 = vmatmul.msk.f32.gmra.mxu1 %vm3013_vm8, %v2968_v56  ;;  %v4260_v33 = vld [vmem:[#allocation2 + $0x97] sm:$0xff]  ;;  %v7332_v0 = vld [vmem:[#allocation119_spill] sm:$0xff] }
 0x3a3   : > { %v2628_v56 = vsel %vm1080_vm0, %v4260_v33, %v7332_v0 }
 0x3a4   : > { %4118 = vmatmul.msk.f32.gmra.mxu2 %vm1080_vm0, %v3323_v16  ;;  %2226 = vrot.lane.b32.xlu1 %v7329_v12, %s4353_s30  ;;  %v7333_v16 = vld [vmem:[#allocation128_spill] sm:$0xff] }
 0x3a5   : > { %2089 = vrot.lane.b32.xlu2 %v4255_v8, %s4350_s23  ;;  %2393 = vrot.lane.b32.xlu0 %v6054_v18, %s4352_s29  ;;  %v2677_v35 = vsel %vm2658_vm2, %v2628_v56, %v7333_v16  ;;  %v6089_v8 = vld [vmem:[#allocation2 + $0x139] sm:$0xff] }
 0x3a6   : > { %v2060_v53 = vpop.permute.xlu1 %2059  ;;  %v2726_v43 = vsel %vm2707_vm3, %v2677_v35, %v7334_v7 }
 0x3a7   : > { %v2209_v58 = vpop.permute.xlu0 %2208  ;;  %v2822_v34 = vsel %vm2804_vm4, %v2773_v13, %v2060_v53 }
 0x3a8   : > { %v2871_v27 = vsel %vm2853_vm5, %v2822_v34, %v5825_v25  ;;  %v7335_v34 = vld [vmem:[#allocation127_spill] sm:$0xff] }
 0x3a9   : > { %v2920_v25 = vsel %vm2902_vm6, %v2871_v27, %v2354_v37  ;;  %v2774_v37 = vsel %vm366_vm1, %v2726_v43, %v5418_v26  ;;  %v6100_v29 = vpop.permute.xlu2 %2369 }
 0x3aa   : > { %v2823_v19 = vsel %vm2804_vm4, %v2774_v37, %v5845_v44 }
 0x3ab   : > { %v2872_v12 = vsel %vm2853_vm5, %v2823_v19, %v2209_v58  ;;  %v7336_v58 = vld [vmem:[#allocation131_spill] sm:$0xff] }
 0x3ac   : > { %2246 = vrot.lane.b32.xlu1 %v4258_v32, %s4353_s30 }
 0x3ad   : > { %2109 = vrot.lane.b32.xlu2 %v6065_v5, %s4350_s23  ;;  %1954 = vrot.lane.b32.xlu0 %v6070_v2, %s4349_s22  ;;  %v3190_v9 = vpop.f32.mrf.mxu1 }
 0x3ae   : > { %v3191_v30 = vadd.f32 %v5926_v61, %v3190_v9  ;;  %v2501_v36 = vpop.permute.xlu1 %2500 }
 0x3af   : > { %v2064_v45 = vpop.permute.xlu0 %2063  ;;  %v2969_v3 = vsel %vm2951_vm7, %v2920_v25, %v2501_v36  ;;  %v4264_v25 = vld [vmem:[#allocation2 + $0x129] sm:$0xff] }
 0x3b0   : > { %v3324_v49 = vmax.f32 %v3191_v30, 0.0  ;;  %4035 = vmatmul.msk.f32.gmra.mxu1 %vm3013_vm8, %v2969_v3  ;;  %v7337_v30 = vld [vmem:[#allocation150_spill] sm:$0xff] }
 0x3b1   : > { %v4265_v3 = vld [vmem:[#allocation2 + $0x117] sm:$0xff]  ;;  %v6127_v37 = vpop.permute.xlu2 %2224 }
 0x3b2   : > { %4119 = vmatmul.msk.f32.gmra.mxu2 %vm1080_vm0, %v3324_v49  ;;  %v6117_v49 = vld [vmem:[#allocation2 + $0x168] sm:$0xff] }
 0x3b4   : > { %2540 = vrot.lane.b32.xlu1 %v5947_v63, %s4351_s28  ;;  %v4263_v63 = vld [vmem:[#allocation2 + $0x9f] sm:$0xff] }
 0x3b5   : > { %2530 = vrot.lane.b32.xlu2 %v6089_v8, %s4351_s28  ;;  %2375 = vrot.lane.b32.xlu0 %v4262_v47, %s4352_s29  ;;  %v2629_v27 = vsel %vm1080_vm0, %v4263_v63, %v7335_v34  ;;  %v4267_v47 = vld [vmem:[#allocation2 + $0xa7] sm:$0xff]  ;;  %v7341_v34 = vld [vmem:[#allocation137_spill] sm:$0xff] }
 0x3b6   : > { %v2356_v23 = vpop.permute.xlu1 %2355  ;;  %v3193_v53 = vpop.f32.mrf.mxu1  ;;  %v2678_v9 = vsel %vm2658_vm2, %v2629_v27, %v7336_v58 }
 0x3b7   : > { %v2921_v46 = vsel %vm2902_vm6, %v2872_v12, %v2356_v23  ;;  %v2505_v26 = vpop.permute.xlu0 %2504  ;;  %v3194_v13 = vadd.f32 %v5926_v61, %v3193_v53  ;;  %v2727_v36 = vsel %vm2707_vm3, %v2678_v9, %v7337_v30  ;;  %v7338_v12 = vld [vmem:[#allocation8_spill] sm:$0xff]  ;;  %v6132_v23 = vld [vmem:[#allocation2 + $0x179] sm:$0xff] }
 0x3b8   : > { %v2970_v44 = vsel %vm2951_vm7, %v2921_v46, %v5875_v14  ;;  %v2775_v14 = vsel %vm366_vm1, %v2727_v36, %v5435_v57  ;;  %v7339_v46 = vld [vmem:[#allocation91_spill] sm:$0xff]  ;;  %v6140_v53 = vld [vmem:[#allocation2 + $0x158] sm:$0xff] }
 0x3b9   : > { %4036 = vmatmul.msk.f32.gmra.mxu1 %vm3013_vm8, %v2970_v44  ;;  %v3325_v32 = vmax.f32 %v3194_v13, 0.0  ;;  %v2824_v33 = vsel %vm2804_vm4, %v2775_v14, %v2064_v45  ;;  %v2630_v45 = vsel %vm1080_vm0, %v4267_v47, %v7338_v12  ;;  %v7340_v13 = vld [vmem:[#allocation96_spill] sm:$0xff]  ;;  %v6151_v30 = vpop.permute.xlu2 %2079  ;;  %v7344_v47 = vld [vmem:[#allocation154_spill] sm:$0xff] }
 0x3ba   : > { %v6153_v36 = vld [vmem:[#allocation2 + $0x141] sm:$0xff] }
 0x3bb   : > { %4120 = vmatmul.msk.f32.gmra.mxu2 %vm1080_vm0, %v3325_v32 }
 0x3bc   : > { %2228 = vrot.lane.b32.xlu1 %v4265_v3, %s4353_s30 }
 0x3bd   : > { %2091 = vrot.lane.b32.xlu2 %v4264_v25, %s4350_s23  ;;  %2395 = vrot.lane.b32.xlu0 %v6117_v49, %s4352_s29  ;;  %v4272_v25 = vld [vmem:[#allocation2 + $0x120] sm:$0xff] }
 0x3be   : > { %v2211_v0 = vpop.permute.xlu1 %2210 }
 0x3bf   : > { %v2873_v56 = vsel %vm2853_vm5, %v2824_v33, %v2211_v0  ;;  %v2360_v16 = vpop.permute.xlu0 %2359  ;;  %v3196_v35 = vpop.f32.mrf.mxu1 }
 0x3c0   : > { %v3197_v7 = vadd.f32 %v5926_v61, %v3196_v35  ;;  %v2922_v57 = vsel %vm2902_vm6, %v2873_v56, %v5896_v31  ;;  %v2679_v31 = vsel %vm2658_vm2, %v2630_v45, %v7339_v46  ;;  %v4274_v45 = vld [vmem:[#allocation2 + $0x131] sm:$0xff] }
 0x3c1   : > { %v2971_v43 = vsel %vm2951_vm7, %v2922_v57, %v2505_v26  ;;  %v4269_v26 = vld [vmem:[#allocation2 + $0x167] sm:$0xff]  ;;  %v2728_v44 = vsel %vm2707_vm3, %v2679_v31, %v7340_v13  ;;  %v4275_v31 = vld [vmem:[#allocation2 + $0x11f] sm:$0xff]  ;;  %v6181_v13 = vpop.permute.xlu2 %2099 }
 0x3c2   : > { %v3326_v19 = vmax.f32 %v3197_v7, 0.0  ;;  %4037 = vmatmul.msk.f32.gmra.mxu1 %vm3013_vm8, %v2971_v43  ;;  %v2776_v27 = vsel %vm366_vm1, %v2728_v44, %v7341_v34  ;;  %v4273_v7 = vld [vmem:[#allocation2 + $0xaf] sm:$0xff]  ;;  %v7342_v57 = vld [vmem:[#allocation135_spill] sm:$0xff] }
 0x3c3   : > { %v2631_v43 = vsel %vm1080_vm0, %v4273_v7, %v7342_v57 }
 0x3c4   : > { %4121 = vmatmul.msk.f32.gmra.mxu2 %vm1080_vm0, %v3326_v19  ;;  %2248 = vrot.lane.b32.xlu1 %v4269_v26, %s4353_s30  ;;  %v6177_v26 = vld [vmem:[#allocation2 + $0x170] sm:$0xff] }
 0x3c5   : > { %2111 = vrot.lane.b32.xlu2 %v6132_v23, %s4350_s23  ;;  %1956 = vrot.lane.b32.xlu0 %v6140_v53, %s4349_s22 }
 0x3c6   : > { %v2066_v63 = vpop.permute.xlu1 %2065 }
 0x3c7   : > { %v2215_v32 = vpop.permute.xlu0 %2214  ;;  %v2825_v58 = vsel %vm2804_vm4, %v2776_v27, %v2066_v63 }
 0x3c8   : > { %v2874_v9 = vsel %vm2853_vm5, %v2825_v58, %v5914_v40 }
 0x3c9   : > { %v2923_v0 = vsel %vm2902_vm6, %v2874_v9, %v2360_v16  ;;  %v4277_v9 = vld [vmem:[#allocation2 + $0xb7] sm:$0xff] }
 0x3cc   : > { %2542 = vrot.lane.b32.xlu1 %v6004_v22, %s4351_s28  ;;  %v7343_v22 = vld [vmem:[#allocation143_spill] sm:$0xff] }
 0x3cd   : > { %2532 = vrot.lane.b32.xlu2 %v6153_v36, %s4351_s28  ;;  %2377 = vrot.lane.b32.xlu0 %v4272_v25, %s4352_s29  ;;  %v3199_v14 = vpop.f32.mrf.mxu1  ;;  %v2680_v19 = vsel %vm2658_vm2, %v2631_v43, %v7343_v22  ;;  %v7345_v25 = vld [vmem:[#allocation142_spill] sm:$0xff] }
 0x3ce   : > { %v3200_v3 = vadd.f32 %v5926_v61, %v3199_v14  ;;  %v2507_v33 = vpop.permute.xlu1 %2506  ;;  %v2729_v12 = vsel %vm2707_vm3, %v2680_v19, %v7344_v47  ;;  %v2632_v14 = vsel %vm1080_vm0, %v4277_v9, %v7345_v25  ;;  %v6207_v19 = vpop.permute.xlu2 %2520  ;;  %v6235_v25 = vld [vmem:[#allocation2 + $0x138] sm:$0xff] }
 0x3cf   : > { %v2070_v40 = vpop.permute.xlu0 %2069  ;;  %v2972_v56 = vsel %vm2951_vm7, %v2923_v0, %v2507_v33  ;;  %v2777_v16 = vsel %vm366_vm1, %v2729_v12, %v5460_v55  ;;  %v7346_v33 = vld [vmem:[#allocation146_spill] sm:$0xff] }
 0x3d0   : > { %v3327_v35 = vmax.f32 %v3200_v3, 0.0  ;;  %4038 = vmatmul.msk.f32.gmra.mxu1 %vm3013_vm8, %v2972_v56  ;;  %v2826_v46 = vsel %vm2804_vm4, %v2777_v16, %v5944_v20  ;;  %v6196_v56 = vld [vmem:[#allocation2 + $0x181] sm:$0xff] }
 0x3d1   : > { %v2875_v44 = vsel %vm2853_vm5, %v2826_v46, %v2215_v32  ;;  %v2681_v32 = vsel %vm2658_vm2, %v2632_v14, %v7346_v33  ;;  %v4281_v46 = vld [vmem:[#allocation2 + $0x128] sm:$0xff] }
 0x3d2   : > { %4122 = vmatmul.msk.f32.gmra.mxu2 %vm1080_vm0, %v3327_v35  ;;  %v2730_v0 = vsel %vm2707_vm3, %v2681_v32, %v5382_v38  ;;  %v4279_v35 = vld [vmem:[#allocation2 + $0x16f] sm:$0xff]  ;;  %v4283_v14 = vld [vmem:[#allocation2 + $0x127] sm:$0xff] }
 0x3d4   : > { %2230 = vrot.lane.b32.xlu1 %v4275_v31, %s4353_s30 }
 0x3d5   : > { %2093 = vrot.lane.b32.xlu2 %v4274_v45, %s4350_s23  ;;  %2397 = vrot.lane.b32.xlu0 %v6177_v26, %s4352_s29 }
 0x3d6   : > { %v2362_v63 = vpop.permute.xlu1 %2361  ;;  %v3202_v27 = vpop.f32.mrf.mxu1 }
 0x3d7   : > { %v2924_v55 = vsel %vm2902_vm6, %v2875_v44, %v2362_v63  ;;  %v2511_v34 = vpop.permute.xlu0 %2510  ;;  %v3203_v58 = vadd.f32 %v5926_v61, %v3202_v27  ;;  %v7349_v63 = vld [vmem:[#allocation109_spill] sm:$0xff]  ;;  %v6230_v9 = vpop.permute.xlu2 %2081 }
 0x3d8   : > { %v2973_v20 = vsel %vm2951_vm7, %v2924_v55, %v5976_v51  ;;  %v2778_v51 = vsel %vm366_vm1, %v2730_v0, %v5479_v11 }
 0x3d9   : > { %4039 = vmatmul.msk.f32.gmra.mxu1 %vm3013_vm8, %v2973_v20  ;;  %v3328_v3 = vmax.f32 %v3203_v58, 0.0  ;;  %v2827_v7 = vsel %vm2804_vm4, %v2778_v51, %v2070_v40  ;;  %v7347_v40 = vld [vmem:[#allocation9_spill] sm:$0xff] }
 0x3da   : > { %v354_v20 = vld [vmem:[%s4434_s16 + $0x190] sm:$0xff] }
 0x3db   : > { %4123 = vmatmul.msk.f32.gmra.mxu2 %vm1080_vm0, %v3328_v3  ;;  %4014 = vmatmul.msk.f32.gmra.mxu3 %vm366_vm1, %v354_v20  ;;  %v6240_v3 = vld [vmem:[#allocation2 + $0x178] sm:$0xff] }
 0x3dc   : > { %2250 = vrot.lane.b32.xlu1 %v4279_v35, %s4353_s30  ;;  %v1290_v20 = vld [vmem:[#allocation2 + $0x19f] sm:$0xff] }
 0x3dd   : > { %2113 = vrot.lane.b32.xlu2 %v6196_v56, %s4350_s23  ;;  %1958 = vrot.lane.b32.xlu0 %v6054_v18, %s4349_s22  ;;  %v4280_v18 = vld [vmem:[#allocation2 + $0xbf] sm:$0xff] }
 0x3de   : > { %v2217_v57 = vpop.permute.xlu1 %2216  ;;  %v2633_v45 = vsel %vm1080_vm0, %v4280_v18, %v7347_v40  ;;  %v6259_v40 = vld [vmem:[#allocation2 + $0x14f] sm:$0xff] }
 0x3df   : > { %v2876_v38 = vsel %vm2853_vm5, %v2827_v7, %v2217_v57  ;;  %v2366_v43 = vpop.permute.xlu0 %2365  ;;  %v3205_v22 = vpop.f32.mrf.mxu1  ;;  %v355_v57 = vld [vmem:[%s4434_s16 + $0x198] sm:$0xff] }
 0x3e0   : > { %v3206_v47 = vadd.f32 %v5926_v61, %v3205_v22  ;;  %v2925_v11 = vsel %vm2902_vm6, %v2876_v38, %v5992_v42  ;;  %v7348_v42 = vld [vmem:[#allocation104_spill] sm:$0xff]  ;;  %v7351_v22 = vld [vmem:[#allocation151_spill] sm:$0xff]  ;;  %v6257_v18 = vpop.permute.xlu2 %2101 }
 0x3e1   : > { %v2974_v12 = vsel %vm2951_vm7, %v2925_v11, %v2511_v34  ;;  %v2682_v31 = vsel %vm2658_vm2, %v2633_v45, %v7348_v42  ;;  %v7350_v34 = vld [vmem:[#allocation149_spill] sm:$0xff]  ;;  %v4285_v38 = vld [vmem:[#allocation2 + $0xc7] sm:$0xff] }
 0x3e2   : > { %v3329_v16 = vmax.f32 %v3206_v47, 0.0  ;;  %4040 = vmatmul.msk.f32.gmra.mxu1 %vm3013_vm8, %v2974_v12  ;;  %v2731_v55 = vsel %vm2707_vm3, %v2682_v31, %v7349_v63  ;;  %v2634_v47 = vsel %vm1080_vm0, %v4285_v38, %v7351_v22  ;;  %v7352_v11 = vld [vmem:[#allocation157_spill] sm:$0xff]  ;;  %v4066_v38 = vld [vmem:[%s4434_s16 + $0x18] sm:$0xff] }
 0x3e3   : > { %v2779_v27 = vsel %vm366_vm1, %v2731_v55, %v7350_v34  ;;  %4015 = vmatmul.msk.f32.gmra.mxu3 %vm366_vm1, %v355_v57  ;;  %v2683_v12 = vsel %vm2658_vm2, %v2634_v47, %v7352_v11 }
 0x3e4   : > { %4124 = vmatmul.msk.f32.gmra.mxu2 %vm1080_vm0, %v3329_v16  ;;  %2544 = vrot.lane.b32.xlu1 %v6065_v5, %s4351_s28  ;;  %v7353_v16 = vld [vmem:[#allocation165_spill] sm:$0xff] }
 0x3e5   : > { %2534 = vrot.lane.b32.xlu2 %v5773_v28, %s4351_s28  ;;  %2379 = vrot.lane.b32.xlu0 %v4281_v46, %s4352_s29  ;;  %v4287_v46 = vld [vmem:[#allocation2 + $0x177] sm:$0xff] }
 0x3e6   : > { %v2072_v44 = vpop.permute.xlu1 %2071 }
 0x3e7   : > { %v2221_v28 = vpop.permute.xlu0 %2220  ;;  %v2828_v58 = vsel %vm2804_vm4, %v2779_v27, %v2072_v44 }
 0x3e8   : > { %v2877_v5 = vsel %vm2853_vm5, %v2828_v58, %v6023_v39 }
 0x3e9   : > { %v2926_v39 = vsel %vm2902_vm6, %v2877_v5, %v2366_v43  ;;  %v2732_v43 = vsel %vm2707_vm3, %v2683_v12, %v7353_v16  ;;  %v356_v5 = vld [vmem:[%s4434_s16 + $0x1a0] sm:$0xff] }
 0x3ea   : > { %v2780_v45 = vsel %vm366_vm1, %v2732_v43, %v5538_v1  ;;  %v357_v43 = vld [vmem:[%s4434_s16 + $0x1a8] sm:$0xff] }
 0x3eb   : > { %v2829_v42 = vsel %vm2804_vm4, %v2780_v45, %v6046_v6  ;;  %4016 = vmatmul.msk.f32.gmra.mxu3 %vm366_vm1, %v356_v5  ;;  %v4288_v6 = vld [vmem:[#allocation2 + $0xcf] sm:$0xff]  ;;  %v4067_v5 = vld [vmem:[%s4434_s16 + $0x20] sm:$0xff] }
 0x3ec   : > { %2232 = vrot.lane.b32.xlu1 %v4283_v14, %s4353_s30  ;;  %v2878_v44 = vsel %vm2853_vm5, %v2829_v42, %v2221_v28  ;;  %v7355_v14 = vld [vmem:[#allocation159_spill] sm:$0xff]  ;;  %v4290_v42 = vld [vmem:[#allocation2 + $0xd7] sm:$0xff] }
 0x3ed   : > { %1948 = vrot.lane.b32.xlu2 %v6235_v25, %s4349_s22  ;;  %2399 = vrot.lane.b32.xlu0 %v6240_v3, %s4352_s29  ;;  %v3208_v33 = vpop.f32.mrf.mxu1 }
 0x3ee   : > { %v3209_v32 = vadd.f32 %v5926_v61, %v3208_v33  ;;  %v2513_v0 = vpop.permute.xlu1 %2512 }
 0x3ef   : > { %v2076_v51 = vpop.permute.xlu0 %2075  ;;  %v2975_v7 = vsel %vm2951_vm7, %v2926_v39, %v2513_v0  ;;  %v4289_v0 = vld [vmem:[#allocation2 + $0x130] sm:$0xff] }
 0x3f0   : > { %v3330_v35 = vmax.f32 %v3209_v32, 0.0  ;;  %4041 = vmatmul.msk.f32.gmra.mxu1 %vm3013_vm8, %v2975_v7 }
 0x3f2   : > { %4125 = vmatmul.msk.f32.gmra.mxu2 %vm1080_vm0, %v3330_v35  ;;  %v6296_v35 = vpop.permute.xlu2 %2522 }
 0x3f3   : > { %4017 = vmatmul.msk.f32.gmra.mxu3 %vm366_vm1, %v357_v43 }
 0x3f4   : > { %2252 = vrot.lane.b32.xlu1 %v4287_v46, %s4353_s30 }
 0x3f5   : > { %2242 = vrot.lane.b32.xlu2 %v6259_v40, %s4353_s30  ;;  %1960 = vrot.lane.b32.xlu0 %v6117_v49, %s4349_s22  ;;  %v7354_v49 = vld [vmem:[#allocation156_spill] sm:$0xff] }
 0x3f6   : > { %v3211_v31 = vpop.f32.mrf.mxu1  ;;  %v2368_v63 = vpop.permute.xlu1 %2367  ;;  %v2635_v28 = vsel %vm1080_vm0, %v4288_v6, %v7354_v49  ;;  %v7359_v49 = vld [vmem:[#allocation158_spill] sm:$0xff] }
 0x3f7   : > { %v2517_v55 = vpop.permute.xlu0 %2516  ;;  %v3212_v34 = vadd.f32 %v5926_v61, %v3211_v31  ;;  %v2927_v27 = vsel %vm2902_vm6, %v2878_v44, %v2368_v63  ;;  %v2684_v33 = vsel %vm2658_vm2, %v2635_v28, %v7355_v14  ;;  %v7356_v31 = vld [vmem:[#allocation10_spill] sm:$0xff]  ;;  %v4291_v63 = vld [vmem:[#allocation2 + $0x12f] sm:$0xff] }
 0x3f8   : > { %v2976_v1 = vsel %vm2951_vm7, %v2927_v27, %v6074_v60  ;;  %v6287_v60 = vld [vmem:[%s7023_s6] ss:$0 sm:$0xff]  ;;  %v2733_v32 = vsel %vm2707_vm3, %v2684_v33, %v5425_v10  ;;  %v2636_v44 = vsel %vm1080_vm0, %v4290_v42, %v7356_v31  ;;  %v4068_v42 = vld [vmem:[%s4434_s16 + $0x28] sm:$0xff] }
 0x3f9   : > { %v3331_v58 = vmax.f32 %v3212_v34, 0.0  ;;  %4042 = vmatmul.msk.f32.gmra.mxu1 %vm3013_vm8, %v2976_v1  ;;  %v2781_v39 = vsel %vm366_vm1, %v2733_v32, %v5583_v24  ;;  %v1296_v24 = vld [vmem:[#allocation2 + $0x1a1] sm:$0xff]  ;;  %v7357_v34 = vld [vmem:[#allocation117_spill] sm:$0xff] }
 0x3fa   : > { %v2830_v7 = vsel %vm2804_vm4, %v2781_v39, %v2076_v51  ;;  %v2685_v27 = vsel %vm2658_vm2, %v2636_v44, %v7357_v34  ;;  %v6333_v14 = vpop.permute.xlu2 %2083 }
 0x3fb   : > { %4126 = vmatmul.msk.f32.gmra.mxu2 %vm1080_vm0, %v3331_v58  ;;  %v7358_v58 = vld [vmem:[#allocation122_spill] sm:$0xff] }
 0x3fc   : > { %2546 = vrot.lane.b32.xlu1 %v6132_v23, %s4351_s28  ;;  %v2734_v1 = vsel %vm2707_vm3, %v2685_v27, %v7358_v58 }
 0x3fd   : > { %2262 = vrot.lane.b32.xlu2 %v1290_v20, %s4353_s30  ;;  %2381 = vrot.lane.b32.xlu0 %v4289_v0, %s4352_s29  ;;  %v2782_v28 = vsel %vm366_vm1, %v2734_v1, %v7359_v49  ;;  %v2647_v49 = vsel %vm1080_vm0, %v4291_v63, %v5526_v15  ;;  %v7362_v15 = vld [vmem:[#allocation30_spill] sm:$0xff] }
 0x3fe   : > { %v2223_v57 = vpop.permute.xlu1 %2222  ;;  %v3583_v22 = vpop.f32.mrf.mxu2 }
 0x3ff   : > { %v2879_v10 = vsel %vm2853_vm5, %v2830_v7, %v2223_v57  ;;  %v3584_v47 = vadd.f32 %v6287_v60, %v3583_v22  ;;  %v2372_v23 = vpop.permute.xlu0 %2371  ;;  %v3214_v11 = vpop.f32.mrf.mxu1  ;;  %v6337_v7 = vld [vmem:[#allocation2 + $0x190] sm:$0xff]  ;;  %v4293_v22 = vld [vmem:[#allocation2 + $0x17f] sm:$0xff] }
 0x400   : > { %v2928_v12 = vsel %vm2902_vm6, %v2879_v10, %v6100_v29  ;;  %v3215_v16 = vadd.f32 %v5926_v61, %v3214_v11 }
 0x401   : > { %v3727_v45 = vadd.f32 %v4066_v38, %v3584_v47  ;;  %v2977_v51 = vsel %vm2951_vm7, %v2928_v12, %v2517_v55  ;;  %v6319_v55 = vld [vmem:[#allocation2 + $0x180] sm:$0xff] }
 0x402   : > { %v3332_v46 = vmax.f32 %v3215_v16, 0.0  ;;  %4043 = vmatmul.msk.f32.gmra.mxu1 %vm3013_vm8, %v2977_v51  ;;  %v6352_v43 = vpop.permute.xlu2 %2103 }
 0x403   : > { %v3775_v29 = vmax.f32 %v3727_v45, 0.0  ;;  %v7360_v45 = vld [vmem:[#allocation163_spill] sm:$0xff] }
 0x404   : > { %2234 = vrot.lane.b32.xlu1 %v4291_v63, %s4353_s30  ;;  %4127 = vmatmul.msk.f32.gmra.mxu2 %vm1080_vm0, %v3332_v46  ;;  %v7361_v46 = vld [vmem:[#allocation167_spill] sm:$0xff] }
 0x405   : > { %2556 = vrot.lane.b32.xlu2 %v1296_v24, %s4351_s28  ;;  %2401 = vrot.lane.b32.xlu0 %v6319_v55, %s4352_s29  ;;  %3823 = vst.msk [vmem:[%s6312_s8] sm:$0xff] %vm366_vm1, %v3775_v29 }
 0x406   : > { %v2078_v20 = vpop.permute.xlu1 %2077 }
 0x407   : > { %v3586_v6 = vpop.f32.mrf.mxu2  ;;  %v1953_v33 = vpop.permute.xlu0 %1952  ;;  %v2831_v0 = vsel %vm2804_vm4, %v2782_v28, %v2078_v20 }
 0x408   : > { %v3587_v32 = vadd.f32 %v6287_v60, %v3586_v6  ;;  %v2880_v57 = vsel %vm2853_vm5, %v2831_v0, %v6127_v37  ;;  %v4295_v0 = vld [vmem:[#allocation2 + $0x137] sm:$0xff] }
 0x409   : > { %v2929_v12 = vsel %vm2902_vm6, %v2880_v57, %v2372_v23 }
 0x40a   : > { %v3728_v39 = vadd.f32 %v4067_v5, %v3587_v32  ;;  %v6384_v28 = vpop.permute.xlu2 %2524  ;;  %v6388_v32 = vld [vmem:[#allocation2 + $0x188] sm:$0xff] }
 0x40c   : > { %v3776_v38 = vmax.f32 %v3728_v39, 0.0  ;;  %2254 = vrot.lane.b32.xlu1 %v4293_v22, %s4353_s30  ;;  %v4069_v39 = vld [vmem:[%s4434_s16 + $0x30] sm:$0xff] }
 0x40d   : > { %1970 = vrot.lane.b32.xlu2 %v6337_v7, %s4349_s22  ;;  %1962 = vrot.lane.b32.xlu0 %v6177_v26, %s4349_s22  ;;  %v3217_v10 = vpop.f32.mrf.mxu1  ;;  %v4294_v26 = vld [vmem:[#allocation2 + $0xdf] sm:$0xff] }
 0x40e   : > { %3824 = vst.msk [vmem:[%s6312_s8 + $0x8] sm:$0xff] %vm366_vm1, %v3776_v38  ;;  %v3218_v47 = vadd.f32 %v5926_v61, %v3217_v10  ;;  %v2519_v11 = vpop.permute.xlu1 %2518  ;;  %v2637_v51 = vsel %vm1080_vm0, %v4294_v26, %v7360_v45  ;;  %v4296_v26 = vld [vmem:[#allocation2 + $0x187] sm:$0xff] }
 0x40f   : > { %v2978_v16 = vsel %vm2951_vm7, %v2929_v12, %v2519_v11  ;;  %v2374_v24 = vpop.permute.xlu0 %2373  ;;  %v2686_v29 = vsel %vm2658_vm2, %v2637_v51, %v7361_v46 }
 0x410   : > { %v3333_v37 = vmax.f32 %v3218_v47, 0.0  ;;  %4044 = vmatmul.msk.f32.gmra.mxu1 %vm3013_vm8, %v2978_v16  ;;  %v2735_v23 = vsel %vm2707_vm3, %v2686_v29, %v5437_v48 }
 0x411   : > { %v2783_v44 = vsel %vm366_vm1, %v2735_v23, %v5561_v41 }
 0x412   : > { %4128 = vmatmul.msk.f32.gmra.mxu2 %vm1080_vm0, %v3333_v37 }
 0x414   : > { %2548 = vrot.lane.b32.xlu1 %v6196_v56, %s4351_s28 }
 0x415   : > { %2391 = vrot.lane.b32.xlu2 %v6140_v53, %s4352_s29  ;;  %2383 = vrot.lane.b32.xlu0 %v6235_v25, %s4352_s29  ;;  %v3589_v31 = vpop.f32.mrf.mxu2  ;;  %v2832_v53 = vsel %vm2804_vm4, %v2783_v44, %v6151_v30  ;;  %v2696_v30 = vsel %vm2658_vm2, %v2647_v49, %v5536_v52  ;;  %v7363_v44 = vld [vmem:[#allocation166_spill] sm:$0xff] }
 0x416   : > { %v3590_v34 = vadd.f32 %v6287_v60, %v3589_v31  ;;  %v3220_v27 = vpop.f32.mrf.mxu1  ;;  %v2227_v58 = vpop.permute.xlu1 %2226  ;;  %v4297_v31 = vld [vmem:[#allocation2 + $0xe7] sm:$0xff] }
 0x417   : > { %v3221_v48 = vadd.f32 %v5926_v61, %v3220_v27  ;;  %v2881_v56 = vsel %vm2853_vm5, %v2832_v53, %v2227_v58  ;;  %v2394_v20 = vpop.permute.xlu0 %2393  ;;  %v7364_v27 = vld [vmem:[#allocation168_spill] sm:$0xff] }
 0x418   : > { %v3729_v1 = vadd.f32 %v4068_v42, %v3590_v34  ;;  %v2930_v25 = vsel %vm2902_vm6, %v2881_v56, %v2374_v24  ;;  %v2638_v34 = vsel %vm1080_vm0, %v4297_v31, %v7363_v44  ;;  %v6425_v56 = vld [vmem:[#allocation2 + $0x140] sm:$0xff] }
 0x419   : > { %v3334_v5 = vmax.f32 %v3221_v48, 0.0  ;;  %v2979_v41 = vsel %vm2951_vm7, %v2930_v25, %v6207_v19  ;;  %v2745_v19 = vsel %vm2707_vm3, %v2696_v30, %v7362_v15  ;;  %v2687_v53 = vsel %vm2658_vm2, %v2638_v34, %v7364_v27  ;;  %v6419_v48 = vld [vmem:[#allocation2 + $0x189] sm:$0xff] }
 0x41a   : > { %v3777_v6 = vmax.f32 %v3729_v1, 0.0  ;;  %4045 = vmatmul.msk.f32.gmra.mxu1 %vm3013_vm8, %v2979_v41  ;;  %v2793_v52 = vsel %vm366_vm1, %v2745_v19, %v1953_v33  ;;  %v6405_v33 = vpop.permute.xlu2 %2085  ;;  %v2736_v1 = vsel %vm2707_vm3, %v2687_v53, %v5469_v4  ;;  %v7365_v19 = vld [vmem:[#allocation14_spill] sm:$0xff] }
 0x41b   : > { %4129 = vmatmul.msk.f32.gmra.mxu2 %vm1080_vm0, %v3334_v5  ;;  %v2842_v12 = vsel %vm2804_vm4, %v2793_v52, %v6181_v13  ;;  %v4070_v13 = vld [vmem:[%s4434_s16 + $0x38] sm:$0xff]  ;;  %v2784_v25 = vsel %vm366_vm1, %v2736_v1, %v5598_v21 }
 0x41c   : > { %3825 = vst.msk [vmem:[%s6312_s8 + $0x10] sm:$0xff] %vm366_vm1, %v3777_v6  ;;  %2236 = vrot.lane.b32.xlu1 %v4295_v0, %s4353_s30  ;;  %v2833_v4 = vsel %vm2804_vm4, %v2784_v25, %v6230_v9  ;;  %v7366_v9 = vld [vmem:[#allocation18_spill] sm:$0xff] }
 0x41d   : > { %2403 = vrot.lane.b32.xlu0 %v6388_v32, %s4352_s29  ;;  %v4299_v52 = vld [vmem:[#allocation2 + $0x13f] sm:$0xff] }
 0x41e   : > { %v2247_v63 = vpop.permute.xlu1 %2246  ;;  %v3592_v57 = vpop.f32.mrf.mxu2  ;;  %v7369_v25 = vld [vmem:[#allocation130_spill] sm:$0xff] }
 0x41f   : > { %v1955_v38 = vpop.permute.xlu0 %1954  ;;  %v3593_v22 = vadd.f32 %v6287_v60, %v3592_v57  ;;  %v3223_v10 = vpop.f32.mrf.mxu1  ;;  %v2891_v16 = vsel %vm2853_vm5, %v2842_v12, %v2247_v63  ;;  %v2648_v63 = vsel %vm1080_vm0, %v4295_v0, %v7365_v19  ;;  %v4071_v0 = vld [vmem:[%s4434_s16 + $0x40] sm:$0xff]  ;;  %v7371_v19 = vld [vmem:[#allocation162_spill] sm:$0xff] }
 0x420   : > { %v3224_v47 = vadd.f32 %v5926_v61, %v3223_v10  ;;  %v2940_v51 = vsel %vm2902_vm6, %v2891_v16, %v2394_v20  ;;  %v2697_v57 = vsel %vm2658_vm2, %v2648_v63, %v7366_v9  ;;  %v4073_v9 = vld [vmem:[%s4434_s16 + $0x50] sm:$0xff] }
 0x421   : > { %v3730_v11 = vadd.f32 %v4069_v39, %v3593_v22 }
 0x422   : > { %v3335_v37 = vmax.f32 %v3224_v47, 0.0  ;;  %v6436_v41 = vpop.permute.xlu2 %2105 }
 0x423   : > { %v3778_v24 = vmax.f32 %v3730_v11, 0.0 }
 0x424   : > { %2256 = vrot.lane.b32.xlu1 %v4296_v26, %s4353_s30  ;;  %4130 = vmatmul.msk.f32.gmra.mxu2 %vm1080_vm0, %v3335_v37 }
 0x425   : > { %1964 = vrot.lane.b32.xlu0 %v6240_v3, %s4349_s22  ;;  %3826 = vst.msk [vmem:[%s6312_s8 + $0x18] sm:$0xff] %vm366_vm1, %v3778_v24 }
 0x426   : > { %v2541_v45 = vpop.permute.xlu1 %2540 }
 0x427   : > { %v3595_v46 = vpop.f32.mrf.mxu2  ;;  %v2989_v29 = vsel %vm2951_vm7, %v2940_v51, %v2541_v45  ;;  %v2376_v23 = vpop.permute.xlu0 %2375 }
 0x428   : > { %v3596_v42 = vadd.f32 %v6287_v60, %v3595_v46  ;;  %4055 = vmatmul.msk.f32.vlgmr.msrb.gmra.mxu3 %vm3013_vm8, %v2989_v29  ;;  %v4300_v29 = vld [vmem:[#allocation2 + $0x18f] sm:$0xff] }
 0x42a   : > { %v3731_v3 = vadd.f32 %v4070_v13, %v3596_v42  ;;  %v6457_v51 = vpop.permute.xlu2 %2526 }
 0x42c   : > { %v3779_v58 = vmax.f32 %v3731_v3, 0.0  ;;  %2550 = vrot.lane.b32.xlu1 %v6419_v48, %s4351_s28 }
 0x42d   : > { %2385 = vrot.lane.b32.xlu0 %v6425_v56, %s4352_s29  ;;  %v3226_v20 = vpop.f32.mrf.mxu1 }
 0x42e   : > { %3827 = vst.msk [vmem:[%s6312_s8 + $0x20] sm:$0xff] %vm366_vm1, %v3779_v58  ;;  %v3227_v5 = vadd.f32 %v5926_v61, %v3226_v20  ;;  %v2229_v6 = vpop.permute.xlu1 %2228  ;;  %v4301_v58 = vld [vmem:[#allocation2 + $0xef] sm:$0xff] }
 0x42f   : > { %v2882_v30 = vsel %vm2853_vm5, %v2833_v4, %v2229_v6  ;;  %v2396_v15 = vpop.permute.xlu0 %2395 }
 0x430   : > { %v3336_v49 = vmax.f32 %v3227_v5, 0.0  ;;  %v2931_v21 = vsel %vm2902_vm6, %v2882_v30, %v2376_v23  ;;  %v4072_v23 = vld [vmem:[%s4434_s16 + $0x48] sm:$0xff]  ;;  %v7370_v30 = vld [vmem:[#allocation133_spill] sm:$0xff] }
 0x431   : > { %v2980_v39 = vsel %vm2951_vm7, %v2931_v21, %v6296_v35  ;;  %v7367_v35 = vld [vmem:[#allocation19_spill] sm:$0xff] }
 0x432   : > { %4131 = vmatmul.msk.f32.gmra.mxu2 %vm1080_vm0, %v3336_v49  ;;  %4046 = vmatmul.msk.f32.gmra.mxu1 %vm3013_vm8, %v2980_v39  ;;  %v2746_v11 = vsel %vm2707_vm3, %v2697_v57, %v7367_v35  ;;  %v6478_v4 = vpop.permute.xlu2 %2087  ;;  %v6480_v49 = vld [vmem:[#allocation2 + $0x191] sm:$0xff] }
 0x433   : > { %v2794_v16 = vsel %vm366_vm1, %v2746_v11, %v1955_v38  ;;  %v6501_v11 = vld [vmem:[#allocation2 + $0x198] sm:$0xff] }
 0x434   : > { %2238 = vrot.lane.b32.xlu1 %v4299_v52, %s4353_s30  ;;  %v2843_v13 = vsel %vm2804_vm4, %v2794_v16, %v6257_v18  ;;  %v4302_v16 = vld [vmem:[#allocation2 + $0x147] sm:$0xff] }
 0x435   : > { %2405 = vrot.lane.b32.xlu0 %v6337_v7, %s4352_s29  ;;  %v3598_v22 = vpop.f32.mrf.mxu2 }
 0x436   : > { %v3599_v10 = vadd.f32 %v6287_v60, %v3598_v22  ;;  %v3229_v47 = vpop.f32.mrf.mxu1  ;;  %v2249_v12 = vpop.permute.xlu1 %2248 }
 0x437   : > { %v3230_v37 = vadd.f32 %v5926_v61, %v3229_v47  ;;  %v1957_v26 = vpop.permute.xlu0 %1956  ;;  %v2892_v46 = vsel %vm2853_vm5, %v2843_v13, %v2249_v12  ;;  %v7372_v12 = vld [vmem:[#allocation22_spill] sm:$0xff] }
 0x438   : > { %v3732_v24 = vadd.f32 %v4071_v0, %v3599_v10  ;;  %v2941_v3 = vsel %vm2902_vm6, %v2892_v46, %v2396_v15  ;;  %v7374_v46 = vld [vmem:[#allocation40_spill] sm:$0xff] }
 0x439   : > { %v3337_v45 = vmax.f32 %v3230_v37, 0.0  ;;  %v2649_v37 = vsel %vm1080_vm0, %v4299_v52, %v7372_v12 }
 0x43a   : > { %v3780_v7 = vmax.f32 %v3732_v24, 0.0 }
 0x43b   : > { %4132 = vmatmul.msk.f32.gmra.mxu2 %vm1080_vm0, %v3337_v45  ;;  %v7373_v45 = vld [vmem:[#allocation29_spill] sm:$0xff] }
 0x43c   : > { %3828 = vst.msk [vmem:[%s6312_s8 + $0x28] sm:$0xff] %vm366_vm1, %v3780_v7  ;;  %2258 = vrot.lane.b32.xlu1 %v4300_v29, %s4353_s30  ;;  %v2698_v7 = vsel %vm2658_vm2, %v2649_v37, %v7373_v45  ;;  %v7377_v45 = vld [vmem:[#allocation24_spill] sm:$0xff] }
 0x43d   : > { %1966 = vrot.lane.b32.xlu0 %v6319_v55, %s4349_s22  ;;  %v7368_v55 = vld [vmem:[#allocation11_spill] sm:$0xff]  ;;  %v2747_v52 = vsel %vm2707_vm3, %v2698_v7, %v7374_v46  ;;  %v2650_v7 = vsel %vm1080_vm0, %v4302_v16, %v7377_v45 }
 0x43e   : > { %v2543_v38 = vpop.permute.xlu1 %2542  ;;  %v3601_v42 = vpop.f32.mrf.mxu2  ;;  %v2639_v1 = vsel %vm1080_vm0, %v4301_v58, %v7368_v55  ;;  %v7378_v46 = vld [vmem:[#allocation27_spill] sm:$0xff] }
 0x43f   : > { %v2378_v31 = vpop.permute.xlu0 %2377  ;;  %v3602_v18 = vadd.f32 %v6287_v60, %v3601_v42  ;;  %v3232_v44 = vpop.f32.mrf.mxu1  ;;  %v2990_v34 = vsel %vm2951_vm7, %v2941_v3, %v2543_v38  ;;  %v2688_v5 = vsel %vm2658_vm2, %v2639_v1, %v7369_v25  ;;  %v2795_v38 = vsel %vm366_vm1, %v2747_v52, %v1957_v26  ;;  %v1291_v45 = vld [vmem:[#allocation2 + $0x1a7] sm:$0xff] }
 0x440   : > { %v3233_v27 = vadd.f32 %v5926_v61, %v3232_v44  ;;  %4056 = vmatmul.msk.f32.gmra.mxu3 %vm3013_vm8, %v2990_v34  ;;  %v2737_v15 = vsel %vm2707_vm3, %v2688_v5, %v7370_v30  ;;  %v2844_v3 = vsel %vm2804_vm4, %v2795_v38, %v6352_v43  ;;  %v4074_v44 = vld [vmem:[%s4434_s16 + $0x58] sm:$0xff]  ;;  %v2699_v52 = vsel %vm2658_vm2, %v2650_v7, %v7378_v46  ;;  %v1294_v46 = vld [vmem:[#allocation2 + $0x1a8] sm:$0xff] }
 0x441   : > { %v3733_v53 = vadd.f32 %v4072_v23, %v3602_v18  ;;  %v2785_v63 = vsel %vm366_vm1, %v2737_v15, %v7371_v19  ;;  %v4303_v18 = vld [vmem:[#allocation2 + $0x197] sm:$0xff]  ;;  %2411 = vrot.lane.b32.xlu2 %v1294_v46, %s4352_s29  ;;  %v7391_v46 = vld [vmem:[#allocation43_spill] sm:$0xff] }
 0x442   : > { %v3338_v20 = vmax.f32 %v3233_v27, 0.0  ;;  %v2834_v21 = vsel %vm2804_vm4, %v2785_v63, %v6333_v14  ;;  %v4304_v30 = vld [vmem:[#allocation2 + $0xf7] sm:$0xff] }
 0x443   : > { %v3781_v6 = vmax.f32 %v3733_v53, 0.0  ;;  %v2640_v15 = vsel %vm1080_vm0, %v4304_v30, %v5427_v62  ;;  %v7376_v63 = vld [vmem:[#allocation173_spill] sm:$0xff]  ;;  %v7381_v30 = vld [vmem:[#allocation171_spill] sm:$0xff] }
 0x444   : > { %2552 = vrot.lane.b32.xlu1 %v6480_v49, %s4351_s28  ;;  %4133 = vmatmul.msk.f32.gmra.mxu2 %vm1080_vm0, %v3338_v20 }
 0x445   : > { %2387 = vrot.lane.b32.xlu0 %v6011_v17, %s4352_s29  ;;  %3829 = vst.msk [vmem:[%s6312_s8 + $0x30] sm:$0xff] %vm366_vm1, %v3781_v6  ;;  %v6534_v6 = vld [vmem:[#allocation2 + $0x199] sm:$0xff] }
 0x446   : > { %v2231_v39 = vpop.permute.xlu1 %2230 }
 0x447   : > { %v3604_v57 = vpop.f32.mrf.mxu2  ;;  %v2883_v0 = vsel %vm2853_vm5, %v2834_v21, %v2231_v39  ;;  %v2398_v22 = vpop.permute.xlu0 %2397 }
 0x448   : > { %v3605_v10 = vadd.f32 %v6287_v60, %v3604_v57  ;;  %v2932_v17 = vsel %vm2902_vm6, %v2883_v0, %v2378_v31  ;;  %v4075_v57 = vld [vmem:[%s4434_s16 + $0x60] sm:$0xff] }
 0x449   : > { %v2981_v35 = vsel %vm2951_vm7, %v2932_v17, %v6384_v28  ;;  %v6511_v28 = vpop.permute.xlu2 %2107  ;;  %2119 = vrot.lane.b32.xlu2 %v6534_v6, %s4350_s23 }
 0x44a   : > { %v3734_v47 = vadd.f32 %v4073_v9, %v3605_v10  ;;  %4047 = vmatmul.msk.f32.gmra.mxu1 %vm3013_vm8, %v2981_v35 }
 0x44c   : > { %v3782_v14 = vmax.f32 %v3734_v47, 0.0  ;;  %2240 = vrot.lane.b32.xlu1 %v4302_v16, %s4353_s30 }
 0x44d   : > { %2407 = vrot.lane.b32.xlu0 %v6501_v11, %s4352_s29  ;;  %v3235_v24 = vpop.f32.mrf.mxu1 }
 0x44e   : > { %3830 = vst.msk [vmem:[%s6312_s8 + $0x38] sm:$0xff] %vm366_vm1, %v3782_v14  ;;  %v3236_v13 = vadd.f32 %v5926_v61, %v3235_v24  ;;  %v2251_v29 = vpop.permute.xlu1 %2250 }
 0x44f   : > { %v1959_v42 = vpop.permute.xlu0 %1958  ;;  %v2893_v31 = vsel %vm2853_vm5, %v2844_v3, %v2251_v29 }
 0x450   : > { %v3339_v23 = vmax.f32 %v3236_v13, 0.0  ;;  %v2942_v55 = vsel %vm2902_vm6, %v2893_v31, %v2398_v22  ;;  %v4306_v13 = vld [vmem:[#allocation2 + $0x151] sm:$0xff] }
 0x451   : > { %v6530_v43 = vpop.permute.xlu2 %2528 }
 0x452   : > { %4134 = vmatmul.msk.f32.gmra.mxu2 %vm1080_vm0, %v3339_v23  ;;  %v4076_v23 = vld [vmem:[%s4434_s16 + $0x68] sm:$0xff] }
 0x454   : > { %2260 = vrot.lane.b32.xlu1 %v4303_v18, %s4353_s30 }
 0x455   : > { %2095 = vrot.lane.b32.xlu0 %v6089_v8, %s4350_s23  ;;  %v3607_v34 = vpop.f32.mrf.mxu2 }
 0x456   : > { %v3608_v27 = vadd.f32 %v6287_v60, %v3607_v34  ;;  %v3238_v26 = vpop.f32.mrf.mxu1  ;;  %v2545_v53 = vpop.permute.xlu1 %2544 }
 0x457   : > { %v3239_v58 = vadd.f32 %v5926_v61, %v3238_v26  ;;  %v2380_v20 = vpop.permute.xlu0 %2379  ;;  %v2991_v25 = vsel %vm2951_vm7, %v2942_v55, %v2545_v53  ;;  %v7375_v61 = vld [vmem:[#allocation170_spill] sm:$0xff] }
 0x458   : > { %v3735_v1 = vadd.f32 %v4074_v44, %v3608_v27  ;;  %4057 = vmatmul.msk.f32.gmra.mxu3 %vm3013_vm8, %v2991_v25  ;;  %v2689_v19 = vsel %vm2658_vm2, %v2640_v15, %v7375_v61 }
 0x459   : > { %v3340_v5 = vmax.f32 %v3239_v58, 0.0  ;;  %v2738_v21 = vsel %vm2707_vm3, %v2689_v19, %v7376_v63  ;;  %v6606_v19 = vld [vmem:[#allocation2 + $0x157] sm:$0xff] }
 0x45a   : > { %v3783_v8 = vmax.f32 %v3735_v1, 0.0  ;;  %v2786_v39 = vsel %vm366_vm1, %v2738_v21, %v5585_v54  ;;  %v4077_v63 = vld [vmem:[%s4434_s16 + $0x70] sm:$0xff] }
 0x45b   : > { %4135 = vmatmul.msk.f32.gmra.mxu2 %vm1080_vm0, %v3340_v5  ;;  %v2835_v62 = vsel %vm2804_vm4, %v2786_v39, %v6405_v33  ;;  %v6563_v33 = vpop.permute.xlu2 %2089  ;;  %v4307_v5 = vld [vmem:[#allocation2 + $0xff] sm:$0xff] }
 0x45c   : > { %3831 = vst.msk [vmem:[%s6312_s8 + $0x40] sm:$0xff] %vm366_vm1, %v3783_v8  ;;  %2554 = vrot.lane.b32.xlu1 %v6534_v6, %s4351_s28  ;;  %v7380_v8 = vld [vmem:[#allocation169_spill] sm:$0xff] }
 0x45d   : > { %2115 = vrot.lane.b32.xlu0 %v6419_v48, %s4350_s23  ;;  %v6560_v48 = vld [vmem:[%s7021_s4] ss:$0 sm:$0xff]  ;;  %v1292_v6 = vld [vmem:[#allocation2 + $0x1af] sm:$0xff] }
 0x45e   : > { %v2233_v9 = vpop.permute.xlu1 %2232  ;;  %v3610_v0 = vpop.f32.mrf.mxu2 }
 0x45f   : > { %v2884_v22 = vsel %vm2853_vm5, %v2835_v62, %v2233_v9  ;;  %v2400_v10 = vpop.permute.xlu0 %2399  ;;  %v3611_v17 = vadd.f32 %v6287_v60, %v3610_v0  ;;  %v3241_v47 = vpop.f32.mrf.mxu1  ;;  %v7382_v62 = vld [vmem:[#allocation182_spill] sm:$0xff] }
 0x460   : > { %v2933_v35 = vsel %vm2902_vm6, %v2884_v22, %v2380_v20  ;;  %v3242_v54 = vadd.f32 %v6560_v48, %v3241_v47  ;;  %v696_v53 = vpop.f32.mrf.mxu3 }
 0x461   : > { %v3736_v14 = vadd.f32 %v4075_v57, %v3611_v17  ;;  %v2982_v12 = vsel %vm2951_vm7, %v2933_v35, %v6457_v51  ;;  %v7379_v51 = vld [vmem:[#allocation49_spill] sm:$0xff] }
 0x462   : > { %v3341_v37 = vmax.f32 %v3242_v54, 0.0  ;;  %4048 = vmatmul.msk.f32.gmra.mxu1 %vm3013_vm8, %v2982_v12  ;;  %v2748_v29 = vsel %vm2707_vm3, %v2699_v52, %v7379_v51  ;;  %v7384_v52 = vld [vmem:[#allocation28_spill] sm:$0xff]  ;;  %v4078_v51 = vld [vmem:[%s4434_s16 + $0x78] sm:$0xff] }
 0x463   : > { %v3784_v24 = vmax.f32 %v3736_v14, 0.0  ;;  %v2796_v3 = vsel %vm366_vm1, %v2748_v29, %v1959_v42  ;;  %v6585_v34 = vpop.permute.xlu2 %2109 }
 0x464   : > { %1968 = vrot.lane.b32.xlu1 %v6388_v32, %s4349_s22  ;;  %4136 = vmatmul.msk.f32.gmra.mxu2 %vm1080_vm0, %v3341_v37  ;;  %v2845_v44 = vsel %vm2804_vm4, %v2796_v3, %v6436_v41 }
 0x465   : > { %2536 = vrot.lane.b32.xlu0 %v4306_v13, %s4351_s28  ;;  %3832 = vst.msk [vmem:[%s6312_s8 + $0x48] sm:$0xff] %vm366_vm1, %v3784_v24 }
 0x466   : > { %v2253_v38 = vpop.permute.xlu1 %2252 }
 0x467   : > { %v3613_v16 = vpop.f32.mrf.mxu2  ;;  %v1961_v32 = vpop.permute.xlu0 %1960  ;;  %v2894_v27 = vsel %vm2853_vm5, %v2845_v44, %v2253_v38  ;;  %v7385_v38 = vld [vmem:[#allocation31_spill] sm:$0xff] }
 0x468   : > { %v3614_v31 = vadd.f32 %v6287_v60, %v3613_v16  ;;  %v2943_v41 = vsel %vm2902_vm6, %v2894_v27, %v2400_v10  ;;  %v699_v39 = vpop.f32.mrf.mxu3 }
 0x46a   : > { %v3737_v18 = vadd.f32 %v4076_v23, %v3614_v31 }
 0x46b   : > { %v6613_v57 = vpop.permute.xlu2 %2530 }
 0x46c   : > { %v3785_v26 = vmax.f32 %v3737_v18, 0.0  ;;  %2389 = vrot.lane.b32.xlu1 %v6070_v2, %s4352_s29  ;;  %v1293_v2 = vld [vmem:[#allocation2 + $0x1a0] sm:$0xff] }
 0x46d   : > { %1950 = vrot.lane.b32.xlu0 %v6425_v56, %s4349_s22  ;;  %v3244_v42 = vpop.f32.mrf.mxu1  ;;  %v2641_v56 = vsel %vm1080_vm0, %v4307_v5, %v7380_v8  ;;  %v4309_v5 = vld [vmem:[#allocation2 + $0x107] sm:$0xff] }
 0x46e   : > { %3833 = vst.msk [vmem:[%s6312_s8 + $0x50] sm:$0xff] %vm366_vm1, %v3785_v26  ;;  %v3245_v58 = vadd.f32 %v6560_v48, %v3244_v42  ;;  %v2547_v55 = vpop.permute.xlu1 %2546  ;;  %v2690_v15 = vsel %vm2658_vm2, %v2641_v56, %v7381_v30  ;;  %v7386_v8 = vld [vmem:[#allocation12_spill] sm:$0xff] }
 0x46f   : > { %v2382_v1 = vpop.permute.xlu0 %2381  ;;  %v2992_v20 = vsel %vm2951_vm7, %v2943_v41, %v2547_v55  ;;  %v2739_v61 = vsel %vm2707_vm3, %v2690_v15, %v5514_v59  ;;  %v2642_v56 = vsel %vm1080_vm0, %v4309_v5, %v7386_v8  ;;  %v7387_v15 = vld [vmem:[#allocation141_spill] sm:$0xff]  ;;  %v7395_v5 = vld [vmem:[#allocation178_spill] sm:$0xff] }
 0x470   : > { %v3342_v25 = vmax.f32 %v3245_v58, 0.0  ;;  %4058 = vmatmul.msk.f32.gmra.mxu3 %vm3013_vm8, %v2992_v20  ;;  %v2787_v9 = vsel %vm366_vm1, %v2739_v61, %v7382_v62  ;;  %v702_v13 = vpop.f32.mrf.mxu3  ;;  %v1297_v58 = vld [vmem:[#allocation2 + $0x1a9] sm:$0xff]  ;;  %v2691_v61 = vsel %vm2658_vm2, %v2642_v56, %v7387_v15  ;;  %v4310_v62 = vld [vmem:[#allocation2 + $0x159] sm:$0xff] }
 0x471   : > { %v2836_v59 = vsel %vm2804_vm4, %v2787_v9, %v6478_v4  ;;  %v7383_v4 = vld [vmem:[#allocation15_spill] sm:$0xff]  ;;  %v7389_v9 = vld [vmem:[#allocation164_spill] sm:$0xff]  ;;  %v1298_v13 = vld [vmem:[#allocation2 + $0x1b1] sm:$0xff] }
 0x472   : > { %4137 = vmatmul.msk.f32.gmra.mxu2 %vm1080_vm0, %v3342_v25  ;;  %v2651_v7 = vsel %vm1080_vm0, %v6259_v40, %v7383_v4  ;;  %v4079_v25 = vld [vmem:[%s4434_s16 + $0x80] sm:$0xff]  ;;  %v4080_v4 = vld [vmem:[%s4434_s16 + $0x88] sm:$0xff]  ;;  %2560 = vrot.lane.b32.xlu2 %v1298_v13, %s4351_s28  ;;  %v7396_v56 = vld [vmem:[#allocation181_spill] sm:$0xff] }
 0x473   : > { %v6641_v18 = vpop.permute.xlu2 %2091 }
 0x474   : > { %2409 = vrot.lane.b32.xlu1 %v1293_v2, %s4352_s29 }
 0x475   : > { %2244 = vrot.lane.b32.xlu0 %v6606_v19, %s4353_s30  ;;  %v3616_v21 = vpop.f32.mrf.mxu2 }
 0x476   : > { %v3617_v0 = vadd.f32 %v6287_v60, %v3616_v21  ;;  %v2235_v22 = vpop.permute.xlu1 %2234  ;;  %v3247_v10 = vpop.f32.mrf.mxu1  ;;  %v7388_v21 = vld [vmem:[#allocation145_spill] sm:$0xff] }
 0x477   : > { %v2885_v47 = vsel %vm2853_vm5, %v2836_v59, %v2235_v22  ;;  %v2402_v35 = vpop.permute.xlu0 %2401  ;;  %v3248_v54 = vadd.f32 %v6560_v48, %v3247_v10  ;;  %v2740_v39 = vsel %vm2707_vm3, %v2691_v61, %v7388_v21 }
 0x478   : > { %v3738_v17 = vadd.f32 %v4077_v63, %v3617_v0  ;;  %v2934_v14 = vsel %vm2902_vm6, %v2885_v47, %v2382_v1  ;;  %v2788_v0 = vsel %vm366_vm1, %v2740_v39, %v7389_v9  ;;  %v4082_v9 = vld [vmem:[%s4434_s16 + $0x98] sm:$0xff] }
 0x479   : > { %v3343_v37 = vmax.f32 %v3248_v54, 0.0  ;;  %v2983_v24 = vsel %vm2951_vm7, %v2934_v14, %v6530_v43  ;;  %v2700_v43 = vsel %vm2658_vm2, %v2651_v7, %v7384_v52  ;;  %v2837_v10 = vsel %vm2804_vm4, %v2788_v0, %v6563_v33 }
 0x47a   : > { %v3786_v12 = vmax.f32 %v3738_v17, 0.0  ;;  %4049 = vmatmul.msk.f32.gmra.mxu1 %vm3013_vm8, %v2983_v24  ;;  %v2749_v23 = vsel %vm2707_vm3, %v2700_v43, %v7385_v38  ;;  %v7390_v24 = vld [vmem:[#allocation38_spill] sm:$0xff]  ;;  %v7392_v43 = vld [vmem:[#allocation60_spill] sm:$0xff] }
 0x47b   : > { %4138 = vmatmul.msk.f32.gmra.mxu2 %vm1080_vm0, %v3343_v37  ;;  %v6662_v30 = vpop.permute.xlu2 %2111  ;;  %v2652_v33 = vsel %vm1080_vm0, %v6606_v19, %v7390_v24 }
 0x47c   : > { %3834 = vst.msk [vmem:[%s6312_s8 + $0x58] sm:$0xff] %vm366_vm1, %v3786_v12  ;;  %2097 = vrot.lane.b32.xlu1 %v6153_v36, %s4350_s23  ;;  %v2797_v36 = vsel %vm366_vm1, %v2749_v23, %v1961_v32  ;;  %v705_v32 = vpop.f32.mrf.mxu3  ;;  %v2701_v52 = vsel %vm2658_vm2, %v2652_v33, %v7391_v46 }
 0x47d   : > { %2264 = vrot.lane.b32.xlu0 %v1291_v45, %s4353_s30  ;;  %v2846_v26 = vsel %vm2804_vm4, %v2797_v36, %v6511_v28  ;;  %v1295_v36 = vld [vmem:[#allocation2 + $0x1b0] sm:$0xff] }
 0x47e   : > { %v3619_v29 = vpop.f32.mrf.mxu2  ;;  %v2255_v16 = vpop.permute.xlu1 %2254 }
 0x47f   : > { %v3620_v40 = vadd.f32 %v6287_v60, %v3619_v29  ;;  %v1963_v3 = vpop.permute.xlu0 %1962  ;;  %v3250_v31 = vpop.f32.mrf.mxu1  ;;  %v2895_v55 = vsel %vm2853_vm5, %v2846_v26, %v2255_v16 }
 0x480   : > { %v3251_v27 = vadd.f32 %v6560_v48, %v3250_v31  ;;  %v2944_v28 = vsel %vm2902_vm6, %v2895_v55, %v2402_v35 }
 0x481   : > { %v3739_v44 = vadd.f32 %v4078_v51, %v3620_v40  ;;  %v2750_v51 = vsel %vm2707_vm3, %v2701_v52, %v7392_v43  ;;  %v4083_v43 = vld [vmem:[%s4434_s16 + $0xa0] sm:$0xff] }
 0x482   : > { %v3344_v42 = vmax.f32 %v3251_v27, 0.0  ;;  %v2798_v29 = vsel %vm366_vm1, %v2750_v51, %v1963_v3  ;;  %v4081_v3 = vld [vmem:[%s4434_s16 + $0x90] sm:$0xff] }
 0x483   : > { %v3787_v53 = vmax.f32 %v3739_v44, 0.0  ;;  %v2533_v45 = vpop.permute.xlu2 %2532  ;;  %v2847_v31 = vsel %vm2804_vm4, %v2798_v29, %v6585_v34 }
 0x484   : > { %2117 = vrot.lane.b32.xlu1 %v6480_v49, %s4350_s23  ;;  %4139 = vmatmul.msk.f32.gmra.mxu2 %vm1080_vm0, %v3344_v42 }
 0x485   : > { %3835 = vst.msk [vmem:[%s6312_s8 + $0x60] sm:$0xff] %vm366_vm1, %v3787_v53  ;;  %2558 = vrot.lane.b32.xlu0 %v1297_v58, %s4351_s28 }
 0x486   : > { %v2549_v41 = vpop.permute.xlu1 %2548 }
 0x487   : > { %v2384_v1 = vpop.permute.xlu0 %2383  ;;  %v2993_v20 = vsel %vm2951_vm7, %v2944_v28, %v2549_v41  ;;  %v3622_v2 = vpop.f32.mrf.mxu2  ;;  %v4311_v28 = vld [vmem:[#allocation2 + $0x10f] sm:$0xff] }
 0x488   : > { %4059 = vmatmul.msk.f32.gmra.mxu3 %vm3013_vm8, %v2993_v20  ;;  %v3623_v49 = vadd.f32 %v6287_v60, %v3622_v2  ;;  %v7394_v2 = vld [vmem:[#allocation175_spill] sm:$0xff] }
 0x48a   : > { %v3740_v63 = vadd.f32 %v4079_v25, %v3623_v49 }
 0x48b   : > { %v6705_v53 = vpop.permute.xlu2 %2093 }
 0x48c   : > { %2538 = vrot.lane.b32.xlu1 %v4310_v62, %s4351_s28  ;;  %v3788_v59 = vmax.f32 %v3740_v63, 0.0 }
 0x48d   : > { %v3253_v22 = vpop.f32.mrf.mxu1  ;;  %2266 = vrot.lane.b32.xlu0 %v1292_v6, %s4353_s30 }
 0x48e   : > { %v3254_v17 = vadd.f32 %v6560_v48, %v3253_v22  ;;  %v2237_v47 = vpop.permute.xlu1 %2236  ;;  %3836 = vst.msk [vmem:[%s6312_s8 + $0x68] sm:$0xff] %vm366_vm1, %v3788_v59 }
 0x48f   : > { %v2886_v35 = vsel %vm2853_vm5, %v2837_v10, %v2237_v47  ;;  %v2404_v54 = vpop.permute.xlu0 %2403 }
 0x490   : > { %v3345_v14 = vmax.f32 %v3254_v17, 0.0  ;;  %v2935_v12 = vsel %vm2902_vm6, %v2886_v35, %v2384_v1  ;;  %v7393_v1 = vld [vmem:[#allocation172_spill] sm:$0xff]  ;;  %v4312_v17 = vld [vmem:[#allocation2 + $0x15f] sm:$0xff]  ;;  %v7398_v35 = vld [vmem:[#allocation45_spill] sm:$0xff] }
 0x491   : > { %v2984_v37 = vsel %vm2951_vm7, %v2935_v12, %v6613_v57  ;;  %v2643_v20 = vsel %vm1080_vm0, %v4311_v28, %v7393_v1  ;;  %v7399_v12 = vld [vmem:[#allocation69_spill] sm:$0xff] }
 0x492   : > { %4050 = vmatmul.msk.f32.gmra.mxu1 %vm3013_vm8, %v2984_v37  ;;  %4140 = vmatmul.msk.f32.gmra.mxu2 %vm1080_vm0, %v3345_v14  ;;  %v2692_v49 = vsel %vm2658_vm2, %v2643_v20, %v7394_v2 }
 0x493   : > { %v2741_v8 = vsel %vm2707_vm3, %v2692_v49, %v7395_v5  ;;  %v6724_v39 = vpop.permute.xlu2 %2113 }
 0x494   : > { %1972 = vrot.lane.b32.xlu1 %v6501_v11, %s4349_s22  ;;  %v2789_v6 = vsel %vm366_vm1, %v2741_v8, %v7396_v56  ;;  %v7403_v8 = vld [vmem:[#allocation16_spill] sm:$0xff] }
 0x495   : > { %v3625_v7 = vpop.f32.mrf.mxu2  ;;  %v2838_v15 = vsel %vm2804_vm4, %v2789_v6, %v6641_v18  ;;  %v7397_v18 = vld [vmem:[#allocation42_spill] sm:$0xff] }
 0x496   : > { %v3626_v57 = vadd.f32 %v6287_v60, %v3625_v7  ;;  %v2257_v19 = vpop.permute.xlu1 %2256  ;;  %v2653_v47 = vsel %vm1080_vm0, %v4312_v17, %v7397_v18 }
 0x497   : > { %v1965_v11 = vpop.permute.xlu0 %1964  ;;  %v3256_v23 = vpop.f32.mrf.mxu1  ;;  %v2896_v27 = vsel %vm2853_vm5, %v2847_v31, %v2257_v19 }
 0x498   : > { %v3741_v38 = vadd.f32 %v4080_v4, %v3626_v57  ;;  %v3257_v16 = vadd.f32 %v6560_v48, %v3256_v23  ;;  %v2945_v55 = vsel %vm2902_vm6, %v2896_v27, %v2404_v54  ;;  %v2702_v54 = vsel %vm2658_vm2, %v2653_v47, %v7398_v35 }
 0x499   : > { %v2751_v37 = vsel %vm2707_vm3, %v2702_v54, %v7399_v12 }
 0x49a   : > { %v3789_v40 = vmax.f32 %v3741_v38, 0.0  ;;  %v3346_v44 = vmax.f32 %v3257_v16, 0.0  ;;  %v2799_v33 = vsel %vm366_vm1, %v2751_v37, %v1965_v11 }
 0x49b   : > { %v2535_v13 = vpop.permute.xlu2 %2534  ;;  %v2848_v46 = vsel %vm2804_vm4, %v2799_v33, %v6662_v30 }
 0x49c   : > { %3837 = vst.msk [vmem:[%s6312_s8 + $0x70] sm:$0xff] %vm366_vm1, %v3789_v40  ;;  %2413 = vrot.lane.b32.xlu1 %v1295_v36, %s4352_s29  ;;  %4141 = vmatmul.msk.f32.gmra.mxu2 %vm1080_vm0, %v3346_v44  ;;  %v4313_v40 = vld [vmem:[#allocation2 + $0x117] sm:$0xff]  ;;  %v7401_v44 = vld [vmem:[#allocation176_spill] sm:$0xff] }
 0x49d   : > { %v7400_v36 = vld [vmem:[#allocation174_spill] sm:$0xff] }
 0x49e   : > { %v3628_v26 = vpop.f32.mrf.mxu2  ;;  %v2551_v42 = vpop.permute.xlu1 %2550  ;;  %v2644_v31 = vsel %vm1080_vm0, %v4313_v40, %v7400_v36  ;;  %v7409_v36 = vld [vmem:[#allocation56_spill] sm:$0xff] }
 0x49f   : > { %v3629_v58 = vadd.f32 %v6287_v60, %v3628_v26  ;;  %v2386_v34 = vpop.permute.xlu0 %2385  ;;  %v2994_v32 = vsel %vm2951_vm7, %v2945_v55, %v2551_v42  ;;  %v2693_v27 = vsel %vm2658_vm2, %v2644_v31, %v7401_v44  ;;  %v4084_v55 = vld [vmem:[%s4434_s16 + $0xa8] sm:$0xff]  ;;  %v4087_v44 = vld [vmem:[%s4434_s16 + $0xc0] sm:$0xff] }
 0x4a0   : > { %4060 = vmatmul.msk.f32.gmra.mxu3 %vm3013_vm8, %v2994_v32 }
 0x4a1   : > { %v3742_v41 = vadd.f32 %v4081_v3, %v3629_v58  ;;  %v7402_v3 = vld [vmem:[#allocation180_spill] sm:$0xff] }
 0x4a2   : > { %v2742_v26 = vsel %vm2707_vm3, %v2693_v27, %v7402_v3  ;;  %v7410_v3 = vld [vmem:[#allocation63_spill] sm:$0xff] }
 0x4a3   : > { %v3790_v25 = vmax.f32 %v3742_v41, 0.0  ;;  %v1949_v42 = vpop.permute.xlu2 %1948  ;;  %v2790_v58 = vsel %vm366_vm1, %v2742_v26, %v5617_v50  ;;  %v4314_v50 = vld [vmem:[#allocation2 + $0x167] sm:$0xff] }
 0x4a4   : > { %v2839_v32 = vsel %vm2804_vm4, %v2790_v58, %v6705_v53  ;;  %v2654_v56 = vsel %vm1080_vm0, %v4314_v50, %v7403_v8  ;;  %v7404_v53 = vld [vmem:[#allocation37_spill] sm:$0xff] }
 0x4a5   : > { %3838 = vst.msk [vmem:[%s6312_s8 + $0x78] sm:$0xff] %vm366_vm1, %v3790_v25  ;;  %v2703_v6 = vsel %vm2658_vm2, %v2654_v56, %v7404_v53 }
 0x4a6   : > { %v2239_v61 = vpop.permute.xlu1 %2238 }
 0x4a7   : > { %v2887_v63 = vsel %vm2853_vm5, %v2838_v15, %v2239_v61  ;;  %v2406_v21 = vpop.permute.xlu0 %2405  ;;  %v3631_v0 = vpop.f32.mrf.mxu2  ;;  %v7405_v15 = vld [vmem:[#allocation39_spill] sm:$0xff] }
 0x4a8   : > { %v2936_v62 = vsel %vm2902_vm6, %v2887_v63, %v2386_v34  ;;  %v3632_v59 = vadd.f32 %v6287_v60, %v3631_v0  ;;  %v2752_v61 = vsel %vm2707_vm3, %v2703_v6, %v7405_v15 }
 0x4a9   : > { %v2985_v22 = vsel %vm2951_vm7, %v2936_v62, %v2533_v45 }
 0x4aa   : > { %4051 = vmatmul.msk.f32.gmra.mxu1 %vm3013_vm8, %v2985_v22  ;;  %v3743_v10 = vadd.f32 %v4082_v9, %v3632_v59  ;;  %v4085_v22 = vld [vmem:[%s4434_s16 + $0xb0] sm:$0xff] }
 0x4ab   : > { %v2243_v63 = vpop.permute.xlu2 %2242 }
 0x4ac   : > { %v3791_v14 = vmax.f32 %v3743_v10, 0.0 }
 0x4ae   : > { %v2259_v24 = vpop.permute.xlu1 %2258  ;;  %3839 = vst.msk [vmem:[%s6312_s8 + $0x80] sm:$0xff] %vm366_vm1, %v3791_v14 }
 0x4af   : > { %v1967_v45 = vpop.permute.xlu0 %1966  ;;  %v3259_v4 = vpop.f32.mrf.mxu1  ;;  %v2897_v57 = vsel %vm2853_vm5, %v2848_v46, %v2259_v24  ;;  %v4315_v46 = vld [vmem:[#allocation2 + $0x11f] sm:$0xff] }
 0x4b0   : > { %v3260_v7 = vadd.f32 %v6560_v48, %v3259_v4  ;;  %v2946_v38 = vsel %vm2902_vm6, %v2897_v57, %v2406_v21  ;;  %v2800_v62 = vsel %vm366_vm1, %v2752_v61, %v1967_v45 }
 0x4b1   : > { %v2849_v18 = vsel %vm2804_vm4, %v2800_v62, %v6724_v39  ;;  %v4086_v39 = vld [vmem:[%s4434_s16 + $0xb8] sm:$0xff] }
 0x4b2   : > { %v3347_v52 = vmax.f32 %v3260_v7, 0.0 }
 0x4b3   : > { %v2263_v45 = vpop.permute.xlu2 %2262 }
 0x4b4   : > { %4142 = vmatmul.msk.f32.gmra.mxu2 %vm1080_vm0, %v3347_v52  ;;  %v7406_v52 = vld [vmem:[#allocation13_spill] sm:$0xff] }
 0x4b5   : > { %v3634_v51 = vpop.f32.mrf.mxu2  ;;  %v2645_v57 = vsel %vm1080_vm0, %v4315_v46, %v7406_v52 }
 0x4b6   : > { %v3635_v19 = vadd.f32 %v6287_v60, %v3634_v51  ;;  %v2553_v29 = vpop.permute.xlu1 %2552 }
 0x4b7   : > { %v2388_v23 = vpop.permute.xlu0 %2387  ;;  %v2995_v16 = vsel %vm2951_vm7, %v2946_v38, %v2553_v29  ;;  %v7408_v38 = vld [vmem:[#allocation155_spill] sm:$0xff] }
 0x4b8   : > { %v3744_v11 = vadd.f32 %v4083_v43, %v3635_v19  ;;  %4061 = vmatmul.msk.f32.gmra.mxu3 %vm3013_vm8, %v2995_v16  ;;  %v7407_v19 = vld [vmem:[#allocation153_spill] sm:$0xff] }
 0x4b9   : > { %v2694_v29 = vsel %vm2658_vm2, %v2645_v57, %v7407_v19  ;;  %v7417_v57 = vld [vmem:[#allocation26_spill] sm:$0xff] }
 0x4ba   : > { %v3792_v30 = vmax.f32 %v3744_v11, 0.0  ;;  %v2743_v11 = vsel %vm2707_vm3, %v2694_v29, %v7408_v38 }
 0x4bb   : > { %v2791_v16 = vsel %vm366_vm1, %v2743_v11, %v1949_v42  ;;  %v6810_v42 = vld [vmem:[%s7023_s6] ss:$0 sm:$0xff] }
 0x4bc   : > { %3840 = vst.msk [vmem:[%s6312_s8 + $0x88] sm:$0xff] %vm366_vm1, %v3792_v30  ;;  %v2557_v30 = vpop.permute.xlu2 %2556 }
 0x4be   : > { %v3637_v34 = vpop.f32.mrf.mxu2  ;;  %v2241_v41 = vpop.permute.xlu1 %2240 }
 0x4bf   : > { %v3638_v28 = vadd.f32 %v6287_v60, %v3637_v34  ;;  %v2888_v1 = vsel %vm2853_vm5, %v2839_v32, %v2241_v41  ;;  %v2408_v20 = vpop.permute.xlu0 %2407  ;;  %v7411_v32 = vld [vmem:[#allocation79_spill] sm:$0xff] }
 0x4c0   : > { %v2937_v25 = vsel %vm2902_vm6, %v2888_v1, %v2388_v23 }
 0x4c1   : > { %v3745_v2 = vadd.f32 %v4084_v55, %v3638_v28  ;;  %v2986_v49 = vsel %vm2951_vm7, %v2937_v25, %v2535_v13 }
 0x4c2   : > { %4052 = vmatmul.msk.f32.gmra.mxu1 %vm3013_vm8, %v2986_v49 }
 0x4c3   : > { %v3793_v5 = vmax.f32 %v3745_v2, 0.0 }
 0x4c4   : > { %v1971_v53 = vpop.permute.xlu2 %1970 }
 0x4c5   : > { %3841 = vst.msk [vmem:[%s6312_s8 + $0x90] sm:$0xff] %vm366_vm1, %v3793_v5 }
 0x4c6   : > { %v2261_v21 = vpop.permute.xlu1 %2260 }
 0x4c7   : > { %v2096_v9 = vpop.permute.xlu0 %2095  ;;  %v3262_v0 = vpop.f32.mrf.mxu1  ;;  %v2898_v35 = vsel %vm2853_vm5, %v2849_v18, %v2261_v21  ;;  %v4088_v21 = vld [vmem:[%s4434_s16 + $0xc8] sm:$0xff] }
 0x4c8   : > { %v3263_v59 = vadd.f32 %v6560_v48, %v3262_v0  ;;  %v3640_v10 = vpop.f32.mrf.mxu2  ;;  %v2947_v37 = vsel %vm2902_vm6, %v2898_v35, %v2408_v20  ;;  %v2840_v40 = vsel %vm2804_vm4, %v2791_v16, %v2096_v9  ;;  %v7412_v35 = vld [vmem:[#allocation177_spill] sm:$0xff] }
 0x4c9   : > { %v3641_v17 = vadd.f32 %v6287_v60, %v3640_v10  ;;  %v2889_v55 = vsel %vm2853_vm5, %v2840_v40, %v2243_v63 }
 0x4ca   : > { %v3348_v47 = vmax.f32 %v3263_v59, 0.0 }
 0x4cb   : > { %v3746_v54 = vadd.f32 %v4085_v22, %v3641_v17 }
 0x4cc   : > { %4143 = vmatmul.msk.f32.gmra.mxu2 %vm1080_vm0, %v3348_v47  ;;  %v2392_v10 = vpop.permute.xlu2 %2391  ;;  %v4318_v47 = vld [vmem:[#allocation2 + $0x127] sm:$0xff] }
 0x4cd   : > { %v3794_v14 = vmax.f32 %v3746_v54, 0.0  ;;  %v2646_v54 = vsel %vm1080_vm0, %v4318_v47, %v7412_v35 }
 0x4ce   : > { %v2555_v12 = vpop.permute.xlu1 %2554 }
 0x4cf   : > { %3842 = vst.msk [vmem:[%s6312_s8 + $0x98] sm:$0xff] %vm366_vm1, %v3794_v14  ;;  %v2116_v24 = vpop.permute.xlu0 %2115  ;;  %v2996_v33 = vsel %vm2951_vm7, %v2947_v37, %v2555_v12  ;;  %v4319_v14 = vld [vmem:[#allocation2 + $0x177] sm:$0xff] }
 0x4d0   : > { %4062 = vmatmul.msk.f32.gmra.mxu3 %vm3013_vm8, %v2996_v33  ;;  %v7413_v12 = vld [vmem:[#allocation62_spill] sm:$0xff] }
 0x4d1   : > { %v2656_v37 = vsel %vm1080_vm0, %v4319_v14, %v7413_v12 }
 0x4d4   : > { %v2412_v29 = vpop.permute.xlu2 %2411 }
 0x4d5   : > { %v3643_v4 = vpop.f32.mrf.mxu2 }
 0x4d6   : > { %v3644_v7 = vadd.f32 %v6287_v60, %v3643_v4  ;;  %v1969_v13 = vpop.permute.xlu1 %1968  ;;  %v4316_v60 = vld [vmem:[#allocation2 + $0x16f] sm:$0xff]  ;;  %v7416_v4 = vld [vmem:[#allocation86_spill] sm:$0xff] }
 0x4d7   : > { %v2537_v51 = vpop.permute.xlu0 %2536  ;;  %v2655_v31 = vsel %vm1080_vm0, %v4316_v60, %v7409_v36 }
 0x4d8   : > { %v3747_v43 = vadd.f32 %v4086_v39, %v3644_v7  ;;  %v2704_v26 = vsel %vm2658_vm2, %v2655_v31, %v7410_v3 }
 0x4d9   : > { %v2753_v41 = vsel %vm2707_vm3, %v2704_v26, %v7411_v32 }
 0x4da   : > { %v3795_v23 = vmax.f32 %v3747_v43, 0.0  ;;  %v2801_v25 = vsel %vm366_vm1, %v2753_v41, %v1969_v13  ;;  %v4089_v13 = vld [vmem:[%s4434_s16 + $0xd0] sm:$0xff] }
 0x4db   : > { %v2850_v56 = vsel %vm2804_vm4, %v2801_v25, %v2116_v24  ;;  %v7414_v24 = vld [vmem:[#allocation179_spill] sm:$0xff] }
 0x4dc   : > { %3843 = vst.msk [vmem:[%s6312_s8 + $0xa0] sm:$0xff] %vm366_vm1, %v3795_v23  ;;  %v2899_v15 = vsel %vm2853_vm5, %v2850_v56, %v2263_v45  ;;  %v2695_v33 = vsel %vm2658_vm2, %v2646_v54, %v7414_v24  ;;  %v7415_v45 = vld [vmem:[#allocation65_spill] sm:$0xff] }
 0x4dd   : > { %v2705_v39 = vsel %vm2658_vm2, %v2656_v37, %v7415_v45  ;;  %v2744_v43 = vsel %vm2707_vm3, %v2695_v33, %v7417_v57  ;;  %v4092_v45 = vld [vmem:[%s4434_s16 + $0xe8] sm:$0xff] }
 0x4de   : > { %v3646_v27 = vpop.f32.mrf.mxu2  ;;  %v2390_v58 = vpop.permute.xlu1 %2389  ;;  %v2754_v7 = vsel %vm2707_vm3, %v2705_v39, %v7416_v4 }
 0x4df   : > { %v3647_v34 = vadd.f32 %v6810_v42, %v3646_v27  ;;  %v2938_v28 = vsel %vm2902_vm6, %v2889_v55, %v2390_v58  ;;  %v1951_v1 = vpop.permute.xlu0 %1950  ;;  %v3265_v20 = vpop.f32.mrf.mxu1  ;;  %v2802_v52 = vsel %vm366_vm1, %v2754_v7, %v1971_v53 }
 0x4e0   : > { %v3266_v49 = vadd.f32 %v6560_v48, %v3265_v20  ;;  %v2987_v5 = vsel %vm2951_vm7, %v2938_v28, %v2537_v51  ;;  %v2792_v38 = vsel %vm366_vm1, %v2744_v43, %v1951_v1  ;;  %v6863_v1 = vpop.f32.mrf.mxu3 }
 0x4e1   : > { %v3748_v2 = vadd.f32 %v4087_v44, %v3647_v34  ;;  %4053 = vmatmul.msk.f32.gmra.mxu1 %vm3013_vm8, %v2987_v5  ;;  %v4090_v34 = vld [vmem:[%s4434_s16 + $0xd8] sm:$0xff]  ;;  %v7418_v5 = vld [vmem:[#allocation17_spill] sm:$0xff] }
 0x4e2   : > { %v3349_v8 = vmax.f32 %v3266_v49, 0.0  ;;  %v4320_v49 = vld [vmem:[#allocation2 + $0x17f] sm:$0xff] }
 0x4e3   : > { %v3796_v50 = vmax.f32 %v3748_v2, 0.0  ;;  %v2120_v2 = vpop.permute.xlu2 %2119 }
 0x4e4   : > { %4144 = vmatmul.msk.f32.gmra.mxu2 %vm1080_vm0, %v3349_v8  ;;  %v7419_v8 = vld [vmem:[#allocation48_spill] sm:$0xff] }
 0x4e5   : > { %3844 = vst.msk [vmem:[%s6312_s8 + $0xa8] sm:$0xff] %vm366_vm1, %v3796_v50  ;;  %v2657_v50 = vsel %vm1080_vm0, %v4320_v49, %v7418_v5  ;;  %v4095_v49 = vld [vmem:[%s4434_s16 + $0x100] sm:$0xff] }
 0x4e6   : > { %v2410_v6 = vpop.permute.xlu1 %2409  ;;  %v2706_v56 = vsel %vm2658_vm2, %v2657_v50, %v7419_v8 }
 0x4e7   : > { %v2948_v61 = vsel %vm2902_vm6, %v2899_v15, %v2410_v6  ;;  %v2245_v63 = vpop.permute.xlu0 %2244  ;;  %v3649_v62 = vpop.f32.mrf.mxu2  ;;  %v7420_v6 = vld [vmem:[#allocation51_spill] sm:$0xff] }
 0x4e8   : > { %v2997_v9 = vsel %vm2951_vm7, %v2948_v61, %v2557_v30  ;;  %v3650_v0 = vadd.f32 %v6810_v42, %v3649_v62  ;;  %v2755_v15 = vsel %vm2707_vm3, %v2706_v56, %v7420_v6  ;;  %v4091_v61 = vld [vmem:[%s4434_s16 + $0xe0] sm:$0xff] }
 0x4e9   : > { %4063 = vmatmul.msk.f32.gmra.mxu3 %vm3013_vm8, %v2997_v9 }
 0x4ea   : > { %v3749_v59 = vadd.f32 %v4088_v21, %v3650_v0  ;;  %v6875_v21 = vpop.f32.mrf.mxu3 }
 0x4ec   : > { %v3797_v22 = vmax.f32 %v3749_v59, 0.0 }
 0x4ee   : > { %v2098_v17 = vpop.permute.xlu1 %2097  ;;  %3845 = vst.msk [vmem:[%s6312_s8 + $0xb0] sm:$0xff] %vm366_vm1, %v3797_v22 }
 0x4ef   : > { %v2265_v18 = vpop.permute.xlu0 %2264  ;;  %v2841_v30 = vsel %vm2804_vm4, %v2792_v38, %v2098_v17  ;;  %v2561_v17 = vpop.permute.xlu2 %2560 }
 0x4f0   : > { %v2890_v26 = vsel %vm2853_vm5, %v2841_v30, %v2245_v63 }
 0x4f1   : > { %v2939_v55 = vsel %vm2902_vm6, %v2890_v26, %v2392_v10 }
 0x4f2   : > { %v3292_v14 = vpop.f32.mrf.mxu3 }
 0x4f3   : > { %v3293_v33 = vadd.f32 %v6560_v48, %v3292_v14 }
 0x4f5   : > { %v3652_v46 = vpop.f32.mrf.mxu2  ;;  %v3358_v7 = vmax.f32 %v3293_v33, 0.0 }
 0x4f6   : > { %v3653_v51 = vadd.f32 %v6810_v42, %v3652_v46  ;;  %v2118_v19 = vpop.permute.xlu1 %2117 }
 0x4f7   : > { %v2851_v11 = vsel %vm2804_vm4, %v2802_v52, %v2118_v19  ;;  %v3268_v23 = vpop.f32.mrf.mxu1  ;;  %v2559_v16 = vpop.permute.xlu0 %2558 }
 0x4f8   : > { %v3750_v40 = vadd.f32 %v4089_v13, %v3653_v51  ;;  %v3269_v60 = vadd.f32 %v6560_v48, %v3268_v23  ;;  %v2900_v36 = vsel %vm2853_vm5, %v2851_v11, %v2265_v18  ;;  %v4093_v51 = vld [vmem:[%s4434_s16 + $0xf0] sm:$0xff] }
 0x4f9   : > { %v2949_v31 = vsel %vm2902_vm6, %v2900_v36, %v2412_v29 }
 0x4fa   : > { %v3798_v44 = vmax.f32 %v3750_v40, 0.0  ;;  %v3350_v27 = vmax.f32 %v3269_v60, 0.0  ;;  %v2998_v3 = vsel %vm2951_vm7, %v2949_v31, %v2559_v16  ;;  %v3295_v13 = vpop.f32.mrf.mxu3 }
 0x4fb   : > { %4064 = vmatmul.msk.f32.gmra.mxu3 %vm3013_vm8, %v2998_v3  ;;  %v3296_v57 = vadd.f32 %v6560_v48, %v3295_v13  ;;  %v4094_v3 = vld [vmem:[%s4434_s16 + $0xf8] sm:$0xff] }
 0x4fc   : > { %3846 = vst.msk [vmem:[%s6312_s8 + $0xb8] sm:$0xff] %vm366_vm1, %v3798_v44  ;;  %4145 = vmatmul.msk.f32.gmra.mxu2 %vm1080_vm0, %v3350_v27 }
 0x4fd   : > { %v3359_v43 = vmax.f32 %v3296_v57, 0.0 }
 0x4fe   : > { %v2539_v58 = vpop.permute.xlu1 %2538  ;;  %v3655_v32 = vpop.f32.mrf.mxu2 }
 0x4ff   : > { %v2988_v41 = vsel %vm2951_vm7, %v2939_v55, %v2539_v58  ;;  %v3656_v28 = vadd.f32 %v6810_v42, %v3655_v32  ;;  %v2267_v22 = vpop.permute.xlu0 %2266 }
 0x500   : > { %4054 = vmatmul.msk.f32.gmra.mxu1 %vm3013_vm8, %v2988_v41 }
 0x501   : > { %v3751_v20 = vadd.f32 %v4090_v34, %v3656_v28 }
 0x503   : > { %v3799_v25 = vmax.f32 %v3751_v20, 0.0 }
 0x505   : > { %3847 = vst.msk [vmem:[%s6312_s8 + $0xc0] sm:$0xff] %vm366_vm1, %v3799_v25 }
 0x506   : > { %v1973_v53 = vpop.permute.xlu1 %1972 }
 0x507   : > { %v3658_v63 = vpop.f32.mrf.mxu2  ;;  %v2803_v62 = vsel %vm366_vm1, %v2755_v15, %v1973_v53 }
 0x508   : > { %v3659_v9 = vadd.f32 %v6810_v42, %v3658_v63  ;;  %v2852_v59 = vsel %vm2804_vm4, %v2803_v62, %v2120_v2 }
 0x509   : > { %v2901_v18 = vsel %vm2853_vm5, %v2852_v59, %v2267_v22 }
 0x50a   : > { %v3752_v0 = vadd.f32 %v4091_v61, %v3659_v9  ;;  %v4096_v9 = vld [vmem:[%s4434_s16 + $0x108] sm:$0xff] }
 0x50b   : > { %v3298_v29 = vpop.f32.mrf.mxu3 }
 0x50c   : > { %v3800_v10 = vmax.f32 %v3752_v0, 0.0  ;;  %v3299_v23 = vadd.f32 %v6560_v48, %v3298_v29 }
 0x50e   : > { %3848 = vst.msk [vmem:[%s6312_s8 + $0xc8] sm:$0xff] %vm366_vm1, %v3800_v10  ;;  %v2414_v47 = vpop.permute.xlu1 %2413  ;;  %v3360_v30 = vmax.f32 %v3299_v23, 0.0 }
 0x50f   : > { %v2950_v35 = vsel %vm2902_vm6, %v2901_v18, %v2414_v47  ;;  %v3271_v54 = vpop.f32.mrf.mxu1 }
 0x510   : > { %v2999_v12 = vsel %vm2951_vm7, %v2950_v35, %v2561_v17  ;;  %v3272_v37 = vadd.f32 %v6560_v48, %v3271_v54 }
 0x511   : > { %4065 = vmatmul.msk.f32.gmra.mxu3 %vm3013_vm8, %v2999_v12 }
 0x512   : > { %v3351_v24 = vmax.f32 %v3272_v37, 0.0  ;;  %v4097_v37 = vld [vmem:[%s4434_s16 + $0x110] sm:$0xff] }
 0x514   : > { %4146 = vmatmul.msk.f32.gmra.mxu2 %vm1080_vm0, %v3351_v24 }
 0x515   : > { %v3661_v39 = vpop.f32.mrf.mxu2 }
 0x516   : > { %v3662_v4 = vadd.f32 %v6810_v42, %v3661_v39 }
 0x518   : > { %v3753_v46 = vadd.f32 %v4092_v45, %v3662_v4 }
 0x519   : > { %4153 = vmatmul.msk.f32.vlgmr.msra.gmra.mxu3 %vm1080_vm0, %v3358_v7  ;;  %v3287_v7 = vadd.f32 %v6560_v48, %v6863_v1 }
 0x51a   : > { %v3801_v52 = vmax.f32 %v3753_v46, 0.0 }
 0x51b   : > { %v3356_v46 = vmax.f32 %v3287_v7, 0.0  ;;  %v4102_v7 = vld [vmem:[%s4434_s16 + $0x138] sm:$0xff] }
 0x51c   : > { %3849 = vst.msk [vmem:[%s6312_s8 + $0xd0] sm:$0xff] %vm366_vm1, %v3801_v52  ;;  %v3290_v52 = vadd.f32 %v6560_v48, %v6875_v21  ;;  %v4105_v21 = vld [vmem:[%s4434_s16 + $0x150] sm:$0xff] }
 0x51e   : > { %v3357_v57 = vmax.f32 %v3290_v52, 0.0  ;;  %v4112_v52 = vld [vmem:[%s4434_s16 + $0x188] sm:$0xff] }
 0x51f   : > { %v3664_v19 = vpop.f32.mrf.mxu2 }
 0x520   : > { %v3665_v38 = vadd.f32 %v6810_v42, %v3664_v19  ;;  %v4098_v19 = vld [vmem:[%s4434_s16 + $0x118] sm:$0xff] }
 0x521   : > { %4154 = vmatmul.msk.f32.gmra.mxu3 %vm1080_vm0, %v3359_v43 }
 0x522   : > { %v3754_v11 = vadd.f32 %v4093_v51, %v3665_v38 }
 0x523   : > { %v3301_v60 = vpop.f32.mrf.mxu3 }
 0x524   : > { %v3802_v16 = vmax.f32 %v3754_v11, 0.0  ;;  %v3302_v44 = vadd.f32 %v6560_v48, %v3301_v60  ;;  %v4106_v60 = vld [vmem:[%s4434_s16 + $0x158] sm:$0xff] }
 0x526   : > { %3850 = vst.msk [vmem:[%s6312_s8 + $0xd8] sm:$0xff] %vm366_vm1, %v3802_v16  ;;  %v3361_v27 = vmax.f32 %v3302_v44, 0.0 }
 0x527   : > { %v3274_v40 = vpop.f32.mrf.mxu1 }
 0x528   : > { %v3275_v36 = vadd.f32 %v6560_v48, %v3274_v40 }
 0x529   : > { %4155 = vmatmul.msk.f32.gmra.mxu3 %vm1080_vm0, %v3360_v30 }
 0x52a   : > { %v3352_v31 = vmax.f32 %v3275_v36, 0.0 }
 0x52c   : > { %4147 = vmatmul.msk.f32.gmra.mxu2 %vm1080_vm0, %v3352_v31 }
 0x531   : > { %4156 = vmatmul.msk.f32.gmra.mxu3 %vm1080_vm0, %v3361_v27 }
 0x537   : > { %v3667_v26 = vpop.f32.mrf.mxu2 }
 0x538   : > { %v3668_v58 = vadd.f32 %v6810_v42, %v3667_v26 }
 0x53a   : > { %v3755_v55 = vadd.f32 %v4094_v3, %v3668_v58  ;;  %v4107_v3 = vld [vmem:[%s4434_s16 + $0x160] sm:$0xff] }
 0x53b   : > { %v3304_v34 = vpop.f32.mrf.mxu3 }
 0x53c   : > { %v3803_v32 = vmax.f32 %v3755_v55, 0.0  ;;  %v3305_v41 = vadd.f32 %v6560_v48, %v3304_v34  ;;  %v4099_v34 = vld [vmem:[%s4434_s16 + $0x120] sm:$0xff] }
 0x53e   : > { %3851 = vst.msk [vmem:[%s6312_s8 + $0xe0] sm:$0xff] %vm366_vm1, %v3803_v32  ;;  %v3362_v28 = vmax.f32 %v3305_v41, 0.0 }
 0x53f   : > { %v3277_v20 = vpop.f32.mrf.mxu1 }
 0x540   : > { %v3278_v25 = vadd.f32 %v6560_v48, %v3277_v20  ;;  %4157 = vmatmul.msk.f32.gmra.mxu3 %vm1080_vm0, %v3362_v28 }
 0x542   : > { %v3353_v2 = vmax.f32 %v3278_v25, 0.0 }
 0x544   : > { %4148 = vmatmul.msk.f32.gmra.mxu2 %vm1080_vm0, %v3353_v2  ;;  %v4108_v2 = vld [vmem:[%s4434_s16 + $0x168] sm:$0xff] }
 0x54f   : > { %v3670_v5 = vpop.f32.mrf.mxu2 }
 0x550   : > { %v3671_v50 = vadd.f32 %v6810_v42, %v3670_v5 }
 0x552   : > { %v3756_v8 = vadd.f32 %v4095_v49, %v3671_v50 }
 0x553   : > { %v3307_v56 = vpop.f32.mrf.mxu3 }
 0x554   : > { %v3804_v53 = vmax.f32 %v3756_v8, 0.0  ;;  %v3308_v6 = vadd.f32 %v6560_v48, %v3307_v56  ;;  %v4109_v56 = vld [vmem:[%s4434_s16 + $0x170] sm:$0xff] }
 0x556   : > { %3852 = vst.msk [vmem:[%s6312_s8 + $0xe8] sm:$0xff] %vm366_vm1, %v3804_v53  ;;  %v3363_v15 = vmax.f32 %v3308_v6, 0.0 }
 0x558   : > { %4158 = vmatmul.msk.f32.gmra.mxu3 %vm1080_vm0, %v3363_v15 }
 0x55e   : > { %v3280_v61 = vpop.f32.mrf.mxu1 }
 0x55f   : > { %v3281_v63 = vadd.f32 %v6560_v48, %v3280_v61  ;;  %v4100_v61 = vld [vmem:[%s4434_s16 + $0x128] sm:$0xff] }
 0x561   : > { %v3354_v62 = vmax.f32 %v3281_v63, 0.0 }
 0x563   : > { %4149 = vmatmul.msk.f32.gmra.mxu2 %vm1080_vm0, %v3354_v62 }
 0x567   : > { %v3673_v0 = vpop.f32.mrf.mxu2 }
 0x568   : > { %v3674_v59 = vadd.f32 %v6810_v42, %v3673_v0 }
 0x56a   : > { %v3757_v22 = vadd.f32 %v4096_v9, %v3674_v59 }
 0x56c   : > { %v3805_v10 = vmax.f32 %v3757_v22, 0.0  ;;  %v3310_v17 = vpop.f32.mrf.mxu3  ;;  %v4110_v22 = vld [vmem:[%s4434_s16 + $0x178] sm:$0xff] }
 0x56d   : > { %v3311_v18 = vadd.f32 %v6560_v48, %v3310_v17 }
 0x56e   : > { %3853 = vst.msk [vmem:[%s6312_s8 + $0xf0] sm:$0xff] %vm366_vm1, %v3805_v10 }
 0x56f   : > { %v3364_v47 = vmax.f32 %v3311_v18, 0.0 }
 0x571   : > { %4159 = vmatmul.msk.f32.gmra.mxu3 %vm1080_vm0, %v3364_v47 }
 0x57d   : > { %v3283_v35 = vpop.f32.mrf.mxu1 }
 0x57e   : > { %v3284_v54 = vadd.f32 %v6560_v48, %v3283_v35  ;;  %v3313_v14 = vpop.f32.mrf.mxu3  ;;  %v4101_v35 = vld [vmem:[%s4434_s16 + $0x130] sm:$0xff] }
 0x57f   : > { %v3314_v12 = vadd.f32 %v6560_v48, %v3313_v14  ;;  %v3676_v24 = vpop.f32.mrf.mxu2 }
 0x580   : > { %v3355_v33 = vmax.f32 %v3284_v54, 0.0  ;;  %v3677_v45 = vadd.f32 %v6810_v42, %v3676_v24  ;;  %v4111_v24 = vld [vmem:[%s4434_s16 + $0x180] sm:$0xff] }
 0x581   : > { %v3365_v39 = vmax.f32 %v3314_v12, 0.0 }
 0x582   : > { %v3758_v4 = vadd.f32 %v4097_v37, %v3677_v45  ;;  %4150 = vmatmul.msk.f32.gmra.mxu2 %vm1080_vm0, %v3355_v33 }
 0x583   : > { %4160 = vmatmul.msk.f32.gmra.mxu3 %vm1080_vm0, %v3365_v39 }
 0x584   : > { %v3806_v13 = vmax.f32 %v3758_v4, 0.0 }
 0x586   : > { %3854 = vst.msk [vmem:[%s6312_s8 + $0xf8] sm:$0xff] %vm366_vm1, %v3806_v13 }
 0x58a   : > { %4151 = vmatmul.msk.f32.gmra.mxu2 %vm1080_vm0, %v3356_v46 }
 0x592   : > { %4152 = vmatmul.msk.f32.gmra.mxu2 %vm1080_vm0, %v3357_v57 }
 0x594   : > { %v3316_v43 = vpop.f32.mrf.mxu3 }
 0x595   : > { %v3317_v51 = vadd.f32 %v6560_v48, %v3316_v43 }
 0x597   : > { %v3366_v1 = vmax.f32 %v3317_v51, 0.0  ;;  %v3679_v29 = vpop.f32.mrf.mxu2 }
 0x598   : > { %v3680_v38 = vadd.f32 %v6810_v42, %v3679_v29 }
 0x599   : > { %4161 = vmatmul.msk.f32.gmra.mxu3 %vm1080_vm0, %v3366_v1 }
 0x59a   : > { %v3759_v11 = vadd.f32 %v4098_v19, %v3680_v38  ;;  %v4103_v38 = vld [vmem:[%s4434_s16 + $0x140] sm:$0xff] }
 0x59c   : > { %v3807_v23 = vmax.f32 %v3759_v11, 0.0  ;;  %v3700_v16 = vpop.f32.mrf.mxu3 }
 0x59d   : > { %v3701_v30 = vadd.f32 %v6810_v42, %v3700_v16 }
 0x59e   : > { %3855 = vst.msk [vmem:[%s6312_s8 + $0x100] sm:$0xff] %vm366_vm1, %v3807_v23 }
 0x59f   : > { %v3766_v40 = vadd.f32 %v4105_v21, %v3701_v30  ;;  %v4104_v30 = vld [vmem:[%s4434_s16 + $0x148] sm:$0xff] }
 0x5a1   : > { %v3814_v48 = vmax.f32 %v3766_v40, 0.0 }
 0x5a3   : > { %3862 = vst.msk [vmem:[%s6312_s8 + $0x138] sm:$0xff] %vm366_vm1, %v3814_v48 }
 0x5a4   : > { %v3703_v36 = vpop.f32.mrf.mxu3 }
 0x5a5   : > { %v3704_v31 = vadd.f32 %v6810_v42, %v3703_v36 }
 0x5a7   : > { %v3767_v44 = vadd.f32 %v4106_v60, %v3704_v31  ;;  %v4113_v31 = vld [vmem:[%s4434_s16 + $0x190] sm:$0xff] }
 0x5a9   : > { %v3815_v27 = vmax.f32 %v3767_v44, 0.0 }
 0x5ab   : > { %3863 = vst.msk [vmem:[%s6312_s8 + $0x140] sm:$0xff] %vm366_vm1, %v3815_v27 }
 0x5ac   : > { %v3706_v26 = vpop.f32.mrf.mxu3 }
 0x5ad   : > { %v3707_v58 = vadd.f32 %v6810_v42, %v3706_v26 }
 0x5af   : > { %v3768_v55 = vadd.f32 %v4107_v3, %v3707_v58  ;;  %v3682_v32 = vpop.f32.mrf.mxu2 }
 0x5b0   : > { %v3683_v41 = vadd.f32 %v6810_v42, %v3682_v32 }
 0x5b1   : > { %v3816_v28 = vmax.f32 %v3768_v55, 0.0 }
 0x5b2   : > { %v3760_v20 = vadd.f32 %v4099_v34, %v3683_v41 }
 0x5b3   : > { %3864 = vst.msk [vmem:[%s6312_s8 + $0x148] sm:$0xff] %vm366_vm1, %v3816_v28 }
 0x5b4   : > { %v3808_v25 = vmax.f32 %v3760_v20, 0.0  ;;  %v3709_v49 = vpop.f32.mrf.mxu3 }
 0x5b5   : > { %v3710_v5 = vadd.f32 %v6810_v42, %v3709_v49 }
 0x5b6   : > { %3856 = vst.msk [vmem:[%s6312_s8 + $0x108] sm:$0xff] %vm366_vm1, %v3808_v25 }
 0x5b7   : > { %v3769_v50 = vadd.f32 %v4108_v2, %v3710_v5 }
 0x5b9   : > { %v3817_v8 = vmax.f32 %v3769_v50, 0.0 }
 0x5bb   : > { %3865 = vst.msk [vmem:[%s6312_s8 + $0x150] sm:$0xff] %vm366_vm1, %v3817_v8 }
 0x5c3   : > { %v3712_v53 = vpop.f32.mrf.mxu3 }
 0x5c4   : > { %v3713_v6 = vadd.f32 %v6810_v42, %v3712_v53 }
 0x5c6   : > { %v3770_v15 = vadd.f32 %v4109_v56, %v3713_v6 }
 0x5c7   : > { %v3685_v63 = vpop.f32.mrf.mxu2 }
 0x5c8   : > { %v3818_v62 = vmax.f32 %v3770_v15, 0.0  ;;  %v3686_v9 = vadd.f32 %v6810_v42, %v3685_v63 }
 0x5ca   : > { %3866 = vst.msk [vmem:[%s6312_s8 + $0x158] sm:$0xff] %vm366_vm1, %v3818_v62  ;;  %v3761_v0 = vadd.f32 %v4100_v61, %v3686_v9 }
 0x5cc   : > { %v3809_v59 = vmax.f32 %v3761_v0, 0.0 }
 0x5ce   : > { %3857 = vst.msk [vmem:[%s6312_s8 + $0x110] sm:$0xff] %vm366_vm1, %v3809_v59 }
 0x5db   : > { %v3715_v10 = vpop.f32.mrf.mxu3 }
 0x5dc   : > { %v3716_v17 = vadd.f32 %v6810_v42, %v3715_v10 }
 0x5de   : > { %v3771_v18 = vadd.f32 %v4110_v22, %v3716_v17 }
 0x5e0   : > { %v3819_v47 = vmax.f32 %v3771_v18, 0.0 }
 0x5e2   : > { %3867 = vst.msk [vmem:[%s6312_s8 + $0x160] sm:$0xff] %vm366_vm1, %v3819_v47 }
 0x5e6   : > { %v3688_v54 = vpop.f32.mrf.mxu2 }
 0x5e7   : > { %v3689_v14 = vadd.f32 %v6810_v42, %v3688_v54 }
 0x5e9   : > { %v3762_v12 = vadd.f32 %v4101_v35, %v3689_v14 }
 0x5eb   : > { %v3810_v37 = vmax.f32 %v3762_v12, 0.0 }
 0x5ed   : > { %3858 = vst.msk [vmem:[%s6312_s8 + $0x118] sm:$0xff] %vm366_vm1, %v3810_v37 }
 0x5f4   : > { %v3718_v33 = vpop.f32.mrf.mxu3 }
 0x5f5   : > { %v3719_v45 = vadd.f32 %v6810_v42, %v3718_v33 }
 0x5f7   : > { %v3772_v39 = vadd.f32 %v4111_v24, %v3719_v45 }
 0x5f9   : > { %v3820_v4 = vmax.f32 %v3772_v39, 0.0 }
 0x5fb   : > { %3868 = vst.msk [vmem:[%s6312_s8 + $0x168] sm:$0xff] %vm366_vm1, %v3820_v4 }
 0x605   : > { %v3691_v13 = vpop.f32.mrf.mxu2 }
 0x606   : > { %v3692_v46 = vadd.f32 %v6810_v42, %v3691_v13  ;;  %v3721_v57 = vpop.f32.mrf.mxu3 }
 0x607   : > { %v3722_v43 = vadd.f32 %v6810_v42, %v3721_v57 }
 0x608   : > { %v3763_v51 = vadd.f32 %v4102_v7, %v3692_v46 }
 0x609   : > { %v3773_v1 = vadd.f32 %v4112_v52, %v3722_v43 }
 0x60a   : > { %v3811_v19 = vmax.f32 %v3763_v51, 0.0 }
 0x60b   : > { %v3821_v29 = vmax.f32 %v3773_v1, 0.0 }
 0x60c   : > { %3859 = vst.msk [vmem:[%s6312_s8 + $0x120] sm:$0xff] %vm366_vm1, %v3811_v19 }
 0x60d   : > { %3869 = vst.msk [vmem:[%s6312_s8 + $0x170] sm:$0xff] %vm366_vm1, %v3821_v29  ;;  %v3694_v11 = vpop.f32.mrf.mxu2 }
 0x60e   : > { %v3695_v23 = vadd.f32 %v6810_v42, %v3694_v11 }
 0x610   : > { %v3764_v21 = vadd.f32 %v4103_v38, %v3695_v23 }
 0x612   : > { %v3812_v16 = vmax.f32 %v3764_v21, 0.0 }
 0x614   : > { %3860 = vst.msk [vmem:[%s6312_s8 + $0x128] sm:$0xff] %vm366_vm1, %v3812_v16 }
 0x615   : > { %v3697_v40 = vpop.f32.mrf.mxu2 }
 0x616   : > { %v3698_v48 = vadd.f32 %v6810_v42, %v3697_v40 }
 0x618   : > { %v3765_v60 = vadd.f32 %v4104_v30, %v3698_v48 }
 0x61a   : > { %v3813_v36 = vmax.f32 %v3765_v60, 0.0 }
 0x61c   : > { %3861 = vst.msk [vmem:[%s6312_s8 + $0x130] sm:$0xff] %vm366_vm1, %v3813_v36  ;;  %v3724_v44 = vpop.f32.mrf.mxu3 }
 0x61d   : > { %v3725_v27 = vadd.f32 %v6810_v42, %v3724_v44 }
 0x61f   : > { %v3774_v3 = vadd.f32 %v4113_v31, %v3725_v27 }
 0x621   : > { %v3822_v26 = vmax.f32 %v3774_v3, 0.0 }
 0x623   : > { %3870 = vst.msk [vmem:[%s6312_s8 + $0x178] sm:$0xff] %vm366_vm1, %v3822_v26 }
 0x624 PF: > { %s17_s26 = sadd.s32 1, %s4343_s26   ;;  %s7421_s24 = smov %s4339_s25 }
 0x625   : > { %p14_p5 = scmp.ge.s32.totalorder %s17_s26, 4   ;;  %s7422_s25 = smov %s7424_s27 }
 0x627   :  { %16 = sbr.rel (!%p14_p5) target bundleno = 2 (0x2), region = 80 }

</bundles_post_ra>
